<compile_context>
chip_gen: v7x
topology: tpu7x:2x2x1
jax: 0.10.0
libtpu: 0.0.40
codegen_flags: <defaults>
</compile_context>

<pallas_src>
from dataclasses import dataclass
import numpy as np

import jax
import jax.numpy as jnp
from jax.experimental import pallas as pl
from jax.experimental.pallas import tpu as pltpu


@dataclass
class FlowDecoderConfig:
    hidden_channels: int
    kernel_size: int
    dilation_rate: int
    n_blocks: int
    n_layers: int
    p_dropout: float = 0.0
    n_split: int = 4
    n_sqz: int = 1
    sigmoid_scale: bool = False


# ----------------------------------------------------------------------------
# glue: channel squeeze / unsqueeze (pure reshapes, same as commons.channel_*)
# ----------------------------------------------------------------------------
def channel_squeeze(x, x_mask, n_sqz):
    b, c, t = x.shape
    t = (t // n_sqz) * n_sqz
    x = x[:, :, :t]
    x_sqz = x.reshape(b, c, t // n_sqz, n_sqz)
    x_sqz = jnp.transpose(x_sqz, (0, 3, 1, 2)).reshape(b, c * n_sqz, t // n_sqz)
    x_mask = x_mask[:, :, n_sqz - 1::n_sqz]
    return x_sqz * x_mask, x_mask


def channel_unsqueeze(x, x_mask, n_sqz):
    b, c, t = x.shape
    x_unsqz = x.reshape(b, n_sqz, c // n_sqz, t)
    x_unsqz = jnp.transpose(x_unsqz, (0, 2, 3, 1)).reshape(b, c // n_sqz, t * n_sqz)
    x_mask = jnp.repeat(x_mask[:, :, :, None], n_sqz, axis=3).reshape(b, 1, t * n_sqz)
    return x_unsqz * x_mask, x_mask


# ----------------------------------------------------------------------------
# Pallas kernel: the FULL decoder (all flow blocks) for one batch element per
# grid step.  Per-block weights are stacked on a leading axis; the block loop
# is a static Python loop inside the kernel (activation stays resident).
# ----------------------------------------------------------------------------
def make_flow_kernel(C, T, H, n_blocks, n_layers, K, dilation_rate,
                     pad_align, ld_bases, sigmoid_scale):
    half = C // 2
    L = n_layers
    f32 = jnp.float32
    bf16 = jnp.bfloat16

    def fast_sigmoid(v):
        # sigmoid(x) = 0.5 * (1 + tanh(x/2)): one EUP push instead of exp + divide.
        return 0.5 * (1.0 + jnp.tanh(0.5 * v))

    def kernel(x_ref, mask_ref, cb_ref,
               an_b_ref, an_s_ref, m_ic_ref,
               st_w_ref, st_b_ref,
               in_w_ref, rs_w_ref, rs_b_ref,
               end_w_ref, end_b_ref,
               z_ref, ld_ref,
               hpad_ref):
        mb = mask_ref[...]                                       # (1, T)
        x_len = jnp.sum(mb, axis=(0, 1), keepdims=True)          # (1, 1)

        # Zero the halo of the lane-aligned padded scratch once per grid step
        # (only the center [pad_align, pad_align + T) is ever written).
        if pad_align > 0:
            zero_halo = jnp.zeros((H, pad_align), bf16)
            hpad_ref[:, 0:pad_align] = zero_halo
            hpad_ref[:, pad_align + T:pad_align + T + pad_align] = zero_halo

        xb = x_ref[...]                                          # (C, T) f32
        ld = jnp.zeros((1, 1), f32)

        for nb in range(n_blocks):
            # -------------- ActNorm (forward); exp(logs) precomputed ---------
            xb = (an_b_ref[nb] + an_s_ref[nb] * xb) * mb         # (C, T)

            # ---- InvConvNear (forward) as an equivalent CxC 1x1 conv --------
            # masked columns of xb are exactly zero -> no re-mask needed.
            xb = jnp.dot(m_ic_ref[nb], xb, preferred_element_type=f32)
            x0 = xb[:half, :]
            x1 = xb[half:, :]

            # -------------- CouplingBlock (forward): start conv --------------
            h = (jnp.dot(st_w_ref[nb], x0, preferred_element_type=f32)
                 + st_b_ref[nb]) * mb                            # (H, T) f32

            skip = None
            for l in range(L):
                # NOTE: matches PyTorch only for integer dilation rates.
                dil = int(round(dilation_rate ** l))
                pad_l = (K * dil - dil) // 2
                if pad_align > 0:
                    # lane-aligned full-vreg store of the hidden into the
                    # scratch center; taps are read back as shifted windows.
                    hpad_ref[:, pad_align:pad_align + T] = h.astype(bf16)
                    taps = [hpad_ref[:, pad_align - pad_l + k * dil:
                                        pad_align - pad_l + k * dil + T]
                            for k in range(K)]
                else:  # K == 1
                    taps = [h.astype(bf16)]

                # dilated conv = K accumulating (2H, H) x (H, T) MXU matmuls;
                # conv bias + speaker conditioning pre-folded into cb_ref[nb,l].
                # nn.Dropout(p_dropout) is identity at inference time.
                x_in = cb_ref[nb, l]                             # (2H, 1) f32
                for k in range(K):
                    x_in = x_in + jnp.dot(in_w_ref[nb, l, k], taps[k],
                                          preferred_element_type=f32)

                # gated tanh/sigmoid unit (sigmoid via tanh -> half the EUP pushes)
                # TODO(synk): on v6e/v7x the gate could run in bf16 (bf16 EUP);
                # kept f32 so the same kernel is also optimal on v5e.
                acts = jnp.tanh(x_in[:H, :]) * fast_sigmoid(x_in[H:, :])
                acts_b = acts.astype(bf16)

                if l < L - 1:
                    rs = (jnp.dot(rs_w_ref[nb, l], acts_b,
                                  preferred_element_type=f32)
                          + rs_b_ref[nb, l])                     # (2H, T)
                    h = (h + rs[:H, :]) * mb
                    sk = rs[H:, :]
                else:
                    # last layer: only the skip half exists -> HxH matmul
                    sk = (jnp.dot(rs_w_ref[nb, l, H:2 * H, :], acts_b,
                                  preferred_element_type=f32)
                          + rs_b_ref[nb, l, H:2 * H, :])         # (H, T)
                skip = sk if skip is None else skip + sk

            skip = skip * mb
            out = (jnp.dot(end_w_ref[nb], skip, preferred_element_type=f32)
                   + end_b_ref[nb])                              # (C, T)
            m = out[:half, :]
            logs = out[half:, :]
            if sigmoid_scale:
                logs = jnp.log(1e-6 + fast_sigmoid(logs + 2.0))
            z1 = (m + jnp.exp(logs) * x1) * mb

            # logdet = (sum(an_logs) + logdet(W)*C/n_split) * x_len + sum(logs*mask)
            ld = ld + (ld_bases[nb] * x_len
                       + jnp.sum(logs * mb, axis=(0, 1), keepdims=True))

            # activation for the next block stays resident (no HBM round trip)
            xb = jnp.concatenate([x0, z1], axis=0)

        z_ref[...] = xb
        ld_ref[...] = ld

    return kernel


def run_flow_blocks(x, x_mask, cond_bias, stacked, ld_bases, cfg):
    B, C, T = x.shape
    H = cfg.hidden_channels
    L = cfg.n_layers
    K = cfg.kernel_size
    nB = cfg.n_blocks

    pads = [(K * int(round(cfg.dilation_rate ** l))
             - int(round(cfg.dilation_rate ** l))) // 2 for l in range(L)]
    pad_max = max(pads) if pads else 0
    pad_align = ((pad_max + 127) // 128) * 128 if pad_max > 0 else 0

    kernel = make_flow_kernel(C, T, H, nB, L, K, cfg.dilation_rate,
                              pad_align, ld_bases, cfg.sigmoid_scale)

    # invariant weights: whole-array, VMEM-resident, single-buffered
    weight_spec = pl.BlockSpec(memory_space=pltpu.MemorySpace.VMEM)

    args = (x, x_mask, cond_bias,
            stacked['an_bias'], stacked['an_scale'], stacked['m_ic'],
            stacked['start_w'], stacked['start_b'],
            stacked['in_w'], stacked['rs_w'], stacked['rs_b'],
            stacked['end_w'], stacked['end_b'])

    in_specs = [
        pl.BlockSpec((None, C, T), lambda b: (b, 0, 0)),                 # x
        pl.BlockSpec((None, 1, T), lambda b: (b, 0, 0)),                 # x_mask
        pl.BlockSpec((None, nB, L, 2 * H, 1), lambda b: (b, 0, 0, 0, 0)),  # bias+cond
    ] + [weight_spec] * 10

    out_specs = (
        pl.BlockSpec((None, C, T), lambda b: (b, 0, 0)),                 # z
        pl.BlockSpec((None, 1, 1), lambda b: (b, 0, 0)),                 # logdet
    )

    # advisory cost estimate for the XLA scheduler
    mm_flops = 2 * C * C * T + 2 * H * (C // 2) * T + 2 * C * H * T
    for l in range(L):
        mm_flops += K * 2 * (2 * H) * H * T
        mm_flops += 2 * ((2 * H) if l < L - 1 else H) * H * T
    flops = int(B * nB * mm_flops)
    transcendentals = int(B * nB * (L * 2 * H * T + (C // 2) * T))
    bytes_accessed = int(sum(int(a.size) * a.dtype.itemsize for a in args)
                         + B * C * T * 4 + B * 4)

    z, ld = pl.pallas_call(
        kernel,
        grid=(B,),
        out_shape=(jax.ShapeDtypeStruct((B, C, T), jnp.float32),
                   jax.ShapeDtypeStruct((B, 1, 1), jnp.float32)),
        in_specs=in_specs,
        out_specs=out_specs,
        scratch_shapes=[pltpu.VMEM((H, T + 2 * pad_align), jnp.bfloat16)],
        compiler_params=pltpu.CompilerParams(
            dimension_semantics=("parallel",),
            # safe on all generations (> v5e's 16 MiB default); raise further on
            # v5e/v6e (128 MiB physical) for long sequences.
            vmem_limit_bytes=32 * 1024 * 1024),
        cost_estimate=pl.CostEstimate(flops=flops,
                                      transcendentals=transcendentals,
                                      bytes_accessed=bytes_accessed),
    )(*args)
    return z, ld
    # TODO(synk): for realistic TTS lengths on v7x (64 MiB VMEM), additionally
    # tile T on the grid with a per-block recompute halo of sum_l pad_l per
    # side (and mark both B and the T-tile axis "parallel" to feed both TCs).


# ----------------------------------------------------------------------------
# parameter construction (deterministic, numpy)
# ----------------------------------------------------------------------------
def build_params(cfg, in_channels, gin_channels, seed=0):
    rng = np.random.default_rng(seed)
    C = in_channels * cfg.n_sqz
    H = cfg.hidden_channels
    L = cfg.n_layers
    K = cfg.kernel_size
    ns = cfg.n_split
    assert C % ns == 0 and ns % 2 == 0

    def rand(shape, scale):
        return (scale * rng.standard_normal(shape)).astype(np.float32)

    blocks = []
    for _ in range(cfg.n_blocks):
        p = {}
        # ActNorm params (PyTorch: zeros; small random so the test is non-degenerate)
        p['an_bias'] = rand((C, 1), 0.1)
        p['an_logs'] = rand((C, 1), 0.1)
        p['an_scale'] = np.exp(p['an_logs']).astype(np.float32)   # precomputed exp

        # InvConvNear: orthogonal (ns, ns) weight with positive determinant
        q, _ = np.linalg.qr(rng.standard_normal((ns, ns)))
        if np.linalg.det(q) < 0:
            q[:, 0] = -q[:, 0]
        qf = q.astype(np.float32)
        half_ns = ns // 2
        M = np.zeros((C, C), np.float32)     # equivalent CxC channel-mixing matrix
        for mg in range(C // ns):
            for i in range(ns):
                ci = (i // half_ns) * (C // 2) + mg * half_ns + (i % half_ns)
                for j in range(ns):
                    cj = (j // half_ns) * (C // 2) + mg * half_ns + (j % half_ns)
                    M[ci, cj] = qf[i, j]
        p['m_ic'] = M
        _, logabsdet = np.linalg.slogdet(q)
        p['logdet_w_scaled'] = float(logabsdet) * (C / ns)   # logdet(W) * (c / n_split)

        # CouplingBlock / WN params (weight_norm folded into effective weights)
        p['start_w'] = rand((H, C // 2), 1.0 / np.sqrt(C // 2))
        p['start_b'] = rand((H, 1), 0.01)
        # per-tap layout (L, K, 2H, H): in_w[l, k] is the tap-k (2H, H) matrix
        p['in_w'] = rand((L, K, 2 * H, H), 1.0 / np.sqrt(H * K))
        p['in_b'] = rand((L, 2 * H, 1), 0.01)
        rs_w = rand((L, 2 * H, H), 1.0 / np.sqrt(H))
        rs_b = rand((L, 2 * H, 1), 0.01)
        rs_w[L - 1, :H, :] = 0.0   # last layer has only the skip half (res half unused)
        rs_b[L - 1, :H, :] = 0.0
        p['rs_w'] = rs_w
        p['rs_b'] = rs_b
        # end conv (PyTorch: zero init; small random so the test is non-degenerate)
        p['end_w'] = rand((C, H), 0.01)
        p['end_b'] = rand((C, 1), 0.01)
        # speaker conditioning 1x1 conv (applied to g, which has T=1)
        p['cond_w'] = rand((2 * H * L, gin_channels), 1.0 / np.sqrt(gin_channels))
        p['cond_b'] = rand((2 * H * L,), 0.01)
        blocks.append(p)
    return blocks


def stack_block_params(blocks):
    """Stack per-block weights on a leading n_blocks axis (bf16 for bulk WN weights)."""
    def st(key):
        return np.stack([p[key] for p in blocks], axis=0)
    return {
        'an_bias': jnp.asarray(st('an_bias')),
        'an_scale': jnp.asarray(st('an_scale')),
        'm_ic': jnp.asarray(st('m_ic')),
        'start_w': jnp.asarray(st('start_w')),
        'start_b': jnp.asarray(st('start_b')),
        'in_w': jnp.asarray(st('in_w'), dtype=jnp.bfloat16),   # (nB, L, K, 2H, H)
        'rs_w': jnp.asarray(st('rs_w'), dtype=jnp.bfloat16),   # (nB, L, 2H, H)
        'rs_b': jnp.asarray(st('rs_b')),
        'end_w': jnp.asarray(st('end_w')),
        'end_b': jnp.asarray(st('end_b')),
    }


# ----------------------------------------------------------------------------
# FlowDecoder.forward (reverse=False path)
# ----------------------------------------------------------------------------
def flow_decoder_forward(x, x_mask, g, block_params, cfg):
    if cfg.n_sqz > 1:
        x, x_mask = channel_squeeze(x, x_mask, cfg.n_sqz)
    B = x.shape[0]
    H = cfg.hidden_channels
    L = cfg.n_layers

    # cond_layer applied to g.unsqueeze(-1): T=1 -> matvec; fold the WN in-conv
    # bias and the per-(block, layer) conditioning into one bias tensor.
    cond_list = []
    for p in block_params:
        gcond = g @ jnp.asarray(p['cond_w']).T + jnp.asarray(p['cond_b'])  # (B, 2HL)
        cond_list.append(jnp.asarray(p['in_b']).reshape(1, L, 2 * H, 1)
                         + gcond.reshape(B, L, 2 * H, 1))
    cond_bias = jnp.stack(cond_list, axis=1)                    # (B, nB, L, 2H, 1)

    stacked = stack_block_params(block_params)
    ld_bases = [float(np.sum(p['an_logs'])) + float(p['logdet_w_scaled'])
                for p in block_params]

    z, ld = run_flow_blocks(x, x_mask, cond_bias, stacked, ld_bases, cfg)
    logdet_tot = ld[:, 0, 0]

    if cfg.n_sqz > 1:
        z, x_mask = channel_unsqueeze(z, x_mask, cfg.n_sqz)
    return z, logdet_tot


if __name__ == "__main__":
    cfg = FlowDecoderConfig(hidden_channels=32, kernel_size=5, dilation_rate=1,
                            n_blocks=2, n_layers=2, p_dropout=0.05,
                            n_split=4, n_sqz=2, sigmoid_scale=False)
    B, in_channels, T = 2, 8, 256
    gin_channels = 16

    key = jax.random.PRNGKey(0)
    k1, k2 = jax.random.split(key)
    x = jax.random.normal(k1, (B, in_channels, T), jnp.float32)
    lengths = jnp.array([T, 192])
    x_mask = (jnp.arange(T)[None, None, :] < lengths[:, None, None]).astype(jnp.float32)
    g = jax.random.normal(k2, (B, gin_channels), jnp.float32)   # x-vector speaker emb

    params = build_params(cfg, in_channels, gin_channels, seed=0)

    z, logdet = flow_decoder_forward(x, x_mask, g, params, cfg)
    jax.block_until_ready((z, logdet))

    assert z.shape == (B, in_channels, T), z.shape
    assert logdet.shape == (B,), logdet.shape
    assert bool(jnp.all(jnp.isfinite(z))) and bool(jnp.all(jnp.isfinite(logdet)))
    print("KERNEL_OK")
</pallas_src>

<mosaic_0001>
module attributes {stable_mosaic.version = 11 : i64} {
  func.func @kernel(%arg0: i32, %arg1: memref<1x16x128xf32, #tpu.memory_space<vmem>>, %arg2: memref<1x1x128xf32, #tpu.memory_space<vmem>>, %arg3: memref<1x2x2x64x1xf32, #tpu.memory_space<vmem>>, %arg4: memref<2x16x1xf32, #tpu.memory_space<vmem>>, %arg5: memref<2x16x1xf32, #tpu.memory_space<vmem>>, %arg6: memref<2x16x16xf32, #tpu.memory_space<vmem>>, %arg7: memref<2x32x8xf32, #tpu.memory_space<vmem>>, %arg8: memref<2x32x1xf32, #tpu.memory_space<vmem>>, %arg9: memref<2x2x5x64x32xbf16, #tpu.memory_space<vmem>>, %arg10: memref<2x2x64x32xbf16, #tpu.memory_space<vmem>>, %arg11: memref<2x2x64x1xf32, #tpu.memory_space<vmem>>, %arg12: memref<2x16x32xf32, #tpu.memory_space<vmem>>, %arg13: memref<2x16x1xf32, #tpu.memory_space<vmem>>, %arg14: memref<1x16x128xf32, #tpu.memory_space<vmem>>, %arg15: memref<1x1x1xf32, #tpu.memory_space<vmem>>, %arg16: memref<32x384xbf16, #tpu.memory_space<vmem>>) attributes {dimension_semantics = [#tpu.dimension_semantics<parallel>], iteration_bounds = array<i64: 2>, scalar_prefetch = 0 : i64, scratch_operands = 1 : i64, tpu.core_type = #tpu.core_type<tc>, window_params = [{transform_indices = @transform_0, window_bounds = array<i64: 1, 16, 128>}, {transform_indices = @transform_1, window_bounds = array<i64: 1, 1, 128>}, {transform_indices = @transform_2, window_bounds = array<i64: 1, 2, 2, 64, 1>}, {pipeline_mode = #tpu.pipeline_mode<synchronous>, transform_indices = @transform_3, window_bounds = array<i64: 2, 16, 1>}, {pipeline_mode = #tpu.pipeline_mode<synchronous>, transform_indices = @transform_4, window_bounds = array<i64: 2, 16, 1>}, {pipeline_mode = #tpu.pipeline_mode<synchronous>, transform_indices = @transform_5, window_bounds = array<i64: 2, 16, 16>}, {pipeline_mode = #tpu.pipeline_mode<synchronous>, transform_indices = @transform_6, window_bounds = array<i64: 2, 32, 8>}, {pipeline_mode = #tpu.pipeline_mode<synchronous>, transform_indices = @transform_7, window_bounds = array<i64: 2, 32, 1>}, {pipeline_mode = #tpu.pipeline_mode<synchronous>, transform_indices = @transform_8, window_bounds = array<i64: 2, 2, 5, 64, 32>}, {pipeline_mode = #tpu.pipeline_mode<synchronous>, transform_indices = @transform_9, window_bounds = array<i64: 2, 2, 64, 32>}, {pipeline_mode = #tpu.pipeline_mode<synchronous>, transform_indices = @transform_10, window_bounds = array<i64: 2, 2, 64, 1>}, {pipeline_mode = #tpu.pipeline_mode<synchronous>, transform_indices = @transform_11, window_bounds = array<i64: 2, 16, 32>}, {pipeline_mode = #tpu.pipeline_mode<synchronous>, transform_indices = @transform_12, window_bounds = array<i64: 2, 16, 1>}, {transform_indices = @transform_13, window_bounds = array<i64: 1, 16, 128>}, {transform_indices = @transform_14, window_bounds = array<i64: 1, 1, 1>}]} {
    %c0 = arith.constant 0 : index
    %c0_0 = arith.constant 0 : index
    %c0_1 = arith.constant 0 : index
    %0 = vector.load %arg2[%c0, %c0_0, %c0_1] : memref<1x1x128xf32, #tpu.memory_space<vmem>>, vector<1x1x128xf32>
    %1 = vector.shape_cast %0 : vector<1x1x128xf32> to vector<1x128xf32>
    %2 = vector.shape_cast %1 : vector<1x128xf32> to vector<1x1x128xf32>
    %cst = arith.constant dense<0.000000e+00> : vector<1xf32>
    %3 = vector.multi_reduction <add>, %2, %cst [1, 2] : vector<1x1x128xf32> to vector<1xf32>
    %4 = vector.shape_cast %3 : vector<1xf32> to vector<1x1x1xf32>
    %5 = vector.extract %4[0, 0, 0] : f32 from vector<1x1x1xf32>
    %6 = vector.broadcast %5 : f32 to vector<1x1xf32>
    %cst_2 = arith.constant 0.000000e+00 : bf16
    %7 = vector.broadcast %cst_2 : bf16 to vector<32x128xbf16>
    %c0_3 = arith.constant 0 : index
    %c0_4 = arith.constant 0 : index
    %8 = vector.load %arg16[%c0_3, %c0_4] : memref<32x384xbf16, #tpu.memory_space<vmem>>, vector<32x128xbf16>
    tpu.vector_store %arg16[%c0_3, %c0_4], %7 {strides = array<i32>} : memref<32x384xbf16, #tpu.memory_space<vmem>>, vector<32x128xbf16>,
    %c0_5 = arith.constant 0 : index
    %c256 = arith.constant 256 : index
    %9 = vector.load %arg16[%c0_5, %c256] : memref<32x384xbf16, #tpu.memory_space<vmem>>, vector<32x128xbf16>
    tpu.vector_store %arg16[%c0_5, %c256], %7 {strides = array<i32>} : memref<32x384xbf16, #tpu.memory_space<vmem>>, vector<32x128xbf16>,
    %c0_6 = arith.constant 0 : index
    %c0_7 = arith.constant 0 : index
    %c0_8 = arith.constant 0 : index
    %10 = vector.load %arg1[%c0_6, %c0_7, %c0_8] : memref<1x16x128xf32, #tpu.memory_space<vmem>>, vector<1x16x128xf32>
    %11 = vector.shape_cast %10 : vector<1x16x128xf32> to vector<16x128xf32>
    %cst_9 = arith.constant 0.000000e+00 : f32
    %12 = vector.broadcast %cst_9 : f32 to vector<1x1xf32>
    %c0_10 = arith.constant 0 : index
    %c0_11 = arith.constant 0 : index
    %c0_12 = arith.constant 0 : index
    %13 = vector.load %arg4[%c0_10, %c0_11, %c0_12] : memref<2x16x1xf32, #tpu.memory_space<vmem>>, vector<1x16x1xf32>
    %14 = vector.shape_cast %13 : vector<1x16x1xf32> to vector<16x1xf32>
    %c0_13 = arith.constant 0 : index
    %c0_14 = arith.constant 0 : index
    %c0_15 = arith.constant 0 : index
    %15 = vector.load %arg5[%c0_13, %c0_14, %c0_15] : memref<2x16x1xf32, #tpu.memory_space<vmem>>, vector<1x16x1xf32>
    %16 = vector.shape_cast %15 : vector<1x16x1xf32> to vector<16x1xf32>
    %17 = vector.broadcast %16 : vector<16x1xf32> to vector<16x128xf32>
    %18 = arith.mulf %17, %11 : vector<16x128xf32>
    %19 = vector.broadcast %14 : vector<16x1xf32> to vector<16x128xf32>
    %20 = arith.addf %19, %18 : vector<16x128xf32>
    %21 = vector.broadcast %1 : vector<1x128xf32> to vector<16x128xf32>
    %22 = arith.mulf %20, %21 : vector<16x128xf32>
    %c0_16 = arith.constant 0 : index
    %c0_17 = arith.constant 0 : index
    %c0_18 = arith.constant 0 : index
    %23 = vector.load %arg6[%c0_16, %c0_17, %c0_18] : memref<2x16x16xf32, #tpu.memory_space<vmem>>, vector<1x16x16xf32>
    %24 = vector.shape_cast %23 : vector<1x16x16xf32> to vector<16x16xf32>
    %cst_19 = arith.constant dense<0.000000e+00> : vector<16x128xf32>
    %25 = tpu.matmul %24, %22, %cst_19 {dimension_numbers = #tpu.dot_dimension_numbers<[1], [0], [0], [1], [0, 0, 1, 1], [], []>} : vector<16x16xf32>, vector<16x128xf32>, vector<16x128xf32> -> vector<16x128xf32>
    %26 = vector.extract_strided_slice %25 {offsets = [0, 0], sizes = [8, 128], strides = [1, 1]} : vector<16x128xf32> to vector<8x128xf32>
    %27 = vector.extract_strided_slice %25 {offsets = [8, 0], sizes = [8, 128], strides = [1, 1]} : vector<16x128xf32> to vector<8x128xf32>
    %c0_20 = arith.constant 0 : index
    %c0_21 = arith.constant 0 : index
    %c0_22 = arith.constant 0 : index
    %28 = vector.load %arg7[%c0_20, %c0_21, %c0_22] : memref<2x32x8xf32, #tpu.memory_space<vmem>>, vector<1x32x8xf32>
    %29 = vector.shape_cast %28 : vector<1x32x8xf32> to vector<32x8xf32>
    %cst_23 = arith.constant dense<0.000000e+00> : vector<32x128xf32>
    %30 = tpu.matmul %29, %26, %cst_23 {dimension_numbers = #tpu.dot_dimension_numbers<[1], [0], [0], [1], [0, 0, 1, 1], [], []>} : vector<32x8xf32>, vector<8x128xf32>, vector<32x128xf32> -> vector<32x128xf32>
    %c0_24 = arith.constant 0 : index
    %c0_25 = arith.constant 0 : index
    %c0_26 = arith.constant 0 : index
    %31 = vector.load %arg8[%c0_24, %c0_25, %c0_26] : memref<2x32x1xf32, #tpu.memory_space<vmem>>, vector<1x32x1xf32>
    %32 = vector.shape_cast %31 : vector<1x32x1xf32> to vector<32x1xf32>
    %33 = vector.broadcast %32 : vector<32x1xf32> to vector<32x128xf32>
    %34 = arith.addf %30, %33 : vector<32x128xf32>
    %35 = vector.broadcast %1 : vector<1x128xf32> to vector<32x128xf32>
    %36 = arith.mulf %34, %35 : vector<32x128xf32>
    %37 = arith.truncf %36 : vector<32x128xf32> to vector<32x128xbf16>
    %c0_27 = arith.constant 0 : index
    %c128 = arith.constant 128 : index
    %38 = vector.load %arg16[%c0_27, %c128] : memref<32x384xbf16, #tpu.memory_space<vmem>>, vector<32x128xbf16>
    tpu.vector_store %arg16[%c0_27, %c128], %37 {strides = array<i32>} : memref<32x384xbf16, #tpu.memory_space<vmem>>, vector<32x128xbf16>,
    %c0_28 = arith.constant 0 : index
    %c126 = arith.constant 126 : index
    %39 = vector.load %arg16[%c0_28, %c126] : memref<32x384xbf16, #tpu.memory_space<vmem>>, vector<32x128xbf16>
    %c0_29 = arith.constant 0 : index
    %c127 = arith.constant 127 : index
    %40 = vector.load %arg16[%c0_29, %c127] : memref<32x384xbf16, #tpu.memory_space<vmem>>, vector<32x128xbf16>
    %c0_30 = arith.constant 0 : index
    %c128_31 = arith.constant 128 : index
    %41 = vector.load %arg16[%c0_30, %c128_31] : memref<32x384xbf16, #tpu.memory_space<vmem>>, vector<32x128xbf16>
    %c0_32 = arith.constant 0 : index
    %c129 = arith.constant 129 : index
    %42 = vector.load %arg16[%c0_32, %c129] : memref<32x384xbf16, #tpu.memory_space<vmem>>, vector<32x128xbf16>
    %c0_33 = arith.constant 0 : index
    %c130 = arith.constant 130 : index
    %43 = vector.load %arg16[%c0_33, %c130] : memref<32x384xbf16, #tpu.memory_space<vmem>>, vector<32x128xbf16>
    %c0_34 = arith.constant 0 : index
    %c0_35 = arith.constant 0 : index
    %c0_36 = arith.constant 0 : index
    %c0_37 = arith.constant 0 : index
    %c0_38 = arith.constant 0 : index
    %44 = vector.load %arg3[%c0_34, %c0_35, %c0_36, %c0_37, %c0_38] : memref<1x2x2x64x1xf32, #tpu.memory_space<vmem>>, vector<1x1x1x64x1xf32>
    %45 = vector.shape_cast %44 : vector<1x1x1x64x1xf32> to vector<64x1xf32>
    %c0_39 = arith.constant 0 : index
    %c0_40 = arith.constant 0 : index
    %c0_41 = arith.constant 0 : index
    %c0_42 = arith.constant 0 : index
    %c0_43 = arith.constant 0 : index
    %46 = vector.load %arg9[%c0_39, %c0_40, %c0_41, %c0_42, %c0_43] : memref<2x2x5x64x32xbf16, #tpu.memory_space<vmem>>, vector<1x1x1x64x32xbf16>
    %47 = vector.shape_cast %46 : vector<1x1x1x64x32xbf16> to vector<64x32xbf16>
    %cst_44 = arith.constant dense<0.000000e+00> : vector<64x128xf32>
    %48 = tpu.matmul %47, %39, %cst_44 {dimension_numbers = #tpu.dot_dimension_numbers<[1], [0], [0], [1], [0, 0, 1, 1], [], []>} : vector<64x32xbf16>, vector<32x128xbf16>, vector<64x128xf32> -> vector<64x128xf32>
    %49 = vector.broadcast %45 : vector<64x1xf32> to vector<64x128xf32>
    %50 = arith.addf %49, %48 : vector<64x128xf32>
    %c0_45 = arith.constant 0 : index
    %c0_46 = arith.constant 0 : index
    %c1 = arith.constant 1 : index
    %c0_47 = arith.constant 0 : index
    %c0_48 = arith.constant 0 : index
    %51 = vector.load %arg9[%c0_45, %c0_46, %c1, %c0_47, %c0_48] : memref<2x2x5x64x32xbf16, #tpu.memory_space<vmem>>, vector<1x1x1x64x32xbf16>
    %52 = vector.shape_cast %51 : vector<1x1x1x64x32xbf16> to vector<64x32xbf16>
    %cst_49 = arith.constant dense<0.000000e+00> : vector<64x128xf32>
    %53 = tpu.matmul %52, %40, %cst_49 {dimension_numbers = #tpu.dot_dimension_numbers<[1], [0], [0], [1], [0, 0, 1, 1], [], []>} : vector<64x32xbf16>, vector<32x128xbf16>, vector<64x128xf32> -> vector<64x128xf32>
    %54 = arith.addf %50, %53 : vector<64x128xf32>
    %c0_50 = arith.constant 0 : index
    %c0_51 = arith.constant 0 : index
    %c2 = arith.constant 2 : index
    %c0_52 = arith.constant 0 : index
    %c0_53 = arith.constant 0 : index
    %55 = vector.load %arg9[%c0_50, %c0_51, %c2, %c0_52, %c0_53] : memref<2x2x5x64x32xbf16, #tpu.memory_space<vmem>>, vector<1x1x1x64x32xbf16>
    %56 = vector.shape_cast %55 : vector<1x1x1x64x32xbf16> to vector<64x32xbf16>
    %cst_54 = arith.constant dense<0.000000e+00> : vector<64x128xf32>
    %57 = tpu.matmul %56, %41, %cst_54 {dimension_numbers = #tpu.dot_dimension_numbers<[1], [0], [0], [1], [0, 0, 1, 1], [], []>} : vector<64x32xbf16>, vector<32x128xbf16>, vector<64x128xf32> -> vector<64x128xf32>
    %58 = arith.addf %54, %57 : vector<64x128xf32>
    %c0_55 = arith.constant 0 : index
    %c0_56 = arith.constant 0 : index
    %c3 = arith.constant 3 : index
    %c0_57 = arith.constant 0 : index
    %c0_58 = arith.constant 0 : index
    %59 = vector.load %arg9[%c0_55, %c0_56, %c3, %c0_57, %c0_58] : memref<2x2x5x64x32xbf16, #tpu.memory_space<vmem>>, vector<1x1x1x64x32xbf16>
    %60 = vector.shape_cast %59 : vector<1x1x1x64x32xbf16> to vector<64x32xbf16>
    %cst_59 = arith.constant dense<0.000000e+00> : vector<64x128xf32>
    %61 = tpu.matmul %60, %42, %cst_59 {dimension_numbers = #tpu.dot_dimension_numbers<[1], [0], [0], [1], [0, 0, 1, 1], [], []>} : vector<64x32xbf16>, vector<32x128xbf16>, vector<64x128xf32> -> vector<64x128xf32>
    %62 = arith.addf %58, %61 : vector<64x128xf32>
    %c0_60 = arith.constant 0 : index
    %c0_61 = arith.constant 0 : index
    %c4 = arith.constant 4 : index
    %c0_62 = arith.constant 0 : index
    %c0_63 = arith.constant 0 : index
    %63 = vector.load %arg9[%c0_60, %c0_61, %c4, %c0_62, %c0_63] : memref<2x2x5x64x32xbf16, #tpu.memory_space<vmem>>, vector<1x1x1x64x32xbf16>
    %64 = vector.shape_cast %63 : vector<1x1x1x64x32xbf16> to vector<64x32xbf16>
    %cst_64 = arith.constant dense<0.000000e+00> : vector<64x128xf32>
    %65 = tpu.matmul %64, %43, %cst_64 {dimension_numbers = #tpu.dot_dimension_numbers<[1], [0], [0], [1], [0, 0, 1, 1], [], []>} : vector<64x32xbf16>, vector<32x128xbf16>, vector<64x128xf32> -> vector<64x128xf32>
    %66 = arith.addf %62, %65 : vector<64x128xf32>
    %67 = vector.extract_strided_slice %66 {offsets = [0, 0], sizes = [32, 128], strides = [1, 1]} : vector<64x128xf32> to vector<32x128xf32>
    %68 = math.tanh %67 : vector<32x128xf32>
    %69 = vector.extract_strided_slice %66 {offsets = [32, 0], sizes = [32, 128], strides = [1, 1]} : vector<64x128xf32> to vector<32x128xf32>
    %cst_65 = arith.constant 5.000000e-01 : f32
    %70 = vector.broadcast %cst_65 : f32 to vector<32x128xf32>
    %71 = arith.mulf %70, %69 : vector<32x128xf32>
    %72 = math.tanh %71 : vector<32x128xf32>
    %cst_66 = arith.constant 1.000000e+00 : f32
    %73 = vector.broadcast %cst_66 : f32 to vector<32x128xf32>
    %74 = arith.addf %73, %72 : vector<32x128xf32>
    %cst_67 = arith.constant 5.000000e-01 : f32
    %75 = vector.broadcast %cst_67 : f32 to vector<32x128xf32>
    %76 = arith.mulf %75, %74 : vector<32x128xf32>
    %77 = arith.mulf %68, %76 : vector<32x128xf32>
    %78 = arith.truncf %77 : vector<32x128xf32> to vector<32x128xbf16>
    %c0_68 = arith.constant 0 : index
    %c0_69 = arith.constant 0 : index
    %c0_70 = arith.constant 0 : index
    %c0_71 = arith.constant 0 : index
    %79 = vector.load %arg10[%c0_68, %c0_69, %c0_70, %c0_71] : memref<2x2x64x32xbf16, #tpu.memory_space<vmem>>, vector<1x1x64x32xbf16>
    %80 = vector.shape_cast %79 : vector<1x1x64x32xbf16> to vector<64x32xbf16>
    %cst_72 = arith.constant dense<0.000000e+00> : vector<64x128xf32>
    %81 = tpu.matmul %80, %78, %cst_72 {dimension_numbers = #tpu.dot_dimension_numbers<[1], [0], [0], [1], [0, 0, 1, 1], [], []>} : vector<64x32xbf16>, vector<32x128xbf16>, vector<64x128xf32> -> vector<64x128xf32>
    %c0_73 = arith.constant 0 : index
    %c0_74 = arith.constant 0 : index
    %c0_75 = arith.constant 0 : index
    %c0_76 = arith.constant 0 : index
    %82 = vector.load %arg11[%c0_73, %c0_74, %c0_75, %c0_76] : memref<2x2x64x1xf32, #tpu.memory_space<vmem>>, vector<1x1x64x1xf32>
    %83 = vector.shape_cast %82 : vector<1x1x64x1xf32> to vector<64x1xf32>
    %84 = vector.broadcast %83 : vector<64x1xf32> to vector<64x128xf32>
    %85 = arith.addf %81, %84 : vector<64x128xf32>
    %86 = vector.extract_strided_slice %85 {offsets = [0, 0], sizes = [32, 128], strides = [1, 1]} : vector<64x128xf32> to vector<32x128xf32>
    %87 = arith.addf %36, %86 : vector<32x128xf32>
    %88 = vector.broadcast %1 : vector<1x128xf32> to vector<32x128xf32>
    %89 = arith.mulf %87, %88 : vector<32x128xf32>
    %90 = vector.extract_strided_slice %85 {offsets = [32, 0], sizes = [32, 128], strides = [1, 1]} : vector<64x128xf32> to vector<32x128xf32>
    %91 = arith.truncf %89 : vector<32x128xf32> to vector<32x128xbf16>
    %c0_77 = arith.constant 0 : index
    %c128_78 = arith.constant 128 : index
    %92 = vector.load %arg16[%c0_77, %c128_78] : memref<32x384xbf16, #tpu.memory_space<vmem>>, vector<32x128xbf16>
    tpu.vector_store %arg16[%c0_77, %c128_78], %91 {strides = array<i32>} : memref<32x384xbf16, #tpu.memory_space<vmem>>, vector<32x128xbf16>,
    %c0_79 = arith.constant 0 : index
    %c126_80 = arith.constant 126 : index
    %93 = vector.load %arg16[%c0_79, %c126_80] : memref<32x384xbf16, #tpu.memory_space<vmem>>, vector<32x128xbf16>
    %c0_81 = arith.constant 0 : index
    %c127_82 = arith.constant 127 : index
    %94 = vector.load %arg16[%c0_81, %c127_82] : memref<32x384xbf16, #tpu.memory_space<vmem>>, vector<32x128xbf16>
    %c0_83 = arith.constant 0 : index
    %c128_84 = arith.constant 128 : index
    %95 = vector.load %arg16[%c0_83, %c128_84] : memref<32x384xbf16, #tpu.memory_space<vmem>>, vector<32x128xbf16>
    %c0_85 = arith.constant 0 : index
    %c129_86 = arith.constant 129 : index
    %96 = vector.load %arg16[%c0_85, %c129_86] : memref<32x384xbf16, #tpu.memory_space<vmem>>, vector<32x128xbf16>
    %c0_87 = arith.constant 0 : index
    %c130_88 = arith.constant 130 : index
    %97 = vector.load %arg16[%c0_87, %c130_88] : memref<32x384xbf16, #tpu.memory_space<vmem>>, vector<32x128xbf16>
    %c0_89 = arith.constant 0 : index
    %c0_90 = arith.constant 0 : index
    %c1_91 = arith.constant 1 : index
    %c0_92 = arith.constant 0 : index
    %c0_93 = arith.constant 0 : index
    %98 = vector.load %arg3[%c0_89, %c0_90, %c1_91, %c0_92, %c0_93] : memref<1x2x2x64x1xf32, #tpu.memory_space<vmem>>, vector<1x1x1x64x1xf32>
    %99 = vector.shape_cast %98 : vector<1x1x1x64x1xf32> to vector<64x1xf32>
    %c0_94 = arith.constant 0 : index
    %c1_95 = arith.constant 1 : index
    %c0_96 = arith.constant 0 : index
    %c0_97 = arith.constant 0 : index
    %c0_98 = arith.constant 0 : index
    %100 = vector.load %arg9[%c0_94, %c1_95, %c0_96, %c0_97, %c0_98] : memref<2x2x5x64x32xbf16, #tpu.memory_space<vmem>>, vector<1x1x1x64x32xbf16>
    %101 = vector.shape_cast %100 : vector<1x1x1x64x32xbf16> to vector<64x32xbf16>
    %cst_99 = arith.constant dense<0.000000e+00> : vector<64x128xf32>
    %102 = tpu.matmul %101, %93, %cst_99 {dimension_numbers = #tpu.dot_dimension_numbers<[1], [0], [0], [1], [0, 0, 1, 1], [], []>} : vector<64x32xbf16>, vector<32x128xbf16>, vector<64x128xf32> -> vector<64x128xf32>
    %103 = vector.broadcast %99 : vector<64x1xf32> to vector<64x128xf32>
    %104 = arith.addf %103, %102 : vector<64x128xf32>
    %c0_100 = arith.constant 0 : index
    %c1_101 = arith.constant 1 : index
    %c1_102 = arith.constant 1 : index
    %c0_103 = arith.constant 0 : index
    %c0_104 = arith.constant 0 : index
    %105 = vector.load %arg9[%c0_100, %c1_101, %c1_102, %c0_103, %c0_104] : memref<2x2x5x64x32xbf16, #tpu.memory_space<vmem>>, vector<1x1x1x64x32xbf16>
    %106 = vector.shape_cast %105 : vector<1x1x1x64x32xbf16> to vector<64x32xbf16>
    %cst_105 = arith.constant dense<0.000000e+00> : vector<64x128xf32>
    %107 = tpu.matmul %106, %94, %cst_105 {dimension_numbers = #tpu.dot_dimension_numbers<[1], [0], [0], [1], [0, 0, 1, 1], [], []>} : vector<64x32xbf16>, vector<32x128xbf16>, vector<64x128xf32> -> vector<64x128xf32>
    %108 = arith.addf %104, %107 : vector<64x128xf32>
    %c0_106 = arith.constant 0 : index
    %c1_107 = arith.constant 1 : index
    %c2_108 = arith.constant 2 : index
    %c0_109 = arith.constant 0 : index
    %c0_110 = arith.constant 0 : index
    %109 = vector.load %arg9[%c0_106, %c1_107, %c2_108, %c0_109, %c0_110] : memref<2x2x5x64x32xbf16, #tpu.memory_space<vmem>>, vector<1x1x1x64x32xbf16>
    %110 = vector.shape_cast %109 : vector<1x1x1x64x32xbf16> to vector<64x32xbf16>
    %cst_111 = arith.constant dense<0.000000e+00> : vector<64x128xf32>
    %111 = tpu.matmul %110, %95, %cst_111 {dimension_numbers = #tpu.dot_dimension_numbers<[1], [0], [0], [1], [0, 0, 1, 1], [], []>} : vector<64x32xbf16>, vector<32x128xbf16>, vector<64x128xf32> -> vector<64x128xf32>
    %112 = arith.addf %108, %111 : vector<64x128xf32>
    %c0_112 = arith.constant 0 : index
    %c1_113 = arith.constant 1 : index
    %c3_114 = arith.constant 3 : index
    %c0_115 = arith.constant 0 : index
    %c0_116 = arith.constant 0 : index
    %113 = vector.load %arg9[%c0_112, %c1_113, %c3_114, %c0_115, %c0_116] : memref<2x2x5x64x32xbf16, #tpu.memory_space<vmem>>, vector<1x1x1x64x32xbf16>
    %114 = vector.shape_cast %113 : vector<1x1x1x64x32xbf16> to vector<64x32xbf16>
    %cst_117 = arith.constant dense<0.000000e+00> : vector<64x128xf32>
    %115 = tpu.matmul %114, %96, %cst_117 {dimension_numbers = #tpu.dot_dimension_numbers<[1], [0], [0], [1], [0, 0, 1, 1], [], []>} : vector<64x32xbf16>, vector<32x128xbf16>, vector<64x128xf32> -> vector<64x128xf32>
    %116 = arith.addf %112, %115 : vector<64x128xf32>
    %c0_118 = arith.constant 0 : index
    %c1_119 = arith.constant 1 : index
    %c4_120 = arith.constant 4 : index
    %c0_121 = arith.constant 0 : index
    %c0_122 = arith.constant 0 : index
    %117 = vector.load %arg9[%c0_118, %c1_119, %c4_120, %c0_121, %c0_122] : memref<2x2x5x64x32xbf16, #tpu.memory_space<vmem>>, vector<1x1x1x64x32xbf16>
    %118 = vector.shape_cast %117 : vector<1x1x1x64x32xbf16> to vector<64x32xbf16>
    %cst_123 = arith.constant dense<0.000000e+00> : vector<64x128xf32>
    %119 = tpu.matmul %118, %97, %cst_123 {dimension_numbers = #tpu.dot_dimension_numbers<[1], [0], [0], [1], [0, 0, 1, 1], [], []>} : vector<64x32xbf16>, vector<32x128xbf16>, vector<64x128xf32> -> vector<64x128xf32>
    %120 = arith.addf %116, %119 : vector<64x128xf32>
    %121 = vector.extract_strided_slice %120 {offsets = [0, 0], sizes = [32, 128], strides = [1, 1]} : vector<64x128xf32> to vector<32x128xf32>
    %122 = math.tanh %121 : vector<32x128xf32>
    %123 = vector.extract_strided_slice %120 {offsets = [32, 0], sizes = [32, 128], strides = [1, 1]} : vector<64x128xf32> to vector<32x128xf32>
    %cst_124 = arith.constant 5.000000e-01 : f32
    %124 = vector.broadcast %cst_124 : f32 to vector<32x128xf32>
    %125 = arith.mulf %124, %123 : vector<32x128xf32>
    %126 = math.tanh %125 : vector<32x128xf32>
    %cst_125 = arith.constant 1.000000e+00 : f32
    %127 = vector.broadcast %cst_125 : f32 to vector<32x128xf32>
    %128 = arith.addf %127, %126 : vector<32x128xf32>
    %cst_126 = arith.constant 5.000000e-01 : f32
    %129 = vector.broadcast %cst_126 : f32 to vector<32x128xf32>
    %130 = arith.mulf %129, %128 : vector<32x128xf32>
    %131 = arith.mulf %122, %130 : vector<32x128xf32>
    %132 = arith.truncf %131 : vector<32x128xf32> to vector<32x128xbf16>
    %c0_127 = arith.constant 0 : index
    %c1_128 = arith.constant 1 : index
    %c32 = arith.constant 32 : index
    %c0_129 = arith.constant 0 : index
    %133 = vector.load %arg10[%c0_127, %c1_128, %c32, %c0_129] : memref<2x2x64x32xbf16, #tpu.memory_space<vmem>>, vector<1x1x32x32xbf16>
    %134 = vector.shape_cast %133 : vector<1x1x32x32xbf16> to vector<32x32xbf16>
    %cst_130 = arith.constant dense<0.000000e+00> : vector<32x128xf32>
    %135 = tpu.matmul %134, %132, %cst_130 {dimension_numbers = #tpu.dot_dimension_numbers<[1], [0], [0], [1], [0, 0, 1, 1], [], []>} : vector<32x32xbf16>, vector<32x128xbf16>, vector<32x128xf32> -> vector<32x128xf32>
    %c0_131 = arith.constant 0 : index
    %c1_132 = arith.constant 1 : index
    %c32_133 = arith.constant 32 : index
    %c0_134 = arith.constant 0 : index
    %136 = vector.load %arg11[%c0_131, %c1_132, %c32_133, %c0_134] : memref<2x2x64x1xf32, #tpu.memory_space<vmem>>, vector<1x1x32x1xf32>
    %137 = vector.shape_cast %136 : vector<1x1x32x1xf32> to vector<32x1xf32>
    %138 = vector.broadcast %137 : vector<32x1xf32> to vector<32x128xf32>
    %139 = arith.addf %135, %138 : vector<32x128xf32>
    %140 = arith.addf %90, %139 : vector<32x128xf32>
    %141 = vector.broadcast %1 : vector<1x128xf32> to vector<32x128xf32>
    %142 = arith.mulf %140, %141 : vector<32x128xf32>
    %c0_135 = arith.constant 0 : index
    %c0_136 = arith.constant 0 : index
    %c0_137 = arith.constant 0 : index
    %143 = vector.load %arg12[%c0_135, %c0_136, %c0_137] : memref<2x16x32xf32, #tpu.memory_space<vmem>>, vector<1x16x32xf32>
    %144 = vector.shape_cast %143 : vector<1x16x32xf32> to vector<16x32xf32>
    %cst_138 = arith.constant dense<0.000000e+00> : vector<16x128xf32>
    %145 = tpu.matmul %144, %142, %cst_138 {dimension_numbers = #tpu.dot_dimension_numbers<[1], [0], [0], [1], [0, 0, 1, 1], [], []>} : vector<16x32xf32>, vector<32x128xf32>, vector<16x128xf32> -> vector<16x128xf32>
    %c0_139 = arith.constant 0 : index
    %c0_140 = arith.constant 0 : index
    %c0_141 = arith.constant 0 : index
    %146 = vector.load %arg13[%c0_139, %c0_140, %c0_141] : memref<2x16x1xf32, #tpu.memory_space<vmem>>, vector<1x16x1xf32>
    %147 = vector.shape_cast %146 : vector<1x16x1xf32> to vector<16x1xf32>
    %148 = vector.broadcast %147 : vector<16x1xf32> to vector<16x128xf32>
    %149 = arith.addf %145, %148 : vector<16x128xf32>
    %150 = vector.extract_strided_slice %149 {offsets = [0, 0], sizes = [8, 128], strides = [1, 1]} : vector<16x128xf32> to vector<8x128xf32>
    %151 = vector.extract_strided_slice %149 {offsets = [8, 0], sizes = [8, 128], strides = [1, 1]} : vector<16x128xf32> to vector<8x128xf32>
    %152 = math.exp %151 : vector<8x128xf32>
    %153 = arith.mulf %152, %27 : vector<8x128xf32>
    %154 = arith.addf %150, %153 : vector<8x128xf32>
    %155 = vector.broadcast %1 : vector<1x128xf32> to vector<8x128xf32>
    %156 = arith.mulf %154, %155 : vector<8x128xf32>
    %cst_142 = arith.constant -0.0606237501 : f32
    %157 = vector.broadcast %cst_142 : f32 to vector<1x1xf32>
    %158 = arith.mulf %157, %6 : vector<1x1xf32>
    %159 = vector.broadcast %1 : vector<1x128xf32> to vector<8x128xf32>
    %160 = arith.mulf %151, %159 : vector<8x128xf32>
    %161 = vector.shape_cast %160 : vector<8x128xf32> to vector<1x8x128xf32>
    %cst_143 = arith.constant dense<0.000000e+00> : vector<1xf32>
    %162 = vector.multi_reduction <add>, %161, %cst_143 [1, 2] : vector<1x8x128xf32> to vector<1xf32>
    %163 = vector.shape_cast %162 : vector<1xf32> to vector<1x1x1xf32>
    %164 = vector.extract %163[0, 0, 0] : f32 from vector<1x1x1xf32>
    %165 = vector.broadcast %164 : f32 to vector<1x1xf32>
    %166 = arith.addf %158, %165 : vector<1x1xf32>
    %167 = arith.addf %12, %166 : vector<1x1xf32>
    %168 = tpu.concatenate %26, %156 in 0 : vector<8x128xf32>, vector<8x128xf32> -> vector<16x128xf32>
    %c1_144 = arith.constant 1 : index
    %c0_145 = arith.constant 0 : index
    %c0_146 = arith.constant 0 : index
    %169 = vector.load %arg4[%c1_144, %c0_145, %c0_146] : memref<2x16x1xf32, #tpu.memory_space<vmem>>, vector<1x16x1xf32>
    %170 = vector.shape_cast %169 : vector<1x16x1xf32> to vector<16x1xf32>
    %c1_147 = arith.constant 1 : index
    %c0_148 = arith.constant 0 : index
    %c0_149 = arith.constant 0 : index
    %171 = vector.load %arg5[%c1_147, %c0_148, %c0_149] : memref<2x16x1xf32, #tpu.memory_space<vmem>>, vector<1x16x1xf32>
    %172 = vector.shape_cast %171 : vector<1x16x1xf32> to vector<16x1xf32>
    %173 = vector.broadcast %172 : vector<16x1xf32> to vector<16x128xf32>
    %174 = arith.mulf %173, %168 : vector<16x128xf32>
    %175 = vector.broadcast %170 : vector<16x1xf32> to vector<16x128xf32>
    %176 = arith.addf %175, %174 : vector<16x128xf32>
    %177 = vector.broadcast %1 : vector<1x128xf32> to vector<16x128xf32>
    %178 = arith.mulf %176, %177 : vector<16x128xf32>
    %c1_150 = arith.constant 1 : index
    %c0_151 = arith.constant 0 : index
    %c0_152 = arith.constant 0 : index
    %179 = vector.load %arg6[%c1_150, %c0_151, %c0_152] : memref<2x16x16xf32, #tpu.memory_space<vmem>>, vector<1x16x16xf32>
    %180 = vector.shape_cast %179 : vector<1x16x16xf32> to vector<16x16xf32>
    %cst_153 = arith.constant dense<0.000000e+00> : vector<16x128xf32>
    %181 = tpu.matmul %180, %178, %cst_153 {dimension_numbers = #tpu.dot_dimension_numbers<[1], [0], [0], [1], [0, 0, 1, 1], [], []>} : vector<16x16xf32>, vector<16x128xf32>, vector<16x128xf32> -> vector<16x128xf32>
    %182 = vector.extract_strided_slice %181 {offsets = [0, 0], sizes = [8, 128], strides = [1, 1]} : vector<16x128xf32> to vector<8x128xf32>
    %183 = vector.extract_strided_slice %181 {offsets = [8, 0], sizes = [8, 128], strides = [1, 1]} : vector<16x128xf32> to vector<8x128xf32>
    %c1_154 = arith.constant 1 : index
    %c0_155 = arith.constant 0 : index
    %c0_156 = arith.constant 0 : index
    %184 = vector.load %arg7[%c1_154, %c0_155, %c0_156] : memref<2x32x8xf32, #tpu.memory_space<vmem>>, vector<1x32x8xf32>
    %185 = vector.shape_cast %184 : vector<1x32x8xf32> to vector<32x8xf32>
    %cst_157 = arith.constant dense<0.000000e+00> : vector<32x128xf32>
    %186 = tpu.matmul %185, %182, %cst_157 {dimension_numbers = #tpu.dot_dimension_numbers<[1], [0], [0], [1], [0, 0, 1, 1], [], []>} : vector<32x8xf32>, vector<8x128xf32>, vector<32x128xf32> -> vector<32x128xf32>
    %c1_158 = arith.constant 1 : index
    %c0_159 = arith.constant 0 : index
    %c0_160 = arith.constant 0 : index
    %187 = vector.load %arg8[%c1_158, %c0_159, %c0_160] : memref<2x32x1xf32, #tpu.memory_space<vmem>>, vector<1x32x1xf32>
    %188 = vector.shape_cast %187 : vector<1x32x1xf32> to vector<32x1xf32>
    %189 = vector.broadcast %188 : vector<32x1xf32> to vector<32x128xf32>
    %190 = arith.addf %186, %189 : vector<32x128xf32>
    %191 = vector.broadcast %1 : vector<1x128xf32> to vector<32x128xf32>
    %192 = arith.mulf %190, %191 : vector<32x128xf32>
    %193 = arith.truncf %192 : vector<32x128xf32> to vector<32x128xbf16>
    %c0_161 = arith.constant 0 : index
    %c128_162 = arith.constant 128 : index
    %194 = vector.load %arg16[%c0_161, %c128_162] : memref<32x384xbf16, #tpu.memory_space<vmem>>, vector<32x128xbf16>
    tpu.vector_store %arg16[%c0_161, %c128_162], %193 {strides = array<i32>} : memref<32x384xbf16, #tpu.memory_space<vmem>>, vector<32x128xbf16>,
    %c0_163 = arith.constant 0 : index
    %c126_164 = arith.constant 126 : index
    %195 = vector.load %arg16[%c0_163, %c126_164] : memref<32x384xbf16, #tpu.memory_space<vmem>>, vector<32x128xbf16>
    %c0_165 = arith.constant 0 : index
    %c127_166 = arith.constant 127 : index
    %196 = vector.load %arg16[%c0_165, %c127_166] : memref<32x384xbf16, #tpu.memory_space<vmem>>, vector<32x128xbf16>
    %c0_167 = arith.constant 0 : index
    %c128_168 = arith.constant 128 : index
    %197 = vector.load %arg16[%c0_167, %c128_168] : memref<32x384xbf16, #tpu.memory_space<vmem>>, vector<32x128xbf16>
    %c0_169 = arith.constant 0 : index
    %c129_170 = arith.constant 129 : index
    %198 = vector.load %arg16[%c0_169, %c129_170] : memref<32x384xbf16, #tpu.memory_space<vmem>>, vector<32x128xbf16>
    %c0_171 = arith.constant 0 : index
    %c130_172 = arith.constant 130 : index
    %199 = vector.load %arg16[%c0_171, %c130_172] : memref<32x384xbf16, #tpu.memory_space<vmem>>, vector<32x128xbf16>
    %c0_173 = arith.constant 0 : index
    %c1_174 = arith.constant 1 : index
    %c0_175 = arith.constant 0 : index
    %c0_176 = arith.constant 0 : index
    %c0_177 = arith.constant 0 : index
    %200 = vector.load %arg3[%c0_173, %c1_174, %c0_175, %c0_176, %c0_177] : memref<1x2x2x64x1xf32, #tpu.memory_space<vmem>>, vector<1x1x1x64x1xf32>
    %201 = vector.shape_cast %200 : vector<1x1x1x64x1xf32> to vector<64x1xf32>
    %c1_178 = arith.constant 1 : index
    %c0_179 = arith.constant 0 : index
    %c0_180 = arith.constant 0 : index
    %c0_181 = arith.constant 0 : index
    %c0_182 = arith.constant 0 : index
    %202 = vector.load %arg9[%c1_178, %c0_179, %c0_180, %c0_181, %c0_182] : memref<2x2x5x64x32xbf16, #tpu.memory_space<vmem>>, vector<1x1x1x64x32xbf16>
    %203 = vector.shape_cast %202 : vector<1x1x1x64x32xbf16> to vector<64x32xbf16>
    %cst_183 = arith.constant dense<0.000000e+00> : vector<64x128xf32>
    %204 = tpu.matmul %203, %195, %cst_183 {dimension_numbers = #tpu.dot_dimension_numbers<[1], [0], [0], [1], [0, 0, 1, 1], [], []>} : vector<64x32xbf16>, vector<32x128xbf16>, vector<64x128xf32> -> vector<64x128xf32>
    %205 = vector.broadcast %201 : vector<64x1xf32> to vector<64x128xf32>
    %206 = arith.addf %205, %204 : vector<64x128xf32>
    %c1_184 = arith.constant 1 : index
    %c0_185 = arith.constant 0 : index
    %c1_186 = arith.constant 1 : index
    %c0_187 = arith.constant 0 : index
    %c0_188 = arith.constant 0 : index
    %207 = vector.load %arg9[%c1_184, %c0_185, %c1_186, %c0_187, %c0_188] : memref<2x2x5x64x32xbf16, #tpu.memory_space<vmem>>, vector<1x1x1x64x32xbf16>
    %208 = vector.shape_cast %207 : vector<1x1x1x64x32xbf16> to vector<64x32xbf16>
    %cst_189 = arith.constant dense<0.000000e+00> : vector<64x128xf32>
    %209 = tpu.matmul %208, %196, %cst_189 {dimension_numbers = #tpu.dot_dimension_numbers<[1], [0], [0], [1], [0, 0, 1, 1], [], []>} : vector<64x32xbf16>, vector<32x128xbf16>, vector<64x128xf32> -> vector<64x128xf32>
    %210 = arith.addf %206, %209 : vector<64x128xf32>
    %c1_190 = arith.constant 1 : index
    %c0_191 = arith.constant 0 : index
    %c2_192 = arith.constant 2 : index
    %c0_193 = arith.constant 0 : index
    %c0_194 = arith.constant 0 : index
    %211 = vector.load %arg9[%c1_190, %c0_191, %c2_192, %c0_193, %c0_194] : memref<2x2x5x64x32xbf16, #tpu.memory_space<vmem>>, vector<1x1x1x64x32xbf16>
    %212 = vector.shape_cast %211 : vector<1x1x1x64x32xbf16> to vector<64x32xbf16>
    %cst_195 = arith.constant dense<0.000000e+00> : vector<64x128xf32>
    %213 = tpu.matmul %212, %197, %cst_195 {dimension_numbers = #tpu.dot_dimension_numbers<[1], [0], [0], [1], [0, 0, 1, 1], [], []>} : vector<64x32xbf16>, vector<32x128xbf16>, vector<64x128xf32> -> vector<64x128xf32>
    %214 = arith.addf %210, %213 : vector<64x128xf32>
    %c1_196 = arith.constant 1 : index
    %c0_197 = arith.constant 0 : index
    %c3_198 = arith.constant 3 : index
    %c0_199 = arith.constant 0 : index
    %c0_200 = arith.constant 0 : index
    %215 = vector.load %arg9[%c1_196, %c0_197, %c3_198, %c0_199, %c0_200] : memref<2x2x5x64x32xbf16, #tpu.memory_space<vmem>>, vector<1x1x1x64x32xbf16>
    %216 = vector.shape_cast %215 : vector<1x1x1x64x32xbf16> to vector<64x32xbf16>
    %cst_201 = arith.constant dense<0.000000e+00> : vector<64x128xf32>
    %217 = tpu.matmul %216, %198, %cst_201 {dimension_numbers = #tpu.dot_dimension_numbers<[1], [0], [0], [1], [0, 0, 1, 1], [], []>} : vector<64x32xbf16>, vector<32x128xbf16>, vector<64x128xf32> -> vector<64x128xf32>
    %218 = arith.addf %214, %217 : vector<64x128xf32>
    %c1_202 = arith.constant 1 : index
    %c0_203 = arith.constant 0 : index
    %c4_204 = arith.constant 4 : index
    %c0_205 = arith.constant 0 : index
    %c0_206 = arith.constant 0 : index
    %219 = vector.load %arg9[%c1_202, %c0_203, %c4_204, %c0_205, %c0_206] : memref<2x2x5x64x32xbf16, #tpu.memory_space<vmem>>, vector<1x1x1x64x32xbf16>
    %220 = vector.shape_cast %219 : vector<1x1x1x64x32xbf16> to vector<64x32xbf16>
    %cst_207 = arith.constant dense<0.000000e+00> : vector<64x128xf32>
    %221 = tpu.matmul %220, %199, %cst_207 {dimension_numbers = #tpu.dot_dimension_numbers<[1], [0], [0], [1], [0, 0, 1, 1], [], []>} : vector<64x32xbf16>, vector<32x128xbf16>, vector<64x128xf32> -> vector<64x128xf32>
    %222 = arith.addf %218, %221 : vector<64x128xf32>
    %223 = vector.extract_strided_slice %222 {offsets = [0, 0], sizes = [32, 128], strides = [1, 1]} : vector<64x128xf32> to vector<32x128xf32>
    %224 = math.tanh %223 : vector<32x128xf32>
    %225 = vector.extract_strided_slice %222 {offsets = [32, 0], sizes = [32, 128], strides = [1, 1]} : vector<64x128xf32> to vector<32x128xf32>
    %cst_208 = arith.constant 5.000000e-01 : f32
    %226 = vector.broadcast %cst_208 : f32 to vector<32x128xf32>
    %227 = arith.mulf %226, %225 : vector<32x128xf32>
    %228 = math.tanh %227 : vector<32x128xf32>
    %cst_209 = arith.constant 1.000000e+00 : f32
    %229 = vector.broadcast %cst_209 : f32 to vector<32x128xf32>
    %230 = arith.addf %229, %228 : vector<32x128xf32>
    %cst_210 = arith.constant 5.000000e-01 : f32
    %231 = vector.broadcast %cst_210 : f32 to vector<32x128xf32>
    %232 = arith.mulf %231, %230 : vector<32x128xf32>
    %233 = arith.mulf %224, %232 : vector<32x128xf32>
    %234 = arith.truncf %233 : vector<32x128xf32> to vector<32x128xbf16>
    %c1_211 = arith.constant 1 : index
    %c0_212 = arith.constant 0 : index
    %c0_213 = arith.constant 0 : index
    %c0_214 = arith.constant 0 : index
    %235 = vector.load %arg10[%c1_211, %c0_212, %c0_213, %c0_214] : memref<2x2x64x32xbf16, #tpu.memory_space<vmem>>, vector<1x1x64x32xbf16>
    %236 = vector.shape_cast %235 : vector<1x1x64x32xbf16> to vector<64x32xbf16>
    %cst_215 = arith.constant dense<0.000000e+00> : vector<64x128xf32>
    %237 = tpu.matmul %236, %234, %cst_215 {dimension_numbers = #tpu.dot_dimension_numbers<[1], [0], [0], [1], [0, 0, 1, 1], [], []>} : vector<64x32xbf16>, vector<32x128xbf16>, vector<64x128xf32> -> vector<64x128xf32>
    %c1_216 = arith.constant 1 : index
    %c0_217 = arith.constant 0 : index
    %c0_218 = arith.constant 0 : index
    %c0_219 = arith.constant 0 : index
    %238 = vector.load %arg11[%c1_216, %c0_217, %c0_218, %c0_219] : memref<2x2x64x1xf32, #tpu.memory_space<vmem>>, vector<1x1x64x1xf32>
    %239 = vector.shape_cast %238 : vector<1x1x64x1xf32> to vector<64x1xf32>
    %240 = vector.broadcast %239 : vector<64x1xf32> to vector<64x128xf32>
    %241 = arith.addf %237, %240 : vector<64x128xf32>
    %242 = vector.extract_strided_slice %241 {offsets = [0, 0], sizes = [32, 128], strides = [1, 1]} : vector<64x128xf32> to vector<32x128xf32>
    %243 = arith.addf %192, %242 : vector<32x128xf32>
    %244 = vector.broadcast %1 : vector<1x128xf32> to vector<32x128xf32>
    %245 = arith.mulf %243, %244 : vector<32x128xf32>
    %246 = vector.extract_strided_slice %241 {offsets = [32, 0], sizes = [32, 128], strides = [1, 1]} : vector<64x128xf32> to vector<32x128xf32>
    %247 = arith.truncf %245 : vector<32x128xf32> to vector<32x128xbf16>
    %c0_220 = arith.constant 0 : index
    %c128_221 = arith.constant 128 : index
    %248 = vector.load %arg16[%c0_220, %c128_221] : memref<32x384xbf16, #tpu.memory_space<vmem>>, vector<32x128xbf16>
    tpu.vector_store %arg16[%c0_220, %c128_221], %247 {strides = array<i32>} : memref<32x384xbf16, #tpu.memory_space<vmem>>, vector<32x128xbf16>,
    %c0_222 = arith.constant 0 : index
    %c126_223 = arith.constant 126 : index
    %249 = vector.load %arg16[%c0_222, %c126_223] : memref<32x384xbf16, #tpu.memory_space<vmem>>, vector<32x128xbf16>
    %c0_224 = arith.constant 0 : index
    %c127_225 = arith.constant 127 : index
    %250 = vector.load %arg16[%c0_224, %c127_225] : memref<32x384xbf16, #tpu.memory_space<vmem>>, vector<32x128xbf16>
    %c0_226 = arith.constant 0 : index
    %c128_227 = arith.constant 128 : index
    %251 = vector.load %arg16[%c0_226, %c128_227] : memref<32x384xbf16, #tpu.memory_space<vmem>>, vector<32x128xbf16>
    %c0_228 = arith.constant 0 : index
    %c129_229 = arith.constant 129 : index
    %252 = vector.load %arg16[%c0_228, %c129_229] : memref<32x384xbf16, #tpu.memory_space<vmem>>, vector<32x128xbf16>
    %c0_230 = arith.constant 0 : index
    %c130_231 = arith.constant 130 : index
    %253 = vector.load %arg16[%c0_230, %c130_231] : memref<32x384xbf16, #tpu.memory_space<vmem>>, vector<32x128xbf16>
    %c0_232 = arith.constant 0 : index
    %c1_233 = arith.constant 1 : index
    %c1_234 = arith.constant 1 : index
    %c0_235 = arith.constant 0 : index
    %c0_236 = arith.constant 0 : index
    %254 = vector.load %arg3[%c0_232, %c1_233, %c1_234, %c0_235, %c0_236] : memref<1x2x2x64x1xf32, #tpu.memory_space<vmem>>, vector<1x1x1x64x1xf32>
    %255 = vector.shape_cast %254 : vector<1x1x1x64x1xf32> to vector<64x1xf32>
    %c1_237 = arith.constant 1 : index
    %c1_238 = arith.constant 1 : index
    %c0_239 = arith.constant 0 : index
    %c0_240 = arith.constant 0 : index
    %c0_241 = arith.constant 0 : index
    %256 = vector.load %arg9[%c1_237, %c1_238, %c0_239, %c0_240, %c0_241] : memref<2x2x5x64x32xbf16, #tpu.memory_space<vmem>>, vector<1x1x1x64x32xbf16>
    %257 = vector.shape_cast %256 : vector<1x1x1x64x32xbf16> to vector<64x32xbf16>
    %cst_242 = arith.constant dense<0.000000e+00> : vector<64x128xf32>
    %258 = tpu.matmul %257, %249, %cst_242 {dimension_numbers = #tpu.dot_dimension_numbers<[1], [0], [0], [1], [0, 0, 1, 1], [], []>} : vector<64x32xbf16>, vector<32x128xbf16>, vector<64x128xf32> -> vector<64x128xf32>
    %259 = vector.broadcast %255 : vector<64x1xf32> to vector<64x128xf32>
    %260 = arith.addf %259, %258 : vector<64x128xf32>
    %c1_243 = arith.constant 1 : index
    %c1_244 = arith.constant 1 : index
    %c1_245 = arith.constant 1 : index
    %c0_246 = arith.constant 0 : index
    %c0_247 = arith.constant 0 : index
    %261 = vector.load %arg9[%c1_243, %c1_244, %c1_245, %c0_246, %c0_247] : memref<2x2x5x64x32xbf16, #tpu.memory_space<vmem>>, vector<1x1x1x64x32xbf16>
    %262 = vector.shape_cast %261 : vector<1x1x1x64x32xbf16> to vector<64x32xbf16>
    %cst_248 = arith.constant dense<0.000000e+00> : vector<64x128xf32>
    %263 = tpu.matmul %262, %250, %cst_248 {dimension_numbers = #tpu.dot_dimension_numbers<[1], [0], [0], [1], [0, 0, 1, 1], [], []>} : vector<64x32xbf16>, vector<32x128xbf16>, vector<64x128xf32> -> vector<64x128xf32>
    %264 = arith.addf %260, %263 : vector<64x128xf32>
    %c1_249 = arith.constant 1 : index
    %c1_250 = arith.constant 1 : index
    %c2_251 = arith.constant 2 : index
    %c0_252 = arith.constant 0 : index
    %c0_253 = arith.constant 0 : index
    %265 = vector.load %arg9[%c1_249, %c1_250, %c2_251, %c0_252, %c0_253] : memref<2x2x5x64x32xbf16, #tpu.memory_space<vmem>>, vector<1x1x1x64x32xbf16>
    %266 = vector.shape_cast %265 : vector<1x1x1x64x32xbf16> to vector<64x32xbf16>
    %cst_254 = arith.constant dense<0.000000e+00> : vector<64x128xf32>
    %267 = tpu.matmul %266, %251, %cst_254 {dimension_numbers = #tpu.dot_dimension_numbers<[1], [0], [0], [1], [0, 0, 1, 1], [], []>} : vector<64x32xbf16>, vector<32x128xbf16>, vector<64x128xf32> -> vector<64x128xf32>
    %268 = arith.addf %264, %267 : vector<64x128xf32>
    %c1_255 = arith.constant 1 : index
    %c1_256 = arith.constant 1 : index
    %c3_257 = arith.constant 3 : index
    %c0_258 = arith.constant 0 : index
    %c0_259 = arith.constant 0 : index
    %269 = vector.load %arg9[%c1_255, %c1_256, %c3_257, %c0_258, %c0_259] : memref<2x2x5x64x32xbf16, #tpu.memory_space<vmem>>, vector<1x1x1x64x32xbf16>
    %270 = vector.shape_cast %269 : vector<1x1x1x64x32xbf16> to vector<64x32xbf16>
    %cst_260 = arith.constant dense<0.000000e+00> : vector<64x128xf32>
    %271 = tpu.matmul %270, %252, %cst_260 {dimension_numbers = #tpu.dot_dimension_numbers<[1], [0], [0], [1], [0, 0, 1, 1], [], []>} : vector<64x32xbf16>, vector<32x128xbf16>, vector<64x128xf32> -> vector<64x128xf32>
    %272 = arith.addf %268, %271 : vector<64x128xf32>
    %c1_261 = arith.constant 1 : index
    %c1_262 = arith.constant 1 : index
    %c4_263 = arith.constant 4 : index
    %c0_264 = arith.constant 0 : index
    %c0_265 = arith.constant 0 : index
    %273 = vector.load %arg9[%c1_261, %c1_262, %c4_263, %c0_264, %c0_265] : memref<2x2x5x64x32xbf16, #tpu.memory_space<vmem>>, vector<1x1x1x64x32xbf16>
    %274 = vector.shape_cast %273 : vector<1x1x1x64x32xbf16> to vector<64x32xbf16>
    %cst_266 = arith.constant dense<0.000000e+00> : vector<64x128xf32>
    %275 = tpu.matmul %274, %253, %cst_266 {dimension_numbers = #tpu.dot_dimension_numbers<[1], [0], [0], [1], [0, 0, 1, 1], [], []>} : vector<64x32xbf16>, vector<32x128xbf16>, vector<64x128xf32> -> vector<64x128xf32>
    %276 = arith.addf %272, %275 : vector<64x128xf32>
    %277 = vector.extract_strided_slice %276 {offsets = [0, 0], sizes = [32, 128], strides = [1, 1]} : vector<64x128xf32> to vector<32x128xf32>
    %278 = math.tanh %277 : vector<32x128xf32>
    %279 = vector.extract_strided_slice %276 {offsets = [32, 0], sizes = [32, 128], strides = [1, 1]} : vector<64x128xf32> to vector<32x128xf32>
    %cst_267 = arith.constant 5.000000e-01 : f32
    %280 = vector.broadcast %cst_267 : f32 to vector<32x128xf32>
    %281 = arith.mulf %280, %279 : vector<32x128xf32>
    %282 = math.tanh %281 : vector<32x128xf32>
    %cst_268 = arith.constant 1.000000e+00 : f32
    %283 = vector.broadcast %cst_268 : f32 to vector<32x128xf32>
    %284 = arith.addf %283, %282 : vector<32x128xf32>
    %cst_269 = arith.constant 5.000000e-01 : f32
    %285 = vector.broadcast %cst_269 : f32 to vector<32x128xf32>
    %286 = arith.mulf %285, %284 : vector<32x128xf32>
    %287 = arith.mulf %278, %286 : vector<32x128xf32>
    %288 = arith.truncf %287 : vector<32x128xf32> to vector<32x128xbf16>
    %c1_270 = arith.constant 1 : index
    %c1_271 = arith.constant 1 : index
    %c32_272 = arith.constant 32 : index
    %c0_273 = arith.constant 0 : index
    %289 = vector.load %arg10[%c1_270, %c1_271, %c32_272, %c0_273] : memref<2x2x64x32xbf16, #tpu.memory_space<vmem>>, vector<1x1x32x32xbf16>
    %290 = vector.shape_cast %289 : vector<1x1x32x32xbf16> to vector<32x32xbf16>
    %cst_274 = arith.constant dense<0.000000e+00> : vector<32x128xf32>
    %291 = tpu.matmul %290, %288, %cst_274 {dimension_numbers = #tpu.dot_dimension_numbers<[1], [0], [0], [1], [0, 0, 1, 1], [], []>} : vector<32x32xbf16>, vector<32x128xbf16>, vector<32x128xf32> -> vector<32x128xf32>
    %c1_275 = arith.constant 1 : index
    %c1_276 = arith.constant 1 : index
    %c32_277 = arith.constant 32 : index
    %c0_278 = arith.constant 0 : index
    %292 = vector.load %arg11[%c1_275, %c1_276, %c32_277, %c0_278] : memref<2x2x64x1xf32, #tpu.memory_space<vmem>>, vector<1x1x32x1xf32>
    %293 = vector.shape_cast %292 : vector<1x1x32x1xf32> to vector<32x1xf32>
    %294 = vector.broadcast %293 : vector<32x1xf32> to vector<32x128xf32>
    %295 = arith.addf %291, %294 : vector<32x128xf32>
    %296 = arith.addf %246, %295 : vector<32x128xf32>
    %297 = vector.broadcast %1 : vector<1x128xf32> to vector<32x128xf32>
    %298 = arith.mulf %296, %297 : vector<32x128xf32>
    %c1_279 = arith.constant 1 : index
    %c0_280 = arith.constant 0 : index
    %c0_281 = arith.constant 0 : index
    %299 = vector.load %arg12[%c1_279, %c0_280, %c0_281] : memref<2x16x32xf32, #tpu.memory_space<vmem>>, vector<1x16x32xf32>
    %300 = vector.shape_cast %299 : vector<1x16x32xf32> to vector<16x32xf32>
    %cst_282 = arith.constant dense<0.000000e+00> : vector<16x128xf32>
    %301 = tpu.matmul %300, %298, %cst_282 {dimension_numbers = #tpu.dot_dimension_numbers<[1], [0], [0], [1], [0, 0, 1, 1], [], []>} : vector<16x32xf32>, vector<32x128xf32>, vector<16x128xf32> -> vector<16x128xf32>
    %c1_283 = arith.constant 1 : index
    %c0_284 = arith.constant 0 : index
    %c0_285 = arith.constant 0 : index
    %302 = vector.load %arg13[%c1_283, %c0_284, %c0_285] : memref<2x16x1xf32, #tpu.memory_space<vmem>>, vector<1x16x1xf32>
    %303 = vector.shape_cast %302 : vector<1x16x1xf32> to vector<16x1xf32>
    %304 = vector.broadcast %303 : vector<16x1xf32> to vector<16x128xf32>
    %305 = arith.addf %301, %304 : vector<16x128xf32>
    %306 = vector.extract_strided_slice %305 {offsets = [0, 0], sizes = [8, 128], strides = [1, 1]} : vector<16x128xf32> to vector<8x128xf32>
    %307 = vector.extract_strided_slice %305 {offsets = [8, 0], sizes = [8, 128], strides = [1, 1]} : vector<16x128xf32> to vector<8x128xf32>
    %308 = math.exp %307 : vector<8x128xf32>
    %309 = arith.mulf %308, %183 : vector<8x128xf32>
    %310 = arith.addf %306, %309 : vector<8x128xf32>
    %311 = vector.broadcast %1 : vector<1x128xf32> to vector<8x128xf32>
    %312 = arith.mulf %310, %311 : vector<8x128xf32>
    %cst_286 = arith.constant -0.614838063 : f32
    %313 = vector.broadcast %cst_286 : f32 to vector<1x1xf32>
    %314 = arith.mulf %313, %6 : vector<1x1xf32>
    %315 = vector.broadcast %1 : vector<1x128xf32> to vector<8x128xf32>
    %316 = arith.mulf %307, %315 : vector<8x128xf32>
    %317 = vector.shape_cast %316 : vector<8x128xf32> to vector<1x8x128xf32>
    %cst_287 = arith.constant dense<0.000000e+00> : vector<1xf32>
    %318 = vector.multi_reduction <add>, %317, %cst_287 [1, 2] : vector<1x8x128xf32> to vector<1xf32>
    %319 = vector.shape_cast %318 : vector<1xf32> to vector<1x1x1xf32>
    %320 = vector.extract %319[0, 0, 0] : f32 from vector<1x1x1xf32>
    %321 = vector.broadcast %320 : f32 to vector<1x1xf32>
    %322 = arith.addf %314, %321 : vector<1x1xf32>
    %323 = arith.addf %167, %322 : vector<1x1xf32>
    %324 = tpu.concatenate %182, %312 in 0 : vector<8x128xf32>, vector<8x128xf32> -> vector<16x128xf32>
    %c0_288 = arith.constant 0 : index
    %c0_289 = arith.constant 0 : index
    %c0_290 = arith.constant 0 : index
    %325 = vector.load %arg14[%c0_288, %c0_289, %c0_290] : memref<1x16x128xf32, #tpu.memory_space<vmem>>, vector<1x16x128xf32>
    %326 = vector.shape_cast %325 : vector<1x16x128xf32> to vector<16x128xf32>
    %327 = vector.shape_cast %324 : vector<16x128xf32> to vector<1x16x128xf32>
    tpu.vector_store %arg14[%c0_288, %c0_289, %c0_290], %327 {strides = array<i32>} : memref<1x16x128xf32, #tpu.memory_space<vmem>>, vector<1x16x128xf32>,
    %c0_291 = arith.constant 0 : index
    %c0_292 = arith.constant 0 : index
    %c0_293 = arith.constant 0 : index
    %328 = vector.load %arg15[%c0_291, %c0_292, %c0_293] : memref<1x1x1xf32, #tpu.memory_space<vmem>>, vector<1x1x1xf32>
    %329 = vector.shape_cast %328 : vector<1x1x1xf32> to vector<1x1xf32>
    %330 = vector.shape_cast %323 : vector<1x1xf32> to vector<1x1x1xf32>
    tpu.vector_store %arg15[%c0_291, %c0_292, %c0_293], %330 {strides = array<i32>} : memref<1x1x1xf32, #tpu.memory_space<vmem>>, vector<1x1x1xf32>,
    return
  }
  func.func @transform_0(%arg0: i32) -> (i32, i32, i32) {
    %c0_i32 = arith.constant 0 : i32
    %c0_i32_0 = arith.constant 0 : i32
    %c0_i32_1 = arith.constant 0 : i32
    return %arg0, %c0_i32, %c0_i32_0 : i32, i32, i32
  }
  func.func @transform_1(%arg0: i32) -> (i32, i32, i32) {
    %c0_i32 = arith.constant 0 : i32
    %c0_i32_0 = arith.constant 0 : i32
    %c0_i32_1 = arith.constant 0 : i32
    return %arg0, %c0_i32, %c0_i32_0 : i32, i32, i32
  }
  func.func @transform_2(%arg0: i32) -> (i32, i32, i32, i32, i32) {
    %c0_i32 = arith.constant 0 : i32
    %c0_i32_0 = arith.constant 0 : i32
    %c0_i32_1 = arith.constant 0 : i32
    %c0_i32_2 = arith.constant 0 : i32
    %c0_i32_3 = arith.constant 0 : i32
    return %arg0, %c0_i32, %c0_i32_0, %c0_i32_1, %c0_i32_2 : i32, i32, i32, i32, i32
  }
  func.func @transform_3(%arg0: i32) -> (i32, i32, i32) {
    %c0_i32 = arith.constant 0 : i32
    %c0_i32_0 = arith.constant 0 : i32
    %c0_i32_1 = arith.constant 0 : i32
    %c0_i32_2 = arith.constant 0 : i32
    return %c0_i32, %c0_i32_0, %c0_i32_1 : i32, i32, i32
  }
  func.func @transform_4(%arg0: i32) -> (i32, i32, i32) {
    %c0_i32 = arith.constant 0 : i32
    %c0_i32_0 = arith.constant 0 : i32
    %c0_i32_1 = arith.constant 0 : i32
    %c0_i32_2 = arith.constant 0 : i32
    return %c0_i32, %c0_i32_0, %c0_i32_1 : i32, i32, i32
  }
  func.func @transform_5(%arg0: i32) -> (i32, i32, i32) {
    %c0_i32 = arith.constant 0 : i32
    %c0_i32_0 = arith.constant 0 : i32
    %c0_i32_1 = arith.constant 0 : i32
    %c0_i32_2 = arith.constant 0 : i32
    return %c0_i32, %c0_i32_0, %c0_i32_1 : i32, i32, i32
  }
  func.func @transform_6(%arg0: i32) -> (i32, i32, i32) {
    %c0_i32 = arith.constant 0 : i32
    %c0_i32_0 = arith.constant 0 : i32
    %c0_i32_1 = arith.constant 0 : i32
    %c0_i32_2 = arith.constant 0 : i32
    return %c0_i32, %c0_i32_0, %c0_i32_1 : i32, i32, i32
  }
  func.func @transform_7(%arg0: i32) -> (i32, i32, i32) {
    %c0_i32 = arith.constant 0 : i32
    %c0_i32_0 = arith.constant 0 : i32
    %c0_i32_1 = arith.constant 0 : i32
    %c0_i32_2 = arith.constant 0 : i32
    return %c0_i32, %c0_i32_0, %c0_i32_1 : i32, i32, i32
  }
  func.func @transform_8(%arg0: i32) -> (i32, i32, i32, i32, i32) {
    %c0_i32 = arith.constant 0 : i32
    %c0_i32_0 = arith.constant 0 : i32
    %c0_i32_1 = arith.constant 0 : i32
    %c0_i32_2 = arith.constant 0 : i32
    %c0_i32_3 = arith.constant 0 : i32
    %c0_i32_4 = arith.constant 0 : i32
    return %c0_i32, %c0_i32_0, %c0_i32_1, %c0_i32_2, %c0_i32_3 : i32, i32, i32, i32, i32
  }
  func.func @transform_9(%arg0: i32) -> (i32, i32, i32, i32) {
    %c0_i32 = arith.constant 0 : i32
    %c0_i32_0 = arith.constant 0 : i32
    %c0_i32_1 = arith.constant 0 : i32
    %c0_i32_2 = arith.constant 0 : i32
    %c0_i32_3 = arith.constant 0 : i32
    return %c0_i32, %c0_i32_0, %c0_i32_1, %c0_i32_2 : i32, i32, i32, i32
  }
  func.func @transform_10(%arg0: i32) -> (i32, i32, i32, i32) {
    %c0_i32 = arith.constant 0 : i32
    %c0_i32_0 = arith.constant 0 : i32
    %c0_i32_1 = arith.constant 0 : i32
    %c0_i32_2 = arith.constant 0 : i32
    %c0_i32_3 = arith.constant 0 : i32
    return %c0_i32, %c0_i32_0, %c0_i32_1, %c0_i32_2 : i32, i32, i32, i32
  }
  func.func @transform_11(%arg0: i32) -> (i32, i32, i32) {
    %c0_i32 = arith.constant 0 : i32
    %c0_i32_0 = arith.constant 0 : i32
    %c0_i32_1 = arith.constant 0 : i32
    %c0_i32_2 = arith.constant 0 : i32
    return %c0_i32, %c0_i32_0, %c0_i32_1 : i32, i32, i32
  }
  func.func @transform_12(%arg0: i32) -> (i32, i32, i32) {
    %c0_i32 = arith.constant 0 : i32
    %c0_i32_0 = arith.constant 0 : i32
    %c0_i32_1 = arith.constant 0 : i32
    %c0_i32_2 = arith.constant 0 : i32
    return %c0_i32, %c0_i32_0, %c0_i32_1 : i32, i32, i32
  }
  func.func @transform_13(%arg0: i32) -> (i32, i32, i32) {
    %c0_i32 = arith.constant 0 : i32
    %c0_i32_0 = arith.constant 0 : i32
    %c0_i32_1 = arith.constant 0 : i32
    return %arg0, %c0_i32, %c0_i32_0 : i32, i32, i32
  }
  func.func @transform_14(%arg0: i32) -> (i32, i32, i32) {
    %c0_i32 = arith.constant 0 : i32
    %c0_i32_0 = arith.constant 0 : i32
    %c0_i32_1 = arith.constant 0 : i32
    return %arg0, %c0_i32, %c0_i32_0 : i32, i32, i32
  }
}

</mosaic_0001>

<bundles_post_ra>
// kernel: tpu_custom_call.1
= control target key start
LH: loop header
LB: loop body
LE: loop exit
PB: predicated region body
PF: predicated region fallthrough
CT: control target
= control target key end

     0   :  { %s7335_s0 = inlined_call_operand.vmem [shape: f32[2,16,128], index: 0, kind: input, shape index: {}]   ;;  %s7336_s1 = inlined_call_operand.vmem [shape: f32[2,1,128], index: 1, kind: input, shape index: {}]   ;;  %s7337_s2 = inlined_call_operand.vmem [shape: f32[2,2,2,64,1], index: 2, kind: input, shape index: {}]   ;;  %s7338_s3 = inlined_call_operand.vmem [shape: f32[2,16,1], index: 3, kind: input, shape index: {}]   ;;  %s7339_s4 = inlined_call_operand.vmem [shape: f32[2,16,1], index: 4, kind: input, shape index: {}]   ;;  %s7340_s5 = inlined_call_operand.vmem [shape: f32[2,16,16], index: 5, kind: input, shape index: {}]   ;;  %s7341_s6 = inlined_call_operand.vmem [shape: f32[2,32,8], index: 6, kind: input, shape index: {}]   ;;  %s7342_s7 = inlined_call_operand.vmem [shape: f32[2,32,1], index: 7, kind: input, shape index: {}]   ;;  %s7343_s8 = inlined_call_operand.vmem [shape: bf16[2,2,5,64,32], index: 8, kind: input, shape index: {}]   ;;  %s7344_s9 = inlined_call_operand.vmem [shape: bf16[2,2,64,32], index: 9, kind: input, shape index: {}]   ;;  %s7345_s10 = inlined_call_operand.vmem [shape: f32[2,2,64,1], index: 10, kind: input, shape index: {}]   ;;  %s7346_s11 = inlined_call_operand.vmem [shape: f32[2,16,32], index: 11, kind: input, shape index: {}]   ;;  %s7347_s12 = inlined_call_operand.vmem [shape: f32[2,16,1], index: 12, kind: input, shape index: {}]   ;;  %s7348_s13 = inlined_call_operand.hbm [shape: f32[2,16,128], index: 13, kind: output, shape index: {0}]   ;;  %s7349_s14 = inlined_call_operand.vmem [shape: f32[2,1,1], index: 14, kind: output, shape index: {1}]  }
   0x1   :  { %7364 = sst [smem:[#allocation12_spill]] %s7335_s0 }
   0x2   :  { %7365 = sst [smem:[#allocation13_spill]] %s7336_s1 }
   0x3   :  { %7366 = sst [smem:[#allocation14_spill]] %s7337_s2 }
   0x4   :  { %7367 = sst [smem:[#allocation15_spill]] %s7349_s14 }
   0x5   :  { %20 = vsyncpa [#allocation4], 0 }
   0x6   :  { %22 = vsyncpa [#allocation4 + $0x1], 0  ;;  %s6283_s29 = smov 0   ;;  %s6285_s30 = smov 0  }
   0x7   :  { %s6287_s15 = smov 0   ;;  %s6289_s16 = smov 0  }
   0x8 LB: > { %7368 = sst [smem:[#allocation6_spill]] %s6186_s29  ;;  %s6304_s17 = sadd.s32 4294967295, %s6198_s16   ;;  %s6198_s16 = sphi %s6289_s16, %s7387_s16   ;;  %s6194_s15 = sphi %s6287_s15, %s7389_s15   ;;  %s6190_s30 = sphi %s6285_s30, %s7391_s30   ;;  %s6186_s29 = sphi %s6283_s29, %s7390_s29  }
   0x9   : > { %7369 = sst [smem:[#allocation7_spill]] %s6194_s15  ;;  %s4767_s18 = sadd.s32 4294967294, %s6198_s16  }
   0xa   : > { %7370 = sst [smem:[#allocation8_spill]] %s6198_s16  ;;  %s6308_s19 = sadd.s32 1, %s6198_s16  }
   0xb   : > { %7371 = sst [smem:[#allocation9_spill]] %s6308_s19  ;;  %s323_s20 = sadd.s32 1, %s6194_s15 }
   0xc   : > { %s320_s21 = ssub.s32 %s6198_s16, %s6308_s19  ;;  %p333_p0 = scmp.ne.s32.totalorder %s6194_s15, %s6190_s30 }
   0xd   : > { %p321_p1 = scmp.eq.s32.totalorder %s320_s21, 0  ;;  %p334_p2 = scmp.eq.s32.totalorder %s6304_s17, 1 }
   0xe   : > { %p339_p3 = scmp.ne.s32.totalorder %s6190_s30, %s6186_s29  ;;  %p340_p4 = scmp.eq.s32.totalorder %s4767_s18, 1 }
   0xf   : > { %s6319_s22 = scalar_select %p321_p1, %s6194_s15, %s323_s20  }
  0x10   : > { %p6321_p5 = por %p334_p2, %p333_p0  ;;  %p6325_p6 = por %p340_p4, %p339_p3 }
  0x11   : > { %7372 = sst [smem:[#allocation10_spill]] %s6319_s22  ;;  %p4770_p7 = scmp.ge.s32.totalorder %s6198_s16, 1 }
  0x12   : > { %s7374_s24 = scalar_select %p6325_p6, 1, 0 }
  0x13   : > { %p436_p8 = scmp.lt.s32.totalorder %s6198_s16, 3 }
  0x14   : > { %7375 = sst [smem:[#allocation11_spill]] %s7374_s24 }
  0x15   : > { %p437_p9 = pnand %p4770_p7, %p436_p8 }
  0x16   : > { %v531_v0 = vld [vmem:[%s7339_s4] sm:$0xff] (!%p437_p9)  ;;  %v6200_v2 = vmov (!%p437_p9), 0   ;;  %v532_v3 = vld [vmem:[%s7339_s4 + $0x8] sm:$0xff] (!%p437_p9)  ;;  %v655_v7 = vld [vmem:[%s7342_s7 + $0x10] sm:$0xff] (!%p437_p9)  ;;  %vm567_vm0 = vcmask (!%p437_p9), 130048   ;;  %p493_p10 = scmp.lt.s32.totalorder (!%p437_p9), %s6304_s17, 1 }
  0x17   : > { %440 = sbr.rel (%p437_p9) target bundleno = 4379 (0x111b), region = 72  ;;  %v529_v1 = vld [vmem:[%s7338_s3] sm:$0xff] (!%p437_p9)  ;;  %5973 = vset.pattern.permute.xlu1 (!%p437_p9), %v6200_v2  ;;  %5972 = vset.pattern.permute.xlu0 (!%p437_p9), %v6200_v2  ;;  %v530_v4 = vld [vmem:[%s7338_s3 + $0x8] sm:$0xff] (!%p437_p9)  ;;  %v656_v8 = vld [vmem:[%s7342_s7 + $0x18] sm:$0xff] (!%p437_p9)  ;;  %s7376_s0 = sld [smem:[#allocation12_spill]] (!%p437_p9)  ;;  %vm677_vm1 = vcmask (!%p437_p9), 64512  }
  0x18   : > { %535 = vperm.xlu0 (!%p437_p9), %5972, %v531_v0   ;;  %547 = vperm.xlu1 (!%p437_p9), %5973, %v529_v1   ;;  %v653_v5 = vld [vmem:[%s7342_s7] sm:$0xff] (!%p437_p9)  ;;  %v654_v6 = vld [vmem:[%s7342_s7 + $0x8] sm:$0xff] (!%p437_p9)  ;;  %s7377_s1 = sld [smem:[#allocation13_spill]] (!%p437_p9)  ;;  %s7359_s26 = smov (!%p437_p9), 2   ;;  %v651_v29 = vld [vmem:[%s7341_s6 + $0x10] sm:$0xff] (!%p437_p9)  ;;  %vm844_vm2 = vcmask (!%p437_p9), 261120  }
  0x19   : > { %v565_v9 = vld [vmem:[%s7340_s5] sm:$0xff] (!%p437_p9)  ;;  %v566_v24 = vld [vmem:[%s7340_s5 + $0x8] sm:$0xff] (!%p437_p9)  ;;  %v652_v30 = vld [vmem:[%s7341_s6 + $0x18] sm:$0xff] (!%p437_p9)  ;;  %s7353_s22 = smov (!%p437_p9), 127   ;;  %s7378_s2 = sld [smem:[#allocation14_spill]] (!%p437_p9)  ;;  %vm839_vm3 = vcmask (!%p437_p9), 15360  }
  0x1a   : > { %5384 = vmatprep.mubr.msk.f32.mxu0 (!%p437_p9), %vm567_vm0, %v565_v9  ;;  %v649_v25 = vld [vmem:[%s7341_s6] sm:$0xff] (!%p437_p9)  ;;  %v650_v28 = vld [vmem:[%s7341_s6 + $0x8] sm:$0xff] (!%p437_p9)  ;;  %v1505_v56 = vld [vmem:[%s7345_s10 + $0x10] sm:$0xff] (!%p437_p9)  ;;  %vm1007_vm4 = vcmask (!%p437_p9), 7168   ;;  %vm1252_vm5 = vcmask (!%p437_p9), 1039360   ;;  %vm1379_vm6 = vcmask (!%p437_p9), 1031168  }
  0x1b   : > { %5389 = vmatprep.mubr.msk.f32.mxu1 (!%p437_p9), %vm677_vm1, %v649_v25  ;;  %v5974_v36 = vld [vmem:[%s7343_s8] sm:$0xff] (!%p437_p9)   ;;  %v1504_v60 = vld [vmem:[%s7345_s10 + $0x8] sm:$0xff] (!%p437_p9)  ;;  %v1506_v61 = vld [vmem:[%s7345_s10 + $0x18] sm:$0xff] (!%p437_p9)  ;;  %s7382_s28 = smov (!%p437_p9), 1   ;;  %s485_s29 = sand.u32 (!%p437_p9), 1, %s6190_s30   ;;  %vm511_vm7 = vcmask (!%p437_p9), 1040384  }
  0x1c   : > { %540 = vperm.xlu0 (!%p437_p9), %5972, %v532_v3   ;;  %552 = vperm.xlu1 (!%p437_p9), %5973, %v530_v4   ;;  %v1503_v54 = vld [vmem:[%s7345_s10] sm:$0xff] (!%p437_p9)  ;;  %v5984_v25 = vld [vmem:[%s7343_s8 + $0x50] sm:$0xff] (!%p437_p9)  }
  0x1e   : > { %s6363_s25 = scalar_select %p493_p10, %s6304_s17, 1 }
  0x20   : > { %659 = vperm.xlu0 %5972, %v653_v5   ;;  %664 = vperm.xlu1 %5973, %v654_v6   ;;  %s5207_s15 = sshll.u32 %s6363_s25, 4  ;;  %s6373_s20 = scalar_lea.vmem %s7377_s1, %s6363_s25  ;;  %v5975_v6 = vld [vmem:[%s7343_s8 + $0x8] sm:$0xff]  }
  0x21   : > { %s497_s27 = scalar_lea.vmem %s7376_s0, %s5207_s15  ;;  %v6376_v14 = vld [vmem:[%s6373_s20] ss:$0 sm:$0xff]  ;;  %s5208_s21 = sshll.u32 %s6363_s25, 8 }
  0x22   : > { %v527_v10 = vld [vmem:[%s497_s27] sm:$0xff]  ;;  %v528_v15 = vld [vmem:[%s497_s27 + $0x8] sm:$0xff]  ;;  %s7355_s27 = smov 1   ;;  %s7357_s15 = smov 126  }
  0x23   : > { %s6454_s18 = scalar_lea.vmem %s7378_s2, %s5208_s21 }
  0x24   : > { %669 = vperm.xlu0 %5972, %v655_v7   ;;  %674 = vperm.xlu1 %5973, %v656_v8   ;;  %v795_v50 = vld [vmem:[%s6454_s18 + $0x20] sm:$0xff]  ;;  %v797_v51 = vld [vmem:[%s6454_s18 + $0x30] sm:$0xff]  ;;  %v796_v55 = vld [vmem:[%s6454_s18 + $0x28] sm:$0xff] }
  0x25   : > { %v791_v52 = vld [vmem:[%s6454_s18] sm:$0xff]  ;;  %v793_v53 = vld [vmem:[%s6454_s18 + $0x10] sm:$0xff]  ;;  %v798_v57 = vld [vmem:[%s6454_s18 + $0x38] sm:$0xff] }
  0x26   : > { %v792_v58 = vld [vmem:[%s6454_s18 + $0x8] sm:$0xff]  ;;  %v794_v59 = vld [vmem:[%s6454_s18 + $0x18] sm:$0xff]  ;;  %v5976_v7 = vld [vmem:[%s7343_s8 + $0x10] sm:$0xff]  }
  0x28   : > { %831 = vrot.lane.b32.xlu0 %v6200_v2, %s7359_s26 }
  0x2c   : > { %835 = vrot.lane.b32.xlu0 %v6200_v2, %s7359_s26 }
  0x30   : > { %999 = vrot.lane.b32.xlu0 %v6200_v2, %s7355_s27 }
  0x34   : > { %1003 = vrot.lane.b32.xlu0 %v6200_v2, %s7355_s27 }
  0x97   : > { %v536_v11 = vpop.permute.xlu0 %535  ;;  %v548_v12 = vpop.permute.xlu1 %547 }
  0x98   : > { %v543_v13 = vmul.f32 %v536_v11, %v527_v10 }
  0x9a   : > { %v555_v17 = vadd.f32 %v548_v12, %v543_v13  ;;  %v5977_v13 = vld [vmem:[%s7343_s8 + $0x18] sm:$0xff]  }
  0x9b   : > { %v541_v16 = vpop.permute.xlu0 %540  ;;  %v553_v19 = vpop.permute.xlu1 %552 }
  0x9c   : > { %v544_v18 = vmul.f32 %v541_v16, %v528_v15  ;;  %v563_v21 = vmul.f32 %v6376_v14, %v555_v17  ;;  %v5978_v15 = vld [vmem:[%s7343_s8 + $0x20] sm:$0xff]   ;;  %v5979_v16 = vld [vmem:[%s7343_s8 + $0x28] sm:$0xff]   ;;  %v5980_v17 = vld [vmem:[%s7343_s8 + $0x30] sm:$0xff]  }
  0x9e   : > { %v556_v20 = vadd.f32 %v553_v19, %v544_v18 }
  0x9f   : > { %v665_v31 = vpop.permute.xlu1 %664  ;;  %v660_v32 = vpop.permute.xlu0 %659 }
  0xa0   : > { %v564_v22 = vmul.f32 %v6376_v14, %v556_v20  ;;  %v5981_v20 = vld [vmem:[%s7343_s8 + $0x38] sm:$0xff]  }
  0xa2   : > { %v5712_v23 = vpack.c.bf16 %v564_v22, %v563_v21  ;;  %v5982_v22 = vld [vmem:[%s7343_s8 + $0x40] sm:$0xff]  }
  0xa3   : > { %v675_v39 = vpop.permute.xlu1 %674  ;;  %v670_v42 = vpop.permute.xlu0 %669 }
  0xa4   : > { %5713 = vmatprep.subr.bf16.mxu0 %v5712_v23 }
  0xa5   : > { %5715 = vmatpush3.bf16.msra.mxu0 %v5712_v23 }
  0xa7   : > { %v832_v62 = vpop.permute.xlu0 %831 }
  0xa8   : > { %5385 = vmatmul.mubr.msk.f32.vlgmr.msra.gmra.mrb[0].mxu0 %vm567_vm0, %v566_v24  ;;  %v5983_v24 = vld [vmem:[%s7343_s8 + $0x48] sm:$0xff]  }
  0xab   : > { %v836_v63 = vpop.permute.xlu0 %835 }
  0xaf   : > { %v1000_v5 = vpop.permute.xlu0 %999 }
  0xb3   : > { %v1004_v10 = vpop.permute.xlu0 %1003 }
 0x17b   : > { %v6396_v26 = vpop.f32.mrb[0].mxu0 }
 0x17c   : > { %v6398_v27 = vpop.f32.mrb[1].mxu0 }
 0x17d   : > { %5387 = vmatprep.subr.mxu1 %v6398_v27 }
 0x17e   : > { %5388 = vmatpush3.msra.mxu1 %v6398_v27 }
 0x17f   : > { %5390 = vmatmul.mubr.msk.f32.vlgmr.msra.gmra.mrb[0].mxu1 %vm677_vm1, %v650_v28 }
 0x180   : > { %5392 = vmatprep.mubr.msk.f32.mxu1 %vm677_vm1, %v651_v29 }
 0x183   : > { %5393 = vmatmul.mubr.msk.f32.gmra.mrb[2].mxu1 %vm677_vm1, %v652_v30 }
 0x184   : > { %5399 = vmatprep.mubr.msk.bf16.mxu1 %vm844_vm2, %v5974_v36  ;;  %v5988_v36 = vld [vmem:[%s7343_s8 + $0x70] sm:$0xff]  }
 0x252   : > { %v5391_v33 = vpop.f32.mrb[0].mxu1 }
 0x253   : > { %v762_v34 = vadd.f32 %v5391_v33, %v665_v31  ;;  %v756_v35 = vpop.f32.mrb[1].mxu1 }
 0x254   : > { %v757_v37 = vadd.f32 %v756_v35, %v660_v32  ;;  %v5985_v32 = vld [vmem:[%s7343_s8 + $0x58] sm:$0xff]   ;;  %v5987_v35 = vld [vmem:[%s7343_s8 + $0x68] sm:$0xff]  }
 0x255   : > { %v6418_v38 = vmul.f32 %v6376_v14, %v762_v34  ;;  %v5986_v34 = vld [vmem:[%s7343_s8 + $0x60] sm:$0xff]  }
 0x256   : > { %v6422_v40 = vmul.f32 %v6376_v14, %v757_v37  ;;  %v5394_v41 = vpop.f32.mrb[2].mxu1 }
 0x257   : > { %v772_v43 = vadd.f32 %v5394_v41, %v675_v39  ;;  %v766_v44 = vpop.f32.mrb[3].mxu1 }
 0x258   : > { %v6426_v45 = vpack.c.bf16 %v6418_v38, %v6422_v40  ;;  %v767_v46 = vadd.f32 %v766_v44, %v670_v42  ;;  %v5989_v42 = vld [vmem:[%s7343_s8 + $0x78] sm:$0xff]   ;;  %v5991_v44 = vld [vmem:[%s7343_s8 + $0x88] sm:$0xff]  }
 0x259   : > { %v6429_v47 = vmul.f32 %v6376_v14, %v772_v43  ;;  %v5990_v43 = vld [vmem:[%s7343_s8 + $0x80] sm:$0xff]  }
 0x25a   : > { %v6432_v48 = vmul.f32 %v6376_v14, %v767_v46  ;;  %1244 = vrot.lane.b32.xlu0 %v6426_v45, %s7353_s22  ;;  %833 = vrot.lane.b32.xlu1 %v6426_v45, %s7359_s26  ;;  %v5993_v46 = vld [vmem:[%s7343_s8 + $0x98] sm:$0xff]  }
 0x25c   : > { %v6440_v49 = vpack.c.bf16 %v6429_v47, %v6432_v48 }
 0x25e   : > { %1248 = vrot.lane.b32.xlu0 %v6440_v49, %s7353_s22  ;;  %837 = vrot.lane.b32.xlu1 %v6440_v49, %s7359_s26 }
 0x262   : > { %1371 = vrot.lane.b32.xlu0 %v6426_v45, %s7357_s15  ;;  %1001 = vrot.lane.b32.xlu1 %v6426_v45, %s7355_s27 }
 0x266   : > { %1375 = vrot.lane.b32.xlu0 %v6440_v49, %s7357_s15  ;;  %1005 = vrot.lane.b32.xlu1 %v6440_v49, %s7355_s27 }
 0x26a   : > { %944 = vperm.xlu0 %5972, %v795_v50   ;;  %1246 = vrot.lane.b32.xlu1 %v6200_v2, %s7353_s22 }
 0x26e   : > { %954 = vperm.xlu0 %5972, %v797_v51   ;;  %1250 = vrot.lane.b32.xlu1 %v6200_v2, %s7353_s22  ;;  %s7381_s22 = smov 126  }
 0x272   : > { %924 = vperm.xlu0 %5972, %v791_v52   ;;  %1373 = vrot.lane.b32.xlu1 %v6200_v2, %s7357_s15 }
 0x276   : > { %934 = vperm.xlu0 %5972, %v793_v53   ;;  %1377 = vrot.lane.b32.xlu1 %v6200_v2, %s7357_s15  ;;  %s7380_s15 = smov 2  }
 0x27a   : > { %1513 = vperm.xlu0 %5972, %v1503_v54   ;;  %949 = vperm.xlu1 %5973, %v796_v55  }
 0x27e   : > { %1523 = vperm.xlu0 %5972, %v1505_v56   ;;  %959 = vperm.xlu1 %5973, %v798_v57  }
 0x282   : > { %929 = vperm.xlu1 %5973, %v792_v58   ;;  %1710 = vrot.lane.b32.xlu0 %v6200_v2, %s7359_s26 }
 0x286   : > { %939 = vperm.xlu1 %5973, %v794_v59   ;;  %1714 = vrot.lane.b32.xlu0 %v6200_v2, %s7359_s26  ;;  %s4771_s26 = sshll.u32 %s485_s29, 4 }
 0x287   : > { %s6858_s1 = scalar_lea.vmem [#allocation3], %s4771_s26  ;;  %s5209_s26 = sshll.u32 %s6304_s17, 8 }
 0x288   : > { %s4662_s0 = sshll.u32 %s6858_s1, 4  ;;  %s7280_s0 = int_to_ptr.vmem [resolvable:$true] %s4662_s0 }
 0x289   : > { %s6136_s14 = scalar_lea.vmem %s7280_s0, 256 }
 0x28a   : > { %1518 = vperm.xlu1 %5973, %v1504_v60   ;;  %1876 = vrot.lane.b32.xlu0 %v6200_v2, %s7355_s27  ;;  %p6137_p11 = scmp.ne.s32.totalorder %s7280_s0, %s6136_s14 }
 0x28c   : > { %p6138_p12 = pnand %p6137_p11, %p6321_p5 }
 0x28e   : > { %1528 = vperm.xlu1 %5973, %v1506_v61   ;;  %1880 = vrot.lane.b32.xlu0 %v6200_v2, %s7355_s27  ;;  %s7379_s27 = smov 127   ;;  %p6139_p13 = pneg %p6138_p12 }
 0x2cc   : > { %v834_v0 = vpop.permute.xlu1 %833  ;;  %v1245_v19 = vpop.permute.xlu0 %1244 }
 0x2cd   : > { %v840_v1 = vsel %vm839_vm3, %v832_v62, %v834_v0 }
 0x2ce   : > { %5395 = vmatprep.subr.bf16.mxu1 %v840_v1 }
 0x2cf   : > { %5396 = vmatpush3.bf16.msra.mxu1 %v840_v1 }
 0x2d0   : > { %v838_v3 = vpop.permute.xlu1 %837  ;;  %v1249_v28 = vpop.permute.xlu0 %1248 }
 0x2d1   : > { %v841_v4 = vsel %vm839_vm3, %v836_v63, %v838_v3 }
 0x2d2   : > { %5397 = vmatprep.subr.bf16.mxu1 %v841_v4 }
 0x2d3   : > { %5398 = vmatpush3.bf16.msra.mxu1 %v841_v4 }
 0x2d4   : > { %v1002_v8 = vpop.permute.xlu1 %1001  ;;  %v1372_v31 = vpop.permute.xlu0 %1371 }
 0x2d5   : > { %v1008_v9 = vsel %vm1007_vm4, %v1000_v5, %v1002_v8 }
 0x2d6   : > { %5400 = vmatmul.mubr.msk.bf16.vlgmr.msra.gmra.mrb[4].mxu1 %vm844_vm2, %v5975_v6  ;;  %5407 = vmatprep.subr.bf16.mxu1 %v1008_v9 }
 0x2d7   : > { %5408 = vmatpush3.bf16.msra.mxu1 %v1008_v9  ;;  %5403 = vmatprep.mubr.msk.bf16.mxu1 %vm844_vm2, %v5976_v7 }
 0x2d8   : > { %v1006_v11 = vpop.permute.xlu1 %1005  ;;  %v1376_v39 = vpop.permute.xlu0 %1375 }
 0x2d9   : > { %v1009_v12 = vsel %vm1007_vm4, %v1004_v10, %v1006_v11 }
 0x2da   : > { %5409 = vmatprep.subr.bf16.mxu1 %v1009_v12 }
 0x2db   : > { %5410 = vmatpush3.bf16.msra.mxu1 %v1009_v12 }
 0x2dc   : > { %5419 = vmatprep.subr.bf16.mxu1 %v6426_v45  ;;  %v1247_v18 = vpop.permute.xlu1 %1246 }
 0x2dd   : > { %v1253_v21 = vsel %vm1252_vm5, %v1245_v19, %v1247_v18 }
 0x2de   : > { %5404 = vmatmul.mubr.msk.bf16.gmra.mrb[8].mxu1 %vm844_vm2, %v5977_v13 }
 0x2df   : > { %5411 = vmatprep.mubr.msk.bf16.mxu1 %vm844_vm2, %v5978_v15 }
 0x2e0   : > { %v1251_v23 = vpop.permute.xlu1 %1250 }
 0x2e1   : > { %v1254_v29 = vsel %vm1252_vm5, %v1249_v28, %v1251_v23 }
 0x2e4   : > { %v1374_v30 = vpop.permute.xlu1 %1373 }
 0x2e5   : > { %v1380_v33 = vsel %vm1379_vm6, %v1372_v31, %v1374_v30 }
 0x2e6   : > { %5412 = vmatmul.mubr.msk.bf16.vlgmr.msra.gmra.mrb[4].mxu1 %vm844_vm2, %v5979_v16 }
 0x2e7   : > { %5420 = vmatpush3.bf16.msra.mxu1 %v6426_v45  ;;  %5415 = vmatprep.mubr.msk.bf16.mxu1 %vm844_vm2, %v5980_v17  ;;  %v5992_v45 = vld [vmem:[%s7343_s8 + $0x90] sm:$0xff]  }
 0x2e8   : > { %5421 = vmatprep.subr.bf16.mxu1 %v6440_v49  ;;  %v1378_v37 = vpop.permute.xlu1 %1377 }
 0x2e9   : > { %v1381_v41 = vsel %vm1379_vm6, %v1376_v39, %v1378_v37  ;;  %v945_v50 = vpop.permute.xlu0 %944 }
 0x2eb   : > { %5422 = vmatpush3.bf16.msra.mxu1 %v6440_v49  ;;  %v5994_v49 = vld [vmem:[%s7344_s9] sm:$0xff]  }
 0x2ec   : > { %5431 = vmatprep.subr.bf16.mxu1 %v1253_v21 }
 0x2ed   : > { %v955_v52 = vpop.permute.xlu0 %954 }
 0x2ee   : > { %5416 = vmatmul.mubr.msk.bf16.gmra.mrb[8].mxu1 %vm844_vm2, %v5981_v20 }
 0x2ef   : > { %5423 = vmatprep.mubr.msk.bf16.mxu1 %vm844_vm2, %v5982_v22 }
 0x2f1   : > { %v925_v58 = vpop.permute.xlu0 %924 }
 0x2f5   : > { %v935_v5 = vpop.permute.xlu0 %934 }
 0x2f6   : > { %5424 = vmatmul.mubr.msk.bf16.vlgmr.msra.gmra.mrb[4].mxu1 %vm844_vm2, %v5983_v24 }
 0x2f7   : > { %5432 = vmatpush3.bf16.msra.mxu1 %v1253_v21  ;;  %5427 = vmatprep.mubr.msk.bf16.mxu1 %vm844_vm2, %v5984_v25 }
 0x2f8   : > { %5433 = vmatprep.subr.bf16.mxu1 %v1254_v29 }
 0x2f9   : > { %v950_v51 = vpop.permute.xlu1 %949 }
 0x2fb   : > { %5434 = vmatpush3.bf16.msra.mxu1 %v1254_v29 }
 0x2fc   : > { %5443 = vmatprep.subr.bf16.mxu1 %v1380_v33 }
 0x2fd   : > { %v960_v55 = vpop.permute.xlu1 %959 }
 0x2fe   : > { %5428 = vmatmul.mubr.msk.bf16.gmra.mrb[8].mxu1 %vm844_vm2, %v5985_v32 }
 0x2ff   : > { %5435 = vmatprep.mubr.msk.bf16.mxu1 %vm844_vm2, %v5986_v34 }
 0x301   : > { %v930_v59 = vpop.permute.xlu1 %929 }
 0x305   : > { %v940_v10 = vpop.permute.xlu1 %939 }
 0x306   : > { %5436 = vmatmul.mubr.msk.bf16.vlgmr.msra.gmra.mrb[4].mxu1 %vm844_vm2, %v5987_v35 }
 0x307   : > { %5444 = vmatpush3.bf16.msra.mxu1 %v1380_v33  ;;  %5439 = vmatprep.mubr.msk.bf16.mxu1 %vm844_vm2, %v5988_v36 }
 0x308   : > { %5445 = vmatprep.subr.bf16.mxu1 %v1381_v41 }
 0x30b   : > { %5446 = vmatpush3.bf16.msra.mxu1 %v1381_v41 }
 0x30e   : > { %5440 = vmatmul.mubr.msk.bf16.gmra.mrb[8].mxu1 %vm844_vm2, %v5989_v42  ;;  %v5995_v42 = vld [vmem:[%s7344_s9 + $0x8] sm:$0xff]  }
 0x30f   : > { %5447 = vmatprep.mubr.msk.bf16.mxu1 %vm844_vm2, %v5990_v43  ;;  %v5996_v43 = vld [vmem:[%s7344_s9 + $0x10] sm:$0xff]  }
 0x316   : > { %5448 = vmatmul.mubr.msk.bf16.vlgmr.msra.gmra.mrb[4].mxu1 %vm844_vm2, %v5991_v44  ;;  %v5997_v44 = vld [vmem:[%s7344_s9 + $0x18] sm:$0xff]  }
 0x317   : > { %5451 = vmatprep.mubr.msk.bf16.mxu1 %vm844_vm2, %v5992_v45  ;;  %v1514_v45 = vpop.permute.xlu0 %1513 }
 0x31e   : > { %5452 = vmatmul.mubr.msk.bf16.gmra.mrb[8].mxu1 %vm844_vm2, %v5993_v46  ;;  %v1519_v46 = vpop.permute.xlu1 %1518 }
 0x31f   : > { %5459 = vmatprep.mubr.msk.bf16.mxu1 %vm844_vm2, %v5994_v49  ;;  %v1524_v49 = vpop.permute.xlu0 %1523 }
 0x3e9   : > { %v5449_v53 = vpop.f32.mrb[4].mxu1 }
 0x3ea   : > { %v1430_v54 = vpop.f32.mrb[5].mxu1  ;;  %v5736_v8 = vadd.f32 %v5449_v53, %v935_v5  ;;  %v1529_v53 = vpop.permute.xlu1 %1528  ;;  %v4862_v5 = vld [vmem:[%s6454_s18 + $0x40] sm:$0xff] }
 0x3eb   : > { %v5450_v56 = vpop.f32.mrb[6].mxu1  ;;  %v5737_v11 = vadd.f32 %v1430_v54, %v925_v58 }
 0x3ec   : > { %v1433_v57 = vpop.f32.mrb[7].mxu1  ;;  %v5738_v13 = vadd.f32 %v5450_v56, %v940_v10 }
 0x3ed   : > { %v5739_v15 = vadd.f32 %v1433_v57, %v930_v59 }
 0x3f1   : > { %v5453_v60 = vpop.f32.mrb[8].mxu1 }
 0x3f2   : > { %v5740_v61 = vadd.f32 %v5453_v60, %v955_v52  ;;  %v1446_v62 = vpop.f32.mrb[9].mxu1 }
 0x3f3   : > { %v5741_v63 = vadd.f32 %v1446_v62, %v945_v50  ;;  %v5454_v0 = vpop.f32.mrb[10].mxu1 }
 0x3f4   : > { %v1475_v1 = vmul.f32 0.5, %v5740_v61  ;;  %v5742_v3 = vadd.f32 %v5454_v0, %v960_v55  ;;  %v1449_v4 = vpop.f32.mrb[11].mxu1 }
 0x3f5   : > { %v1473_v6 = vmul.f32 0.5, %v5741_v63  ;;  %v5743_v7 = vadd.f32 %v1449_v4, %v950_v51  ;;  %v5998_v63 = vld [vmem:[%s7343_s8 + $0xa0] sm:$0xff]   ;;  %v4868_v4 = vld [vmem:[%s6454_s18 + $0x70] sm:$0xff] }
 0x3f6   : > { %6066 = vtanh.f32 %v1475_v1  ;;  %v1476_v9 = vmul.f32 0.5, %v5742_v3  ;;  %5471 = vmatprep.mubr.msk.bf16.mxu0 %vm844_vm2, %v5998_v63 }
 0x3f7   : > { %6068 = vtanh.f32 %v1473_v6  ;;  %v1474_v12 = vmul.f32 0.5, %v5743_v7  ;;  %v4864_v6 = vld [vmem:[%s6454_s18 + $0x50] sm:$0xff]  ;;  %v1507_v7 = vld [vmem:[%s7345_s10 + $0x20] sm:$0xff] }
 0x3f8   : > { %6070 = vtanh.f32 %v1476_v9 }
 0x3f9   : > { %6072 = vtanh.f32 %v1474_v12  ;;  %v4869_v12 = vld [vmem:[%s6454_s18 + $0x78] sm:$0xff] }
 0x3fa   : > { %6074 = vtanh.f32 %v5736_v8  ;;  %v4867_v8 = vld [vmem:[%s6454_s18 + $0x68] sm:$0xff] }
 0x3fb   : > { %6076 = vtanh.f32 %v5737_v11  ;;  %v4954_v11 = vld [vmem:[%s7345_s10 + $0x60] sm:$0xff] }
 0x3fc   : > { %6078 = vtanh.f32 %v5738_v13  ;;  %v1509_v13 = vld [vmem:[%s7345_s10 + $0x30] sm:$0xff] }
 0x3fd   : > { %6080 = vtanh.f32 %v5739_v15  ;;  %v4863_v15 = vld [vmem:[%s6454_s18 + $0x48] sm:$0xff] }
 0x400   : > { %v6067_v16 = vpop.eup %6066 }
 0x401   : > { %v6069_v17 = vpop.eup %6068  ;;  %v1483_v18 = vadd.f32 1.0, %v6067_v16  ;;  %v4956_v16 = vld [vmem:[%s7345_s10 + $0x70] sm:$0xff] }
 0x402   : > { %v6071_v19 = vpop.eup %6070  ;;  %v1481_v20 = vadd.f32 1.0, %v6069_v17  ;;  %v4865_v17 = vld [vmem:[%s6454_s18 + $0x58] sm:$0xff] }
 0x403   : > { %v6073_v21 = vpop.eup %6072  ;;  %v1487_v22 = vmul.f32 0.5, %v1483_v18  ;;  %v1484_v23 = vadd.f32 1.0, %v6071_v19  ;;  %v2475_v18 = vld [vmem:[%s7347_s12 + $0x8] sm:$0xff] }
 0x404   : > { %v6075_v24 = vpop.eup %6074  ;;  %v1485_v25 = vmul.f32 0.5, %v1481_v20  ;;  %v1482_v28 = vadd.f32 1.0, %v6073_v21  ;;  %v1508_v19 = vld [vmem:[%s7345_s10 + $0x28] sm:$0xff] }
 0x405   : > { %v6077_v29 = vpop.eup %6076  ;;  %v1488_v30 = vmul.f32 0.5, %v1484_v23  ;;  %v1491_v31 = vmul.f32 %v6075_v24, %v1487_v22  ;;  %v4966_v22 = vld [vmem:[%s7339_s4 + $0x10] sm:$0xff]  ;;  %v4955_v23 = vld [vmem:[%s7345_s10 + $0x68] sm:$0xff] }
 0x406   : > { %v6079_v32 = vpop.eup %6078  ;;  %v1486_v33 = vmul.f32 0.5, %v1482_v28  ;;  %v1489_v34 = vmul.f32 %v6077_v29, %v1485_v25  ;;  %v4964_v24 = vld [vmem:[%s7338_s3 + $0x10] sm:$0xff]  ;;  %v1510_v25 = vld [vmem:[%s7345_s10 + $0x38] sm:$0xff]  ;;  %v4976_v28 = vld [vmem:[%s7342_s7 + $0x20] sm:$0xff] }
 0x407   : > { %v6081_v35 = vpop.eup %6080  ;;  %v1492_v36 = vmul.f32 %v6079_v32, %v1488_v30  ;;  %v4957_v29 = vld [vmem:[%s7345_s10 + $0x78] sm:$0xff]  ;;  %v4978_v30 = vld [vmem:[%s7342_s7 + $0x30] sm:$0xff] }
 0x408   : > { %v1490_v37 = vmul.f32 %v6081_v35, %v1486_v33  ;;  %v4967_v32 = vld [vmem:[%s7339_s4 + $0x18] sm:$0xff] }
 0x409   : > { %v1494_v39 = vpack.c.bf16 %v1492_v36, %v1491_v31  ;;  %v2474_v31 = vld [vmem:[%s7347_s12] sm:$0xff]  ;;  %v4965_v33 = vld [vmem:[%s7338_s3 + $0x18] sm:$0xff]  ;;  %v1711_v36 = vpop.permute.xlu0 %1710 }
 0x40a   : > { %v1493_v41 = vpack.c.bf16 %v1490_v37, %v1489_v34  ;;  %v4977_v34 = vld [vmem:[%s7342_s7 + $0x28] sm:$0xff]  ;;  %v4979_v35 = vld [vmem:[%s7342_s7 + $0x38] sm:$0xff] }
 0x40c   : > { %5455 = vmatprep.subr.bf16.mxu1 %v1493_v41 }
 0x40d   : > { %5456 = vmatpush3.bf16.msra.mxu1 %v1493_v41  ;;  %v1715_v37 = vpop.permute.xlu0 %1714 }
 0x40e   : > { %5457 = vmatprep.subr.bf16.mxu1 %v1494_v39 }
 0x411   : > { %5458 = vmatpush3.bf16.msra.mxu1 %v1494_v39 }
 0x414   : > { %5460 = vmatmul.mubr.msk.bf16.vlgmr.msra.gmra.mrb[12].mxu1 %vm844_vm2, %v5995_v42 }
 0x415   : > { %5463 = vmatprep.mubr.msk.bf16.mxu1 %vm844_vm2, %v5996_v43 }
 0x41c   : > { %5464 = vmatmul.mubr.msk.bf16.gmra.mrb[16].mxu1 %vm844_vm2, %v5997_v44  ;;  %v1877_v44 = vpop.permute.xlu0 %1876 }
 0x4e7   : > { %v5461_v50 = vpop.f32.mrb[12].mxu1 }
 0x4e8   : > { %v1626_v51 = vadd.f32 %v5461_v50, %v1524_v49  ;;  %v1617_v52 = vpop.f32.mrb[13].mxu1 }
 0x4e9   : > { %v1618_v54 = vadd.f32 %v1617_v52, %v1514_v45  ;;  %v5462_v55 = vpop.f32.mrb[14].mxu1  ;;  %v5999_v45 = vld [vmem:[%s7343_s8 + $0xa8] sm:$0xff]  }
 0x4ea   : > { %v1650_v56 = vadd.f32 %v1626_v51, %v6432_v48  ;;  %v1629_v57 = vadd.f32 %v5462_v55, %v1529_v53  ;;  %v1620_v58 = vpop.f32.mrb[15].mxu1  ;;  %v1881_v51 = vpop.permute.xlu0 %1880  ;;  %v6002_v55 = vld [vmem:[%s7343_s8 + $0xc0] sm:$0xff]  }
 0x4eb   : > { %v1648_v59 = vadd.f32 %v1618_v54, %v6422_v40  ;;  %v1621_v60 = vadd.f32 %v1620_v58, %v1519_v46  ;;  %v6000_v46 = vld [vmem:[%s7343_s8 + $0xb0] sm:$0xff]   ;;  %v6001_v54 = vld [vmem:[%s7343_s8 + $0xb8] sm:$0xff]  }
 0x4ec   : > { %v1651_v61 = vadd.f32 %v1629_v57, %v6429_v47  ;;  %v1654_v0 = vmul.f32 %v6376_v14, %v1650_v56  ;;  %v4866_v47 = vld [vmem:[%s6454_s18 + $0x60] sm:$0xff]  ;;  %v6003_v56 = vld [vmem:[%s7343_s8 + $0xc8] sm:$0xff]   ;;  %v6004_v57 = vld [vmem:[%s7343_s8 + $0xd0] sm:$0xff]  }
 0x4ed   : > { %v1649_v62 = vadd.f32 %v1621_v60, %v6418_v38  ;;  %v1652_v48 = vmul.f32 %v6376_v14, %v1648_v59  ;;  %v6005_v60 = vld [vmem:[%s7343_s8 + $0xd8] sm:$0xff]  }
 0x4ee   : > { %v1655_v1 = vmul.f32 %v6376_v14, %v1651_v61 }
 0x4ef   : > { %v1653_v3 = vmul.f32 %v6376_v14, %v1649_v62  ;;  %v6648_v9 = vpop.f32.mrb[16].mxu1  ;;  %v6006_v62 = vld [vmem:[%s7343_s8 + $0xe0] sm:$0xff]  }
 0x4f0   : > { %v6612_v40 = vpack.c.bf16 %v1655_v1, %v1654_v0  ;;  %v6650_v10 = vpop.f32.mrb[17].mxu1  ;;  %v6007_v0 = vld [vmem:[%s7343_s8 + $0xe8] sm:$0xff]   ;;  %v6008_v1 = vld [vmem:[%s7343_s8 + $0xf0] sm:$0xff]  }
 0x4f1   : > { %v6614_v38 = vpack.c.bf16 %v1653_v3, %v1652_v48  ;;  %v6670_v20 = vpop.f32.mrb[18].mxu1 }
 0x4f2   : > { %v6672_v21 = vpop.f32.mrb[19].mxu1 }
 0x4f3   : > { %2120 = vrot.lane.b32.xlu0 %v6614_v38, %s7379_s27  ;;  %1712 = vrot.lane.b32.xlu1 %v6614_v38, %s7380_s15 }
 0x4f7   : > { %2124 = vrot.lane.b32.xlu0 %v6612_v40, %s7379_s27  ;;  %1716 = vrot.lane.b32.xlu1 %v6612_v40, %s7380_s15 }
 0x4fb   : > { %2246 = vrot.lane.b32.xlu0 %v6614_v38, %s7381_s22  ;;  %1878 = vrot.lane.b32.xlu1 %v6614_v38, %s7382_s28 }
 0x4ff   : > { %2250 = vrot.lane.b32.xlu0 %v6612_v40, %s7381_s22  ;;  %1882 = vrot.lane.b32.xlu1 %v6612_v40, %s7382_s28 }
 0x503   : > { %1821 = vperm.xlu0 %5972, %v4866_v47   ;;  %2122 = vrot.lane.b32.xlu1 %v6200_v2, %s7379_s27  ;;  %v6009_v47 = vld [vmem:[%s7343_s8 + $0xf8] sm:$0xff]  }
 0x507   : > { %1831 = vperm.xlu0 %5972, %v4868_v4   ;;  %2126 = vrot.lane.b32.xlu1 %v6200_v2, %s7379_s27 }
 0x50b   : > { %1801 = vperm.xlu0 %5972, %v4862_v5   ;;  %2248 = vrot.lane.b32.xlu1 %v6200_v2, %s7381_s22  ;;  %v6010_v5 = vld [vmem:[%s7343_s8 + $0x100] sm:$0xff]  }
 0x50f   : > { %1811 = vperm.xlu0 %5972, %v4864_v6   ;;  %2252 = vrot.lane.b32.xlu1 %v6200_v2, %s7381_s22  ;;  %v6011_v6 = vld [vmem:[%s7343_s8 + $0x108] sm:$0xff]  }
 0x513   : > { %1533 = vperm.xlu0 %5972, %v1507_v7   ;;  %1826 = vperm.xlu1 %5973, %v4867_v8   ;;  %v6012_v7 = vld [vmem:[%s7343_s8 + $0x110] sm:$0xff]  }
 0x517   : > { %2381 = vperm.xlu0 %5972, %v4954_v11   ;;  %1836 = vperm.xlu1 %5973, %v4869_v12  }
 0x51b   : > { %1543 = vperm.xlu0 %5972, %v1509_v13   ;;  %1806 = vperm.xlu1 %5973, %v4863_v15   ;;  %v6013_v13 = vld [vmem:[%s7343_s8 + $0x118] sm:$0xff]   ;;  %v6014_v15 = vld [vmem:[%s7343_s8 + $0x120] sm:$0xff]  }
 0x51f   : > { %2391 = vperm.xlu0 %5972, %v4956_v16   ;;  %1816 = vperm.xlu1 %5973, %v4865_v17   ;;  %v6015_v16 = vld [vmem:[%s7343_s8 + $0x128] sm:$0xff]   ;;  %v6016_v17 = vld [vmem:[%s7343_s8 + $0x130] sm:$0xff]  }
 0x523   : > { %2483 = vperm.xlu0 %5972, %v2475_v18   ;;  %1538 = vperm.xlu1 %5973, %v1508_v19   ;;  %v6017_v18 = vld [vmem:[%s7343_s8 + $0x138] sm:$0xff]   ;;  %v6018_v19 = vld [vmem:[%s7344_s9 + $0x30] sm:$0xff]  }
 0x527   : > { %2594 = vperm.xlu0 %5972, %v4966_v22   ;;  %2386 = vperm.xlu1 %5973, %v4955_v23  }
 0x52b   : > { %2606 = vperm.xlu0 %5972, %v4964_v24   ;;  %1548 = vperm.xlu1 %5973, %v1510_v25  }
 0x52f   : > { %2714 = vperm.xlu0 %5972, %v4976_v28   ;;  %2396 = vperm.xlu1 %5973, %v4957_v29  }
 0x533   : > { %2724 = vperm.xlu0 %5972, %v4978_v30   ;;  %2478 = vperm.xlu1 %5973, %v2474_v31  }
 0x537   : > { %2599 = vperm.xlu1 %5973, %v4967_v32   ;;  %2887 = vrot.lane.b32.xlu0 %v6200_v2, %s7380_s15 }
 0x53b   : > { %2611 = vperm.xlu1 %5973, %v4965_v33   ;;  %2891 = vrot.lane.b32.xlu0 %v6200_v2, %s7380_s15 }
 0x53f   : > { %2719 = vperm.xlu1 %5973, %v4977_v34   ;;  %3053 = vrot.lane.b32.xlu0 %v6200_v2, %s7382_s28 }
 0x543   : > { %2729 = vperm.xlu1 %5973, %v4979_v35   ;;  %3057 = vrot.lane.b32.xlu0 %v6200_v2, %s7382_s28 }
 0x565   : > { %v1713_v39 = vpop.permute.xlu1 %1712  ;;  %v2121_v59 = vpop.permute.xlu0 %2120 }
 0x566   : > { %v1718_v41 = vsel %vm839_vm3, %v1711_v36, %v1713_v39 }
 0x567   : > { %5467 = vmatprep.subr.bf16.mxu0 %v1718_v41 }
 0x568   : > { %5468 = vmatpush3.bf16.msra.mxu0 %v1718_v41 }
 0x569   : > { %v1717_v42 = vpop.permute.xlu1 %1716  ;;  %v2125_v48 = vpop.permute.xlu0 %2124 }
 0x56a   : > { %v1719_v43 = vsel %vm839_vm3, %v1715_v37, %v1717_v42 }
 0x56b   : > { %5469 = vmatprep.subr.bf16.mxu0 %v1719_v43 }
 0x56c   : > { %5470 = vmatpush3.bf16.msra.mxu0 %v1719_v43 }
 0x56d   : > { %v1879_v49 = vpop.permute.xlu1 %1878 }
 0x56e   : > { %v1884_v50 = vsel %vm1007_vm4, %v1877_v44, %v1879_v49 }
 0x56f   : > { %5472 = vmatmul.mubr.msk.bf16.vlgmr.msra.gmra.mrb[4].mxu0 %vm844_vm2, %v5999_v45  ;;  %5479 = vmatprep.subr.bf16.mxu0 %v1884_v50 }
 0x570   : > { %5480 = vmatpush3.bf16.msra.mxu0 %v1884_v50  ;;  %5475 = vmatprep.mubr.msk.bf16.mxu0 %vm844_vm2, %v6000_v46 }
 0x571   : > { %v1883_v52 = vpop.permute.xlu1 %1882 }
 0x572   : > { %v1885_v53 = vsel %vm1007_vm4, %v1881_v51, %v1883_v52 }
 0x573   : > { %5481 = vmatprep.subr.bf16.mxu0 %v1885_v53 }
 0x574   : > { %5482 = vmatpush3.bf16.msra.mxu0 %v1885_v53 }
 0x575   : > { %5491 = vmatprep.subr.bf16.mxu0 %v6614_v38  ;;  %v2123_v58 = vpop.permute.xlu1 %2122 }
 0x576   : > { %v2128_v61 = vsel %vm1252_vm5, %v2121_v59, %v2123_v58 }
 0x577   : > { %5476 = vmatmul.mubr.msk.bf16.gmra.mrb[8].mxu0 %vm844_vm2, %v6001_v54 }
 0x578   : > { %5483 = vmatprep.mubr.msk.bf16.mxu0 %vm844_vm2, %v6002_v55 }
 0x579   : > { %v2127_v63 = vpop.permute.xlu1 %2126 }
 0x57a   : > { %v2129_v3 = vsel %vm1252_vm5, %v2125_v48, %v2127_v63 }
 0x57f   : > { %5484 = vmatmul.mubr.msk.bf16.vlgmr.msra.gmra.mrb[4].mxu0 %vm844_vm2, %v6003_v56 }
 0x580   : > { %5492 = vmatpush3.bf16.msra.mxu0 %v6614_v38  ;;  %5487 = vmatprep.mubr.msk.bf16.mxu0 %vm844_vm2, %v6004_v57  ;;  %v2247_v38 = vpop.permute.xlu0 %2246 }
 0x581   : > { %5493 = vmatprep.subr.bf16.mxu0 %v6612_v40 }
 0x584   : > { %5494 = vmatpush3.bf16.msra.mxu0 %v6612_v40  ;;  %v2249_v40 = vpop.permute.xlu1 %2248  ;;  %v2251_v11 = vpop.permute.xlu0 %2250 }
 0x585   : > { %5503 = vmatprep.subr.bf16.mxu0 %v2128_v61  ;;  %v2254_v4 = vsel %vm1379_vm6, %v2247_v38, %v2249_v40 }
 0x587   : > { %5488 = vmatmul.mubr.msk.bf16.gmra.mrb[8].mxu0 %vm844_vm2, %v6005_v60 }
 0x588   : > { %5495 = vmatprep.mubr.msk.bf16.mxu0 %vm844_vm2, %v6006_v62  ;;  %v2253_v8 = vpop.permute.xlu1 %2252  ;;  %v1822_v22 = vpop.permute.xlu0 %1821 }
 0x589   : > { %v2255_v12 = vsel %vm1379_vm6, %v2251_v11, %v2253_v8 }
 0x58c   : > { %v1832_v24 = vpop.permute.xlu0 %1831 }
 0x58f   : > { %5496 = vmatmul.mubr.msk.bf16.vlgmr.msra.gmra.mrb[4].mxu0 %vm844_vm2, %v6007_v0 }
 0x590   : > { %5504 = vmatpush3.bf16.msra.mxu0 %v2128_v61  ;;  %5499 = vmatprep.mubr.msk.bf16.mxu0 %vm844_vm2, %v6008_v1  ;;  %v1802_v32 = vpop.permute.xlu0 %1801 }
 0x591   : > { %5505 = vmatprep.subr.bf16.mxu0 %v2129_v3 }
 0x592   : > { %v1827_v23 = vpop.permute.xlu1 %1826 }
 0x594   : > { %5506 = vmatpush3.bf16.msra.mxu0 %v2129_v3  ;;  %v1812_v44 = vpop.permute.xlu0 %1811 }
 0x595   : > { %5515 = vmatprep.subr.bf16.mxu0 %v2254_v4 }
 0x596   : > { %v1837_v29 = vpop.permute.xlu1 %1836 }
 0x597   : > { %5500 = vmatmul.mubr.msk.bf16.gmra.mrb[8].mxu0 %vm844_vm2, %v6009_v47 }
 0x598   : > { %5507 = vmatprep.mubr.msk.bf16.mxu0 %vm844_vm2, %v6010_v5 }
 0x59a   : > { %v1807_v33 = vpop.permute.xlu1 %1806 }
 0x59e   : > { %v1817_v51 = vpop.permute.xlu1 %1816 }
 0x59f   : > { %5508 = vmatmul.mubr.msk.bf16.vlgmr.msra.gmra.mrb[4].mxu0 %vm844_vm2, %v6011_v6 }
 0x5a0   : > { %5516 = vmatpush3.bf16.msra.mxu0 %v2254_v4  ;;  %5511 = vmatprep.mubr.msk.bf16.mxu0 %vm844_vm2, %v6012_v7 }
 0x5a1   : > { %5517 = vmatprep.subr.bf16.mxu0 %v2255_v12 }
 0x5a4   : > { %5518 = vmatpush3.bf16.msra.mxu0 %v2255_v12 }
 0x5a7   : > { %5512 = vmatmul.mubr.msk.bf16.gmra.mrb[8].mxu0 %vm844_vm2, %v6013_v13  ;;  %v6019_v13 = vld [vmem:[%s7344_s9 + $0x38] sm:$0xff]  }
 0x5a8   : > { %5519 = vmatprep.mubr.msk.bf16.mxu0 %vm844_vm2, %v6014_v15  ;;  %v2472_v15 = vld [vmem:[%s7346_s11] sm:$0xff] }
 0x5a9   : > { %5543 = vmatprep.mubr.msk.f32.mxu1 %vm844_vm2, %v2472_v15 }
 0x5af   : > { %5520 = vmatmul.mubr.msk.bf16.vlgmr.msra.gmra.mrb[4].mxu0 %vm844_vm2, %v6015_v16  ;;  %v1534_v16 = vpop.permute.xlu0 %1533 }
 0x5b0   : > { %5523 = vmatprep.mubr.msk.bf16.mxu0 %vm844_vm2, %v6016_v17  ;;  %v1539_v17 = vpop.permute.xlu1 %1538 }
 0x5b7   : > { %5524 = vmatmul.mubr.msk.bf16.gmra.mrb[8].mxu0 %vm844_vm2, %v6017_v18  ;;  %v2382_v18 = vpop.permute.xlu0 %2381 }
 0x5b8   : > { %5531 = vmatprep.mubr.msk.bf16.mxu0 %vm844_vm2, %v6018_v19  ;;  %v2387_v19 = vpop.permute.xlu1 %2386 }
 0x682   : > { %v5521_v25 = vpop.f32.mrb[4].mxu0 }
 0x683   : > { %v2304_v28 = vpop.f32.mrb[5].mxu0  ;;  %v5756_v49 = vadd.f32 %v5521_v25, %v1812_v44 }
 0x684   : > { %v5522_v30 = vpop.f32.mrb[6].mxu0  ;;  %v5757_v52 = vadd.f32 %v2304_v28, %v1802_v32  ;;  %v1634_v28 = vadd.f32 %v6650_v10, %v1534_v16 }
 0x685   : > { %v2307_v31 = vpop.f32.mrb[7].mxu0  ;;  %v5758_v54 = vadd.f32 %v5522_v30, %v1817_v51  ;;  %v4968_v51 = vld [vmem:[%s7340_s5 + $0x10] sm:$0xff] }
 0x686   : > { %v5759_v55 = vadd.f32 %v2307_v31, %v1807_v33  ;;  %v5748_v32 = vadd.f32 %v2382_v18, %v1634_v28  ;;  %v1637_v33 = vadd.f32 %v6672_v21, %v1539_v17 }
 0x68a   : > { %v5525_v34 = vpop.f32.mrb[8].mxu0 }
 0x68b   : > { %v5760_v35 = vadd.f32 %v5525_v34, %v1832_v24  ;;  %v2320_v36 = vpop.f32.mrb[9].mxu0 }
 0x68c   : > { %v5761_v37 = vadd.f32 %v2320_v36, %v1822_v22  ;;  %v5526_v39 = vpop.f32.mrb[10].mxu0  ;;  %v1544_v22 = vpop.permute.xlu0 %1543 }
 0x68d   : > { %v2349_v41 = vmul.f32 0.5, %v5760_v35  ;;  %v5762_v42 = vadd.f32 %v5526_v39, %v1837_v29  ;;  %v2323_v43 = vpop.f32.mrb[11].mxu0  ;;  %v1642_v25 = vadd.f32 %v6648_v9, %v1544_v22  ;;  %v5754_v39 = vadd.f32 %v2387_v19, %v1637_v33 }
 0x68e   : > { %v2347_v45 = vmul.f32 0.5, %v5761_v37  ;;  %v5763_v46 = vadd.f32 %v2323_v43, %v1827_v23  ;;  %v1549_v23 = vpop.permute.xlu1 %1548 }
 0x68f   : > { %6082 = vtanh.f32 %v2349_v41  ;;  %v2350_v50 = vmul.f32 0.5, %v5762_v42  ;;  %v1645_v31 = vadd.f32 %v6670_v20, %v1549_v23  ;;  %v6020_v23 = vld [vmem:[%s7343_s8 + $0x140] sm:$0xff]  }
 0x690   : > { %6084 = vtanh.f32 %v2347_v45  ;;  %v2348_v53 = vmul.f32 0.5, %v5763_v46  ;;  %v2392_v24 = vpop.permute.xlu0 %2391 }
 0x691   : > { %6086 = vtanh.f32 %v2350_v50  ;;  %v5745_v30 = vadd.f32 %v2392_v24, %v1642_v25  ;;  %v2473_v50 = vld [vmem:[%s7346_s11 + $0x8] sm:$0xff] }
 0x692   : > { %6088 = vtanh.f32 %v2348_v53  ;;  %v2397_v29 = vpop.permute.xlu1 %2396 }
 0x693   : > { %6090 = vtanh.f32 %v5756_v49  ;;  %v5751_v35 = vadd.f32 %v2397_v29, %v1645_v31 }
 0x694   : > { %6092 = vtanh.f32 %v5757_v52  ;;  %v2484_v52 = vpop.permute.xlu0 %2483 }
 0x695   : > { %6094 = vtanh.f32 %v5758_v54 }
 0x696   : > { %6096 = vtanh.f32 %v5759_v55 }
 0x699   : > { %v6083_v56 = vpop.eup %6082 }
 0x69a   : > { %v6085_v57 = vpop.eup %6084  ;;  %v2357_v58 = vadd.f32 1.0, %v6083_v56 }
 0x69b   : > { %v6087_v59 = vpop.eup %6086  ;;  %v2355_v60 = vadd.f32 1.0, %v6085_v57  ;;  %v2479_v57 = vpop.permute.xlu1 %2478 }
 0x69c   : > { %v6089_v61 = vpop.eup %6088  ;;  %v2361_v62 = vmul.f32 0.5, %v2357_v58  ;;  %v2358_v63 = vadd.f32 1.0, %v6087_v59  ;;  %v2595_v58 = vpop.permute.xlu0 %2594 }
 0x69d   : > { %v6091_v0 = vpop.eup %6090  ;;  %v2359_v1 = vmul.f32 0.5, %v2355_v60  ;;  %v2356_v48 = vadd.f32 1.0, %v6089_v61 }
 0x69e   : > { %v6093_v3 = vpop.eup %6092  ;;  %v2362_v40 = vmul.f32 0.5, %v2358_v63  ;;  %v2365_v38 = vmul.f32 %v6091_v0, %v2361_v62 }
 0x69f   : > { %v6095_v47 = vpop.eup %6094  ;;  %v2360_v4 = vmul.f32 0.5, %v2356_v48  ;;  %v2363_v5 = vmul.f32 %v6093_v3, %v2359_v1  ;;  %v2600_v62 = vpop.permute.xlu1 %2599  ;;  %v2602_v1 = vmul.f32 %v2595_v58, %v6398_v27  ;;  %v4972_v27 = vld [vmem:[%s7341_s6 + $0x20] sm:$0xff]  ;;  %v6021_v58 = vld [vmem:[%s7343_s8 + $0x148] sm:$0xff]  }
 0x6a0   : > { %v6097_v6 = vpop.eup %6096  ;;  %v2366_v7 = vmul.f32 %v6095_v47, %v2362_v40  ;;  %v2607_v0 = vpop.permute.xlu0 %2606 }
 0x6a1   : > { %v2364_v8 = vmul.f32 %v6097_v6, %v2360_v4  ;;  %v2614_v3 = vadd.f32 %v2607_v0, %v2602_v1  ;;  %v6023_v1 = vld [vmem:[%s7343_s8 + $0x158] sm:$0xff]  }
 0x6a2   : > { %v2368_v11 = vpack.c.bf16 %v2366_v7, %v2365_v38 }
 0x6a3   : > { %v2367_v12 = vpack.c.bf16 %v2364_v8, %v2363_v5  ;;  %v2612_v38 = vpop.permute.xlu1 %2611  ;;  %v2616_v4 = vmul.f32 %v6376_v14, %v2614_v3  ;;  %v6025_v3 = vld [vmem:[%s7343_s8 + $0x168] sm:$0xff]  }
 0x6a4   : > { %v2715_v16 = vpop.permute.xlu0 %2714 }
 0x6a5   : > { %5527 = vmatprep.subr.bf16.mxu0 %v2367_v12 }
 0x6a6   : > { %5528 = vmatpush3.bf16.msra.mxu0 %v2367_v12  ;;  %v4974_v12 = vld [vmem:[%s7341_s6 + $0x30] sm:$0xff] }
 0x6a7   : > { %5529 = vmatprep.subr.bf16.mxu0 %v2368_v11  ;;  %v2720_v15 = vpop.permute.xlu1 %2719 }
 0x6aa   : > { %5530 = vmatpush3.bf16.msra.mxu0 %v2368_v11  ;;  %v4973_v11 = vld [vmem:[%s7341_s6 + $0x28] sm:$0xff] }
 0x6ab   : > { %v2730_v25 = vpop.permute.xlu1 %2729 }
 0x6ad   : > { %5532 = vmatmul.mubr.msk.bf16.vlgmr.msra.gmra.mrb[12].mxu0 %vm844_vm2, %v6019_v13  ;;  %v4975_v13 = vld [vmem:[%s7341_s6 + $0x38] sm:$0xff] }
 0x780   : > { %v5533_v34 = vpop.f32.mrb[12].mxu0 }
 0x781   : > { %v5746_v36 = vadd.f32 %v5745_v30, %v5533_v34  ;;  %v2449_v37 = vpop.f32.mrb[13].mxu0  ;;  %v2725_v30 = vpop.permute.xlu0 %2724 }
 0x782   : > { %v5749_v41 = vadd.f32 %v5748_v32, %v2449_v37  ;;  %v5534_v42 = vpop.f32.mrb[14].mxu0 }
 0x783   : > { %v5752_v43 = vadd.f32 %v5751_v35, %v5534_v42  ;;  %v2452_v44 = vpop.f32.mrb[15].mxu0  ;;  %v2470_v9 = vmul.f32 %v6376_v14, %v5746_v36  ;;  %v4984_v42 = vld [vmem:[%s6454_s18 + $0x80] sm:$0xff] }
 0x784   : > { %v5755_v45 = vadd.f32 %v5754_v39, %v2452_v44  ;;  %v2468_v46 = vmul.f32 %v6376_v14, %v5749_v41  ;;  %v4988_v39 = vld [vmem:[%s6454_s18 + $0xa0] sm:$0xff]  ;;  %v4990_v41 = vld [vmem:[%s6454_s18 + $0xb0] sm:$0xff] }
 0x785   : > { %v2471_v10 = vmul.f32 %v6376_v14, %v5752_v43  ;;  %v4986_v43 = vld [vmem:[%s6454_s18 + $0x90] sm:$0xff]  ;;  %v5080_v44 = vld [vmem:[%s7345_s10 + $0x80] sm:$0xff] }
 0x786   : > { %v2469_v20 = vmul.f32 %v6376_v14, %v5755_v45  ;;  %v4989_v45 = vld [vmem:[%s6454_s18 + $0xa8] sm:$0xff] }
 0x787   : > { %v5720_v49 = vpack.c.bf16 %v2471_v10, %v2470_v9  ;;  %v5082_v9 = vld [vmem:[%s7345_s10 + $0x90] sm:$0xff]  ;;  %v4991_v10 = vld [vmem:[%s6454_s18 + $0xb8] sm:$0xff] }
 0x788   : > { %v5716_v21 = vpack.c.bf16 %v2469_v20, %v2468_v46  ;;  %v4985_v46 = vld [vmem:[%s6454_s18 + $0x88] sm:$0xff]  ;;  %v4987_v20 = vld [vmem:[%s6454_s18 + $0x98] sm:$0xff] }
 0x78a   : > { %5717 = vmatprep.subr.bf16.mxu1 %v5716_v21 }
 0x78b   : > { %5719 = vmatpush3.bf16.msra.mxu1 %v5716_v21  ;;  %v5083_v21 = vld [vmem:[%s7345_s10 + $0x98] sm:$0xff] }
 0x78c   : > { %5721 = vmatprep.subr.bf16.mxu1 %v5720_v49 }
 0x78f   : > { %5723 = vmatpush3.bf16.msra.mxu1 %v5720_v49  ;;  %v5081_v49 = vld [vmem:[%s7345_s10 + $0x88] sm:$0xff] }
 0x792   : > { %5544 = vmatmul.mubr.msk.f32.vlgmr.msra.gmra.mrb[20].mxu1 %vm844_vm2, %v2473_v50  ;;  %v2888_v50 = vpop.permute.xlu0 %2887 }
 0x793   : > { %5550 = vmatprep.mubr.msk.f32.mxu1 %vm567_vm0, %v4968_v51 }
 0x796   : > { %v2892_v51 = vpop.permute.xlu0 %2891 }
 0x865   : > { %v5545_v53 = vpop.f32.mrb[20].mxu1 }
 0x866   : > { %v6834_v54 = vadd.f32 %v5545_v53, %v2484_v52  ;;  %v2558_v55 = vpop.f32.mrb[21].mxu1 }
 0x867   : > { %v2559_v60 = vadd.f32 %v2558_v55, %v2479_v57  ;;  %v3054_v57 = vpop.permute.xlu0 %3053 }
 0x868   : > { %v2567_v56 = vmul.f32 1.442695, %v6834_v54 }
 0x86a   : > { %6098 = vpow2.f32 %v2567_v56 }
 0x874   : > { %v6099_v59 = vpop.eup %6098 }
 0x875   : > { %v2569_v61 = vmul.f32 %v6099_v59, %v6396_v26  ;;  %v4969_v26 = vld [vmem:[%s7340_s5 + $0x18] sm:$0xff]  ;;  %v6022_v59 = vld [vmem:[%s7343_s8 + $0x150] sm:$0xff]  }
 0x877   : > { %v2570_v63 = vadd.f32 %v2569_v61, %v2559_v60 }
 0x879   : > { %v2571_v48 = vmul.f32 %v6376_v14, %v2570_v63 }
 0x87b   : > { %v2603_v40 = vmul.f32 %v2600_v62, %v2571_v48  ;;  %v3058_v62 = vpop.permute.xlu0 %3057  ;;  %v6024_v48 = vld [vmem:[%s7343_s8 + $0x160] sm:$0xff]  }
 0x87d   : > { %v2615_v47 = vadd.f32 %v2612_v38, %v2603_v40  ;;  %v6026_v40 = vld [vmem:[%s7343_s8 + $0x170] sm:$0xff]  }
 0x87f   : > { %v2617_v5 = vmul.f32 %v6376_v14, %v2615_v47 }
 0x881   : > { %v5724_v6 = vpack.c.bf16 %v2617_v5, %v2616_v4  ;;  %v6027_v4 = vld [vmem:[%s7343_s8 + $0x178] sm:$0xff]  }
 0x883   : > { %5725 = vmatprep.subr.bf16.mxu1 %v5724_v6 }
 0x884   : > { %5727 = vmatpush3.bf16.msra.mxu1 %v5724_v6  ;;  %v6028_v6 = vld [vmem:[%s7343_s8 + $0x180] sm:$0xff]  }
 0x887   : > { %5551 = vmatmul.mubr.msk.f32.vlgmr.msra.gmra.mrb[22].mxu1 %vm567_vm0, %v4969_v26 }
 0x888   : > { %5555 = vmatprep.mubr.msk.f32.mxu1 %vm677_vm1, %v4972_v27  ;;  %v6029_v27 = vld [vmem:[%s7343_s8 + $0x188] sm:$0xff]  }
 0x95a   : > { %v6853_v7 = vpop.f32.mrb[22].mxu1 }
 0x95b   : > { %v2693_v8 = vpop.f32.mrb[23].mxu1 }
 0x95c   : > { %4641 = vst [vmem:[%s6858_s1] sm:$0xff] %v2693_v8  ;;  %5553 = vmatprep.subr.mxu1 %v2693_v8 }
 0x95d   : > { %5554 = vmatpush3.msra.mxu1 %v2693_v8  ;;  %v6030_v8 = vld [vmem:[%s7343_s8 + $0x190] sm:$0xff]  }
 0x95e   : > { %5556 = vmatmul.mubr.msk.f32.vlgmr.msra.gmra.mrb[24].mxu1 %vm677_vm1, %v4973_v11 }
 0x95f   : > { %5558 = vmatprep.mubr.msk.f32.mxu1 %vm677_vm1, %v4974_v12 }
 0x962   : > { %5559 = vmatmul.mubr.msk.f32.gmra.mrb[26].mxu1 %vm677_vm1, %v4975_v13 }
 0x963   : > { %5565 = vmatprep.mubr.msk.bf16.mxu1 %vm844_vm2, %v6020_v23 }
 0xa31   : > { %v5557_v17 = vpop.f32.mrb[24].mxu1 }
 0xa32   : > { %v2816_v18 = vadd.f32 %v5557_v17, %v2720_v15  ;;  %v2810_v19 = vpop.f32.mrb[25].mxu1 }
 0xa33   : > { %v2811_v22 = vadd.f32 %v2810_v19, %v2715_v16  ;;  %v6031_v16 = vld [vmem:[%s7343_s8 + $0x198] sm:$0xff]   ;;  %v6033_v19 = vld [vmem:[%s7343_s8 + $0x1a8] sm:$0xff]  }
 0xa34   : > { %v6874_v24 = vmul.f32 %v6376_v14, %v2816_v18  ;;  %v6032_v18 = vld [vmem:[%s7343_s8 + $0x1a0] sm:$0xff]  }
 0xa35   : > { %v6877_v28 = vmul.f32 %v6376_v14, %v2811_v22  ;;  %v5560_v29 = vpop.f32.mrb[26].mxu1  ;;  %v6034_v22 = vld [vmem:[%s7343_s8 + $0x1b0] sm:$0xff]  }
 0xa36   : > { %v2826_v31 = vadd.f32 %v5560_v29, %v2730_v25  ;;  %v2820_v32 = vpop.f32.mrb[27].mxu1 }
 0xa37   : > { %v6882_v33 = vpack.c.bf16 %v6874_v24, %v6877_v28  ;;  %v2821_v34 = vadd.f32 %v2820_v32, %v2725_v30  ;;  %v6035_v30 = vld [vmem:[%s7343_s8 + $0x1b8] sm:$0xff]   ;;  %v6037_v32 = vld [vmem:[%s7343_s8 + $0x1c8] sm:$0xff]  }
 0xa38   : > { %v6885_v35 = vmul.f32 %v6376_v14, %v2826_v31  ;;  %v6036_v31 = vld [vmem:[%s7343_s8 + $0x1c0] sm:$0xff]  }
 0xa39   : > { %v6888_v36 = vmul.f32 %v6376_v14, %v2821_v34  ;;  %3297 = vrot.lane.b32.xlu0 %v6882_v33, %s7379_s27  ;;  %2889 = vrot.lane.b32.xlu1 %v6882_v33, %s7380_s15  ;;  %v6039_v34 = vld [vmem:[%s7343_s8 + $0x1d8] sm:$0xff]  }
 0xa3b   : > { %v6896_v37 = vpack.c.bf16 %v6885_v35, %v6888_v36 }
 0xa3d   : > { %3301 = vrot.lane.b32.xlu0 %v6896_v37, %s7379_s27  ;;  %2893 = vrot.lane.b32.xlu1 %v6896_v37, %s7380_s15 }
 0xa41   : > { %3423 = vrot.lane.b32.xlu0 %v6882_v33, %s7381_s22  ;;  %3055 = vrot.lane.b32.xlu1 %v6882_v33, %s7382_s28 }
 0xa45   : > { %3427 = vrot.lane.b32.xlu0 %v6896_v37, %s7381_s22  ;;  %3059 = vrot.lane.b32.xlu1 %v6896_v37, %s7382_s28 }
 0xa49   : > { %2998 = vperm.xlu0 %5972, %v4988_v39   ;;  %3299 = vrot.lane.b32.xlu1 %v6200_v2, %s7379_s27 }
 0xa4d   : > { %3008 = vperm.xlu0 %5972, %v4990_v41   ;;  %3303 = vrot.lane.b32.xlu1 %v6200_v2, %s7379_s27 }
 0xa51   : > { %2978 = vperm.xlu0 %5972, %v4984_v42   ;;  %3425 = vrot.lane.b32.xlu1 %v6200_v2, %s7381_s22 }
 0xa55   : > { %2988 = vperm.xlu0 %5972, %v4986_v43   ;;  %3429 = vrot.lane.b32.xlu1 %v6200_v2, %s7381_s22 }
 0xa59   : > { %3566 = vperm.xlu0 %5972, %v5080_v44   ;;  %3003 = vperm.xlu1 %5973, %v4989_v45  }
 0xa5d   : > { %3576 = vperm.xlu0 %5972, %v5082_v9   ;;  %3013 = vperm.xlu1 %5973, %v4991_v10  }
 0xa61   : > { %2983 = vperm.xlu1 %5973, %v4985_v46   ;;  %3763 = vrot.lane.b32.xlu0 %v6200_v2, %s7380_s15 }
 0xa65   : > { %2993 = vperm.xlu1 %5973, %v4987_v20   ;;  %3767 = vrot.lane.b32.xlu0 %v6200_v2, %s7380_s15 }
 0xa69   : > { %3571 = vperm.xlu1 %5973, %v5081_v49   ;;  %3929 = vrot.lane.b32.xlu0 %v6200_v2, %s7382_s28 }
 0xa6d   : > { %3581 = vperm.xlu1 %5973, %v5083_v21   ;;  %3933 = vrot.lane.b32.xlu0 %v6200_v2, %s7382_s28 }
 0xaab   : > { %v2890_v52 = vpop.permute.xlu1 %2889  ;;  %v3298_v47 = vpop.permute.xlu0 %3297 }
 0xaac   : > { %v2895_v53 = vsel %vm839_vm3, %v2888_v50, %v2890_v52 }
 0xaad   : > { %5561 = vmatprep.subr.bf16.mxu1 %v2895_v53 }
 0xaae   : > { %5562 = vmatpush3.bf16.msra.mxu1 %v2895_v53 }
 0xaaf   : > { %v2894_v55 = vpop.permute.xlu1 %2893  ;;  %v3302_v11 = vpop.permute.xlu0 %3301 }
 0xab0   : > { %v2896_v56 = vsel %vm839_vm3, %v2892_v51, %v2894_v55 }
 0xab1   : > { %5563 = vmatprep.subr.bf16.mxu1 %v2896_v56 }
 0xab2   : > { %5564 = vmatpush3.bf16.msra.mxu1 %v2896_v56 }
 0xab3   : > { %v3056_v60 = vpop.permute.xlu1 %3055  ;;  %v3424_v15 = vpop.permute.xlu0 %3423 }
 0xab4   : > { %v3061_v61 = vsel %vm1007_vm4, %v3054_v57, %v3056_v60 }
 0xab5   : > { %5566 = vmatmul.mubr.msk.bf16.vlgmr.msra.gmra.mrb[28].mxu1 %vm844_vm2, %v6021_v58  ;;  %5573 = vmatprep.subr.bf16.mxu1 %v3061_v61 }
 0xab6   : > { %5574 = vmatpush3.bf16.msra.mxu1 %v3061_v61  ;;  %5569 = vmatprep.mubr.msk.bf16.mxu1 %vm844_vm2, %v6022_v59 }
 0xab7   : > { %v3060_v63 = vpop.permute.xlu1 %3059  ;;  %v3428_v25 = vpop.permute.xlu0 %3427 }
 0xab8   : > { %v3062_v0 = vsel %vm1007_vm4, %v3058_v62, %v3060_v63 }
 0xab9   : > { %5575 = vmatprep.subr.bf16.mxu1 %v3062_v0 }
 0xaba   : > { %5576 = vmatpush3.bf16.msra.mxu1 %v3062_v0 }
 0xabb   : > { %5585 = vmatprep.subr.bf16.mxu1 %v6882_v33  ;;  %v3300_v38 = vpop.permute.xlu1 %3299 }
 0xabc   : > { %v3305_v5 = vsel %vm1252_vm5, %v3298_v47, %v3300_v38 }
 0xabd   : > { %5570 = vmatmul.mubr.msk.bf16.gmra.mrb[32].mxu1 %vm844_vm2, %v6023_v1 }
 0xabe   : > { %5577 = vmatprep.mubr.msk.bf16.mxu1 %vm844_vm2, %v6024_v48 }
 0xabf   : > { %v3304_v26 = vpop.permute.xlu1 %3303 }
 0xac0   : > { %v3306_v12 = vsel %vm1252_vm5, %v3302_v11, %v3304_v26 }
 0xac3   : > { %v3426_v13 = vpop.permute.xlu1 %3425 }
 0xac4   : > { %v3431_v17 = vsel %vm1379_vm6, %v3424_v15, %v3426_v13 }
 0xac5   : > { %5578 = vmatmul.mubr.msk.bf16.vlgmr.msra.gmra.mrb[28].mxu1 %vm844_vm2, %v6025_v3 }
 0xac6   : > { %5586 = vmatpush3.bf16.msra.mxu1 %v6882_v33  ;;  %5581 = vmatprep.mubr.msk.bf16.mxu1 %vm844_vm2, %v6026_v40  ;;  %v6038_v33 = vld [vmem:[%s7343_s8 + $0x1d0] sm:$0xff]  }
 0xac7   : > { %5587 = vmatprep.subr.bf16.mxu1 %v6896_v37  ;;  %v3430_v23 = vpop.permute.xlu1 %3429 }
 0xac8   : > { %v3432_v29 = vsel %vm1379_vm6, %v3428_v25, %v3430_v23  ;;  %v2999_v39 = vpop.permute.xlu0 %2998 }
 0xaca   : > { %5588 = vmatpush3.bf16.msra.mxu1 %v6896_v37  ;;  %v6040_v37 = vld [vmem:[%s7344_s9 + $0x40] sm:$0xff]  }
 0xacb   : > { %5597 = vmatprep.subr.bf16.mxu1 %v3305_v5  ;;  %5625 = vmatprep.mubr.msk.bf16.mxu0 %vm844_vm2, %v6040_v37 }
 0xacc   : > { %v3009_v42 = vpop.permute.xlu0 %3008 }
 0xacd   : > { %5582 = vmatmul.mubr.msk.bf16.gmra.mrb[32].mxu1 %vm844_vm2, %v6027_v4 }
 0xace   : > { %5589 = vmatprep.mubr.msk.bf16.mxu1 %vm844_vm2, %v6028_v6 }
 0xad0   : > { %v2979_v46 = vpop.permute.xlu0 %2978 }
 0xad4   : > { %v2989_v57 = vpop.permute.xlu0 %2988 }
 0xad5   : > { %5590 = vmatmul.mubr.msk.bf16.vlgmr.msra.gmra.mrb[28].mxu1 %vm844_vm2, %v6029_v27 }
 0xad6   : > { %5598 = vmatpush3.bf16.msra.mxu1 %v3305_v5  ;;  %5593 = vmatprep.mubr.msk.bf16.mxu1 %vm844_vm2, %v6030_v8 }
 0xad7   : > { %5599 = vmatprep.subr.bf16.mxu1 %v3306_v12 }
 0xad8   : > { %v3004_v41 = vpop.permute.xlu1 %3003 }
 0xada   : > { %5600 = vmatpush3.bf16.msra.mxu1 %v3306_v12 }
 0xadb   : > { %5609 = vmatprep.subr.bf16.mxu1 %v3431_v17 }
 0xadc   : > { %v3014_v45 = vpop.permute.xlu1 %3013 }
 0xadd   : > { %5594 = vmatmul.mubr.msk.bf16.gmra.mrb[32].mxu1 %vm844_vm2, %v6031_v16 }
 0xade   : > { %5601 = vmatprep.mubr.msk.bf16.mxu1 %vm844_vm2, %v6032_v18 }
 0xae0   : > { %v2984_v20 = vpop.permute.xlu1 %2983 }
 0xae4   : > { %v2994_v62 = vpop.permute.xlu1 %2993 }
 0xae5   : > { %5602 = vmatmul.mubr.msk.bf16.vlgmr.msra.gmra.mrb[28].mxu1 %vm844_vm2, %v6033_v19 }
 0xae6   : > { %5610 = vmatpush3.bf16.msra.mxu1 %v3431_v17  ;;  %5605 = vmatprep.mubr.msk.bf16.mxu1 %vm844_vm2, %v6034_v22 }
 0xae7   : > { %5611 = vmatprep.subr.bf16.mxu1 %v3432_v29 }
 0xaea   : > { %5612 = vmatpush3.bf16.msra.mxu1 %v3432_v29 }
 0xaed   : > { %5606 = vmatmul.mubr.msk.bf16.gmra.mrb[32].mxu1 %vm844_vm2, %v6035_v30  ;;  %v6041_v30 = vld [vmem:[%s7344_s9 + $0x48] sm:$0xff]  }
 0xaee   : > { %5613 = vmatprep.mubr.msk.bf16.mxu1 %vm844_vm2, %v6036_v31  ;;  %v3567_v31 = vpop.permute.xlu0 %3566 }
 0xaf2   : > { %v3577_v37 = vpop.permute.xlu0 %3576 }
 0xaf5   : > { %5614 = vmatmul.mubr.msk.bf16.vlgmr.msra.gmra.mrb[28].mxu1 %vm844_vm2, %v6037_v32  ;;  %v3572_v32 = vpop.permute.xlu1 %3571 }
 0xaf6   : > { %5617 = vmatprep.mubr.msk.bf16.mxu1 %vm844_vm2, %v6038_v33  ;;  %v6042_v33 = vld [vmem:[%s7344_s9 + $0x50] sm:$0xff]  }
 0xafd   : > { %5618 = vmatmul.mubr.msk.bf16.gmra.mrb[32].mxu1 %vm844_vm2, %v6039_v34  ;;  %v6043_v34 = vld [vmem:[%s7344_s9 + $0x58] sm:$0xff]  }
 0xbc8   : > { %v5615_v43 = vpop.f32.mrb[28].mxu1 }
 0xbc9   : > { %v3481_v44 = vpop.f32.mrb[29].mxu1  ;;  %v5764_v60 = vadd.f32 %v5615_v43, %v2989_v57  ;;  %v3582_v43 = vpop.permute.xlu1 %3581  ;;  %v5096_v57 = vld [vmem:[%s6454_s18 + $0xc0] sm:$0xff] }
 0xbca   : > { %v5616_v9 = vpop.f32.mrb[30].mxu1  ;;  %v5765_v63 = vadd.f32 %v3481_v44, %v2979_v46 }
 0xbcb   : > { %v3484_v10 = vpop.f32.mrb[31].mxu1  ;;  %v5766_v1 = vadd.f32 %v5616_v9, %v2994_v62  ;;  %v5103_v62 = vld [vmem:[%s6454_s18 + $0xf8] sm:$0xff] }
 0xbcc   : > { %v5767_v48 = vadd.f32 %v3484_v10, %v2984_v20 }
 0xbd0   : > { %v5619_v49 = vpop.f32.mrb[32].mxu1 }
 0xbd1   : > { %v5768_v21 = vadd.f32 %v5619_v49, %v3009_v42  ;;  %v3497_v50 = vpop.f32.mrb[33].mxu1 }
 0xbd2   : > { %v5769_v51 = vadd.f32 %v3497_v50, %v2999_v39  ;;  %v5620_v52 = vpop.f32.mrb[34].mxu1 }
 0xbd3   : > { %v3526_v53 = vmul.f32 0.5, %v5768_v21  ;;  %v5770_v55 = vadd.f32 %v5620_v52, %v3014_v45  ;;  %v3500_v56 = vpop.f32.mrb[35].mxu1 }
 0xbd4   : > { %v3524_v58 = vmul.f32 0.5, %v5769_v51  ;;  %v5771_v59 = vadd.f32 %v3500_v56, %v3004_v41  ;;  %v6044_v51 = vld [vmem:[%s7343_s8 + $0x1e0] sm:$0xff]   ;;  %v5102_v56 = vld [vmem:[%s6454_s18 + $0xf0] sm:$0xff] }
 0xbd5   : > { %6100 = vtanh.f32 %v3526_v53  ;;  %v3527_v61 = vmul.f32 0.5, %v5770_v55 }
 0xbd6   : > { %6102 = vtanh.f32 %v3524_v58  ;;  %v3525_v0 = vmul.f32 0.5, %v5771_v59  ;;  %v5098_v58 = vld [vmem:[%s6454_s18 + $0xd0] sm:$0xff]  ;;  %v5084_v59 = vld [vmem:[%s7345_s10 + $0xa0] sm:$0xff] }
 0xbd7   : > { %6104 = vtanh.f32 %v3527_v61  ;;  %v5188_v61 = vld [vmem:[%s7345_s10 + $0xe0] sm:$0xff] }
 0xbd8   : > { %6106 = vtanh.f32 %v3525_v0  ;;  %v5097_v0 = vld [vmem:[%s6454_s18 + $0xc8] sm:$0xff] }
 0xbd9   : > { %6108 = vtanh.f32 %v5764_v60  ;;  %v5101_v60 = vld [vmem:[%s6454_s18 + $0xe8] sm:$0xff] }
 0xbda   : > { %6110 = vtanh.f32 %v5765_v63  ;;  %v5086_v63 = vld [vmem:[%s7345_s10 + $0xb0] sm:$0xff] }
 0xbdb   : > { %6112 = vtanh.f32 %v5766_v1  ;;  %v5099_v1 = vld [vmem:[%s6454_s18 + $0xd8] sm:$0xff] }
 0xbdc   : > { %6114 = vtanh.f32 %v5767_v48  ;;  %v5199_v48 = vld [vmem:[%s7347_s12 + $0x18] sm:$0xff] }
 0xbdf   : > { %v6101_v3 = vpop.eup %6100 }
 0xbe0   : > { %v6103_v40 = vpop.eup %6102  ;;  %v3534_v38 = vadd.f32 1.0, %v6101_v3  ;;  %v5085_v3 = vld [vmem:[%s7345_s10 + $0xa8] sm:$0xff] }
 0xbe1   : > { %v6105_v47 = vpop.eup %6104  ;;  %v3532_v4 = vadd.f32 1.0, %v6103_v40  ;;  %v5189_v40 = vld [vmem:[%s7345_s10 + $0xe8] sm:$0xff] }
 0xbe2   : > { %v6107_v5 = vpop.eup %6106  ;;  %v3538_v6 = vmul.f32 0.5, %v3534_v38  ;;  %v3535_v26 = vadd.f32 1.0, %v6105_v47  ;;  %v5087_v38 = vld [vmem:[%s7345_s10 + $0xb8] sm:$0xff] }
 0xbe3   : > { %v6109_v27 = vpop.eup %6108  ;;  %v3536_v8 = vmul.f32 0.5, %v3532_v4  ;;  %v3533_v11 = vadd.f32 1.0, %v6107_v5  ;;  %v5191_v47 = vld [vmem:[%s7345_s10 + $0xf8] sm:$0xff]  ;;  %v2573_v4 = vmul.f32 %v6376_v14, %v6834_v54  ;;  %v6134_v5 = vld [vmem:[%s6373_s20] sm:$0x1] }
 0xbe4   : > { %v6111_v12 = vpop.eup %6110  ;;  %v3539_v13 = vmul.f32 0.5, %v3535_v26  ;;  %v3542_v15 = vmul.f32 %v6109_v27, %v3538_v6  ;;  %v512_v6 = vsel %vm511_vm7, %v6134_v5, 0.0  ;;  %v3764_v26 = vpop.permute.xlu0 %3763  ;;  %v6062_v5 = vld [vmem:[%s7343_s8 + $0x270] sm:$0xff]  }
 0xbe5   : > { %v6113_v16 = vpop.eup %6112  ;;  %v3537_v17 = vmul.f32 0.5, %v3533_v11  ;;  %v3540_v18 = vmul.f32 %v6111_v12, %v3536_v8  ;;  %v5198_v11 = vld [vmem:[%s7347_s12 + $0x10] sm:$0xff] }
 0xbe6   : > { %v6115_v19 = vpop.eup %6114  ;;  %v3543_v22 = vmul.f32 %v6113_v16, %v3539_v13 }
 0xbe7   : > { %v3541_v23 = vmul.f32 %v6115_v19, %v3537_v17  ;;  %v6045_v17 = vld [vmem:[%s7343_s8 + $0x1e8] sm:$0xff]   ;;  %v6046_v19 = vld [vmem:[%s7343_s8 + $0x1f0] sm:$0xff]  }
 0xbe8   : > { %v3545_v25 = vpack.c.bf16 %v3543_v22, %v3542_v15  ;;  %v3768_v27 = vpop.permute.xlu0 %3767 }
 0xbe9   : > { %v3544_v29 = vpack.c.bf16 %v3541_v23, %v3540_v18 }
 0xbeb   : > { %5621 = vmatprep.subr.bf16.mxu0 %v3544_v29 }
 0xbec   : > { %5622 = vmatpush3.bf16.msra.mxu0 %v3544_v29  ;;  %v3930_v8 = vpop.permute.xlu0 %3929 }
 0xbed   : > { %5623 = vmatprep.subr.bf16.mxu0 %v3545_v25 }
 0xbf0   : > { %5624 = vmatpush3.bf16.msra.mxu0 %v3545_v25  ;;  %v3934_v13 = vpop.permute.xlu0 %3933 }
 0xbf3   : > { %5626 = vmatmul.mubr.msk.bf16.vlgmr.msra.gmra.mrb[16].mxu0 %vm844_vm2, %v6041_v30 }
 0xbf4   : > { %5629 = vmatprep.mubr.msk.bf16.mxu0 %vm844_vm2, %v6042_v33 }
 0xbfb   : > { %5630 = vmatmul.mubr.msk.bf16.gmra.mrb[20].mxu0 %vm844_vm2, %v6043_v34  ;;  %v6049_v34 = vld [vmem:[%s7343_s8 + $0x208] sm:$0xff]  }
 0xbfc   : > { %5637 = vmatprep.mubr.msk.bf16.mxu0 %vm844_vm2, %v6044_v51 }
 0xcc6   : > { %v5627_v39 = vpop.f32.mrb[16].mxu0 }
 0xcc7   : > { %v3679_v41 = vadd.f32 %v5627_v39, %v3577_v37  ;;  %v3670_v42 = vpop.f32.mrb[17].mxu0  ;;  %v6050_v39 = vld [vmem:[%s7343_s8 + $0x210] sm:$0xff]  }
 0xcc8   : > { %v3671_v44 = vadd.f32 %v3670_v42, %v3567_v31  ;;  %v5628_v45 = vpop.f32.mrb[18].mxu0  ;;  %v6047_v31 = vld [vmem:[%s7343_s8 + $0x1f8] sm:$0xff]  }
 0xcc9   : > { %v3703_v9 = vadd.f32 %v3679_v41, %v6888_v36  ;;  %v3682_v10 = vadd.f32 %v5628_v45, %v3582_v43  ;;  %v3673_v46 = vpop.f32.mrb[19].mxu0 }
 0xcca   : > { %v3701_v20 = vadd.f32 %v3671_v44, %v6877_v28  ;;  %v3674_v49 = vadd.f32 %v3673_v46, %v3572_v32  ;;  %v6048_v32 = vld [vmem:[%s7343_s8 + $0x200] sm:$0xff]   ;;  %v6051_v44 = vld [vmem:[%s7343_s8 + $0x218] sm:$0xff]  }
 0xccb   : > { %v3704_v21 = vadd.f32 %v3682_v10, %v6885_v35  ;;  %v3707_v52 = vmul.f32 %v6376_v14, %v3703_v9  ;;  %v5100_v35 = vld [vmem:[%s6454_s18 + $0xe0] sm:$0xff]  ;;  %s7290_s18 = scalar_lea.sflag [#allocation4], %s485_s29 }
 0xccc   : > { %v3702_v50 = vadd.f32 %v3674_v49, %v6874_v24  ;;  %v3705_v36 = vmul.f32 %v6376_v14, %v3701_v20  ;;  %v6052_v9 = vld [vmem:[%s7343_s8 + $0x220] sm:$0xff]   ;;  %v6053_v49 = vld [vmem:[%s7343_s8 + $0x228] sm:$0xff]  }
 0xccd   : > { %v3708_v53 = vmul.f32 %v6376_v14, %v3704_v21  ;;  %v6054_v21 = vld [vmem:[%s7343_s8 + $0x230] sm:$0xff]  }
 0xcce   : > { %v3706_v55 = vmul.f32 %v6376_v14, %v3702_v50 }
 0xccf   : > { %v7062_v28 = vpack.c.bf16 %v3708_v53, %v3707_v52 }
 0xcd0   : > { %v7064_v24 = vpack.c.bf16 %v3706_v55, %v3705_v36  ;;  %v6055_v55 = vld [vmem:[%s7343_s8 + $0x238] sm:$0xff]  }
 0xcd2   : > { %4173 = vrot.lane.b32.xlu0 %v7064_v24, %s7379_s27  ;;  %3765 = vrot.lane.b32.xlu1 %v7064_v24, %s7380_s15 }
 0xcd6   : > { %4177 = vrot.lane.b32.xlu0 %v7062_v28, %s7379_s27  ;;  %3769 = vrot.lane.b32.xlu1 %v7062_v28, %s7380_s15 }
 0xcda   : > { %4299 = vrot.lane.b32.xlu0 %v7064_v24, %s7381_s22  ;;  %3931 = vrot.lane.b32.xlu1 %v7064_v24, %s7382_s28 }
 0xcde   : > { %4303 = vrot.lane.b32.xlu0 %v7062_v28, %s7381_s22  ;;  %3935 = vrot.lane.b32.xlu1 %v7062_v28, %s7382_s28 }
 0xce2   : > { %3874 = vperm.xlu0 %5972, %v5100_v35   ;;  %4175 = vrot.lane.b32.xlu1 %v6200_v2, %s7379_s27 }
 0xce6   : > { %3884 = vperm.xlu0 %5972, %v5102_v56   ;;  %4179 = vrot.lane.b32.xlu1 %v6200_v2, %s7379_s27  ;;  %s7286_s27 = scalar_lea.hbm %s7348_s13, %s5209_s26 }
 0xcea   : > { %3854 = vperm.xlu0 %5972, %v5096_v57   ;;  %4301 = vrot.lane.b32.xlu1 %v6200_v2, %s7381_s22 }
 0xcee   : > { %3864 = vperm.xlu0 %5972, %v5098_v58   ;;  %4305 = vrot.lane.b32.xlu1 %v6200_v2, %s7381_s22  ;;  %v5190_v2 = vld [vmem:[%s7345_s10 + $0xf0] sm:$0xff] }
 0xcf2   : > { %3586 = vperm.xlu0 %5972, %v5084_v59   ;;  %3879 = vperm.xlu1 %5973, %v5101_v60   ;;  %v6057_v60 = vld [vmem:[%s7343_s8 + $0x248] sm:$0xff]  }
 0xcf6   : > { %4434 = vperm.xlu0 %5972, %v5188_v61   ;;  %3889 = vperm.xlu1 %5973, %v5103_v62   ;;  %v6058_v61 = vld [vmem:[%s7343_s8 + $0x250] sm:$0xff]  }
 0xcfa   : > { %3596 = vperm.xlu0 %5972, %v5086_v63   ;;  %3859 = vperm.xlu1 %5973, %v5097_v0  }
 0xcfe   : > { %4444 = vperm.xlu0 %5972, %v5190_v2   ;;  %3869 = vperm.xlu1 %5973, %v5099_v1  }
 0xd02   : > { %4538 = vperm.xlu0 %5972, %v5199_v48   ;;  %3591 = vperm.xlu1 %5973, %v5085_v3   ;;  %v6059_v48 = vld [vmem:[%s7343_s8 + $0x258] sm:$0xff]   ;;  %v6060_v3 = vld [vmem:[%s7343_s8 + $0x260] sm:$0xff]  }
 0xd06   : > { %4439 = vperm.xlu1 %5973, %v5189_v40  }
 0xd0a   : > { %3601 = vperm.xlu1 %5973, %v5087_v38  }
 0xd0e   : > { %4449 = vperm.xlu1 %5973, %v5191_v47  }
 0xd21   : > { %2574 = vadd.xlane.f32.xlu0 %v2573_v4  ;;  %v6061_v4 = vld [vmem:[%s7343_s8 + $0x268] sm:$0xff]  }
 0xd32   : > { %513 = vadd.xlane.f32.xlu1 %v512_v6 }
 0xd43   : > { %4533 = vperm.xlu1 %5973, %v5198_v11  }
 0xd44   : > { %v3766_v12 = vpop.permute.xlu1 %3765  ;;  %v4174_v18 = vpop.permute.xlu0 %4173 }
 0xd45   : > { %v3771_v15 = vsel %vm839_vm3, %v3764_v26, %v3766_v12 }
 0xd46   : > { %5633 = vmatprep.subr.bf16.mxu0 %v3771_v15 }
 0xd47   : > { %5634 = vmatpush3.bf16.msra.mxu0 %v3771_v15 }
 0xd48   : > { %v3770_v54 = vpop.permute.xlu1 %3769  ;;  %v4178_v29 = vpop.permute.xlu0 %4177 }
 0xd49   : > { %v3772_v16 = vsel %vm839_vm3, %v3768_v27, %v3770_v54  ;;  %v6063_v27 = vld [vmem:[%s7343_s8 + $0x278] sm:$0xff]  }
 0xd4a   : > { %5635 = vmatprep.subr.bf16.mxu0 %v3772_v16 }
 0xd4b   : > { %5636 = vmatpush3.bf16.msra.mxu0 %v3772_v16 }
 0xd4c   : > { %v3932_v22 = vpop.permute.xlu1 %3931  ;;  %v4300_v33 = vpop.permute.xlu0 %4299 }
 0xd4d   : > { %v3937_v23 = vsel %vm1007_vm4, %v3930_v8, %v3932_v22 }
 0xd4e   : > { %5638 = vmatmul.mubr.msk.bf16.vlgmr.msra.gmra.mrb[24].mxu0 %vm844_vm2, %v6045_v17  ;;  %5645 = vmatprep.subr.bf16.mxu0 %v3937_v23 }
 0xd4f   : > { %5646 = vmatpush3.bf16.msra.mxu0 %v3937_v23  ;;  %5641 = vmatprep.mubr.msk.bf16.mxu0 %vm844_vm2, %v6046_v19 }
 0xd50   : > { %v3936_v25 = vpop.permute.xlu1 %3935  ;;  %v4304_v41 = vpop.permute.xlu0 %4303 }
 0xd51   : > { %v3938_v30 = vsel %vm1007_vm4, %v3934_v13, %v3936_v25 }
 0xd52   : > { %5647 = vmatprep.subr.bf16.mxu0 %v3938_v30 }
 0xd53   : > { %5648 = vmatpush3.bf16.msra.mxu0 %v3938_v30 }
 0xd54   : > { %5657 = vmatprep.subr.bf16.mxu0 %v7064_v24  ;;  %v4176_v37 = vpop.permute.xlu1 %4175 }
 0xd55   : > { %v4181_v45 = vsel %vm1252_vm5, %v4174_v18, %v4176_v37 }
 0xd56   : > { %5642 = vmatmul.mubr.msk.bf16.gmra.mrb[28].mxu0 %vm844_vm2, %v6047_v31  ;;  %v6064_v31 = vld [vmem:[%s7344_s9 + $0x70] sm:$0xff]  }
 0xd57   : > { %5649 = vmatprep.mubr.msk.bf16.mxu0 %vm844_vm2, %v6048_v32 }
 0xd58   : > { %v4180_v42 = vpop.permute.xlu1 %4179 }
 0xd59   : > { %v4182_v52 = vsel %vm1252_vm5, %v4178_v29, %v4180_v42 }
 0xd5c   : > { %v4302_v46 = vpop.permute.xlu1 %4301 }
 0xd5e   : > { %5650 = vmatmul.mubr.msk.bf16.vlgmr.msra.gmra.mrb[24].mxu0 %vm844_vm2, %v6049_v34 }
 0xd5f   : > { %5658 = vmatpush3.bf16.msra.mxu0 %v7064_v24  ;;  %5653 = vmatprep.mubr.msk.bf16.mxu0 %vm844_vm2, %v6050_v39  ;;  %v6056_v24 = vld [vmem:[%s7343_s8 + $0x240] sm:$0xff]  }
 0xd60   : > { %5659 = vmatprep.subr.bf16.mxu0 %v7062_v28  ;;  %v4306_v50 = vpop.permute.xlu1 %4305 }
 0xd61   : > { %v7162_v43 = vpop.permute.xlu0 %3874  ;;  %v4308_v2 = vsel %vm1379_vm6, %v4304_v41, %v4306_v50 }
 0xd63   : > { %5660 = vmatpush3.bf16.msra.mxu0 %v7062_v28  ;;  %v4307_v28 = vsel %vm1379_vm6, %v4300_v33, %v4302_v46 }
 0xd64   : > { %5669 = vmatprep.subr.bf16.mxu0 %v4181_v45 }
 0xd65   : > { %v7172_v10 = vpop.permute.xlu0 %3884 }
 0xd66   : > { %5654 = vmatmul.mubr.msk.bf16.gmra.mrb[28].mxu0 %vm844_vm2, %v6051_v44 }
 0xd67   : > { %5661 = vmatprep.mubr.msk.bf16.mxu0 %vm844_vm2, %v6052_v9 }
 0xd69   : > { %v7176_v20 = vpop.permute.xlu0 %3854 }
 0xd6d   : > { %v7184_v51 = vpop.permute.xlu0 %3864 }
 0xd6e   : > { %5662 = vmatmul.mubr.msk.bf16.vlgmr.msra.gmra.mrb[24].mxu0 %vm844_vm2, %v6053_v49 }
 0xd6f   : > { %5670 = vmatpush3.bf16.msra.mxu0 %v4181_v45  ;;  %5665 = vmatprep.mubr.msk.bf16.mxu0 %vm844_vm2, %v6054_v21 }
 0xd70   : > { %5671 = vmatprep.subr.bf16.mxu0 %v4182_v52 }
 0xd71   : > { %v3587_v53 = vpop.permute.xlu0 %3586  ;;  %v7189_v36 = vpop.permute.xlu1 %3879 }
 0xd73   : > { %5672 = vmatpush3.bf16.msra.mxu0 %v4182_v52 }
 0xd74   : > { %5681 = vmatprep.subr.bf16.mxu0 %v4307_v28 }
 0xd75   : > { %v4435_v35 = vpop.permute.xlu0 %4434  ;;  %v3890_v56 = vpop.permute.xlu1 %3889 }
 0xd76   : > { %v7198_v57 = vadd.f32 %v4435_v35, %v3587_v53  ;;  %5666 = vmatmul.mubr.msk.bf16.gmra.mrb[28].mxu0 %vm844_vm2, %v6055_v55 }
 0xd77   : > { %5673 = vmatprep.mubr.msk.bf16.mxu0 %vm844_vm2, %v6056_v24 }
 0xd79   : > { %v3597_v58 = vpop.permute.xlu0 %3596  ;;  %v7202_v59 = vpop.permute.xlu1 %3859 }
 0xd7d   : > { %v4445_v62 = vpop.permute.xlu0 %4444  ;;  %v7210_v63 = vpop.permute.xlu1 %3869 }
 0xd7e   : > { %v7212_v0 = vadd.f32 %v4445_v62, %v3597_v58  ;;  %5674 = vmatmul.mubr.msk.bf16.vlgmr.msra.gmra.mrb[24].mxu0 %vm844_vm2, %v6057_v60 }
 0xd7f   : > { %5682 = vmatpush3.bf16.msra.mxu0 %v4307_v28  ;;  %5677 = vmatprep.mubr.msk.bf16.mxu0 %vm844_vm2, %v6058_v61 }
 0xd80   : > { %5683 = vmatprep.subr.bf16.mxu0 %v4308_v2 }
 0xd81   : > { %v3592_v1 = vpop.permute.xlu1 %3591  ;;  %v7241_v8 = vpop.permute.xlu0 %4538 }
 0xd83   : > { %5684 = vmatpush3.bf16.msra.mxu0 %v4308_v2 }
 0xd85   : > { %v4440_v40 = vpop.permute.xlu1 %4439 }
 0xd86   : > { %v7223_v38 = vadd.f32 %v4440_v40, %v3592_v1  ;;  %5678 = vmatmul.mubr.msk.bf16.gmra.mrb[28].mxu0 %vm844_vm2, %v6059_v48 }
 0xd87   : > { %5685 = vmatprep.mubr.msk.bf16.mxu0 %vm844_vm2, %v6060_v3 }
 0xd89   : > { %v3602_v47 = vpop.permute.xlu1 %3601 }
 0xd8d   : > { %v4450_v6 = vpop.permute.xlu1 %4449 }
 0xd8e   : > { %v7233_v26 = vadd.f32 %v4450_v6, %v3602_v47  ;;  %5686 = vmatmul.mubr.msk.bf16.vlgmr.msra.gmra.mrb[24].mxu0 %vm844_vm2, %v6061_v4 }
 0xd8f   : > { %5689 = vmatprep.mubr.msk.bf16.mxu0 %vm844_vm2, %v6062_v5 }
 0xd96   : > { %5690 = vmatmul.mubr.msk.bf16.gmra.mrb[28].mxu0 %vm844_vm2, %v6063_v27 }
 0xd97   : > { %5697 = vmatprep.mubr.msk.bf16.mxu0 %vm844_vm2, %v6064_v31 }
 0xdae   : > { %v2575_v11 = vpop.xlane.xlu0 %2574 }
 0xdaf   : > { %v2576_v12 = vrot.slane %v2575_v11, 4 }
 0xdb1   : > { %v2577_v13 = vadd.f32 %v2576_v12, %v2575_v11  ;;  %v6065_v11 = vld [vmem:[%s7344_s9 + $0x78] sm:$0xff]   ;;  %v5196_v12 = vld [vmem:[%s7346_s11 + $0x10] sm:$0xff] }
 0xdb2   : > { %5709 = vmatprep.mubr.msk.f32.mxu1 %vm844_vm2, %v5196_v12 }
 0xdb3   : > { %v2578_v15 = vrot.slane %v2577_v13, 2 }
 0xdb5   : > { %v2579_v18 = vadd.f32 %v2578_v15, %v2577_v13 }
 0xdb7   : > { %v2580_v23 = vrot.slane %v2579_v18, 1 }
 0xdb9   : > { %v2581_v30 = vadd.f32 %v2580_v23, %v2579_v18 }
 0xdbf   : > { %v514_v54 = vpop.xlane.xlu1 %513 }
 0xdc0   : > { %v515_v16 = vrot.slane %v514_v54, 4 }
 0xdc2   : > { %v516_v17 = vadd.f32 %v515_v16, %v514_v54 }
 0xdc4   : > { %v517_v19 = vrot.slane %v516_v17, 2 }
 0xdc6   : > { %v518_v22 = vadd.f32 %v517_v19, %v516_v17 }
 0xdc8   : > { %v519_v25 = vrot.slane %v518_v22, 1 }
 0xdca   : > { %v520_v29 = vadd.f32 %v519_v25, %v518_v22 }
 0xdcc   : > { %5920 = vpush %v520_v29 }
 0xdcd   : > { %5922 = vpush %v2581_v30 }
 0xe61   : > { %v5687_v32 = vpop.f32.mrb[24].mxu0 }
 0xe62   : > { %v4357_v33 = vpop.f32.mrb[25].mxu0  ;;  %v5780_v52 = vadd.f32 %v5687_v32, %v7184_v51 }
 0xe63   : > { %v5688_v34 = vpop.f32.mrb[26].mxu0  ;;  %v5781_v55 = vadd.f32 %v4357_v33, %v7176_v20 }
 0xe64   : > { %v4360_v37 = vpop.f32.mrb[27].mxu0 }
 0xe69   : > { %v5691_v39 = vpop.f32.mrb[28].mxu0 }
 0xe6a   : > { %v5784_v41 = vadd.f32 %v5691_v39, %v7172_v10  ;;  %v4373_v42 = vpop.f32.mrb[29].mxu0  ;;  %v5782_v10 = vadd.f32 %v5688_v34, %v7210_v63  ;;  %v4534_v39 = vpop.permute.xlu1 %4533 }
 0xe6b   : > { %v5785_v44 = vadd.f32 %v4373_v42, %v7162_v43  ;;  %v5692_v45 = vpop.f32.mrb[30].mxu0  ;;  %v5783_v43 = vadd.f32 %v4360_v37, %v7202_v59 }
 0xe6c   : > { %v4402_v9 = vmul.f32 0.5, %v5784_v41  ;;  %v5786_v46 = vadd.f32 %v5692_v45, %v3890_v56  ;;  %v4376_v49 = vpop.f32.mrb[31].mxu0 }
 0xe6d   : > { %v4400_v21 = vmul.f32 0.5, %v5785_v44  ;;  %v5787_v50 = vadd.f32 %v4376_v49, %v7189_v36 }
 0xe6e   : > { %6116 = vtanh.f32 %v4402_v9  ;;  %v4403_v53 = vmul.f32 0.5, %v5786_v46 }
 0xe6f   : > { %6118 = vtanh.f32 %v4400_v21  ;;  %v4401_v28 = vmul.f32 0.5, %v5787_v50 }
 0xe70   : > { %6120 = vtanh.f32 %v4403_v53 }
 0xe71   : > { %6122 = vtanh.f32 %v4401_v28 }
 0xe72   : > { %6124 = vtanh.f32 %v5780_v52 }
 0xe73   : > { %6126 = vtanh.f32 %v5781_v55 }
 0xe74   : > { %6128 = vtanh.f32 %v5782_v10 }
 0xe75   : > { %6130 = vtanh.f32 %v5783_v43 }
 0xe78   : > { %v6117_v24 = vpop.eup %6116 }
 0xe79   : > { %v6119_v36 = vpop.eup %6118  ;;  %v4410_v35 = vadd.f32 1.0, %v6117_v24 }
 0xe7a   : > { %v6121_v51 = vpop.eup %6120  ;;  %v4408_v56 = vadd.f32 1.0, %v6119_v36 }
 0xe7b   : > { %v6123_v58 = vpop.eup %6122  ;;  %v4414_v60 = vmul.f32 0.5, %v4410_v35  ;;  %v4411_v20 = vadd.f32 1.0, %v6121_v51 }
 0xe7c   : > { %v6125_v61 = vpop.eup %6124  ;;  %v4412_v62 = vmul.f32 0.5, %v4408_v56  ;;  %v4409_v2 = vadd.f32 1.0, %v6123_v58 }
 0xe7d   : > { %v6127_v63 = vpop.eup %6126  ;;  %v4415_v1 = vmul.f32 0.5, %v4411_v20  ;;  %v4418_v48 = vmul.f32 %v6125_v61, %v4414_v60 }
 0xe7e   : > { %v6129_v59 = vpop.eup %6128  ;;  %v4413_v3 = vmul.f32 0.5, %v4409_v2  ;;  %v4416_v40 = vmul.f32 %v6127_v63, %v4412_v62 }
 0xe7f   : > { %v6131_v47 = vpop.eup %6130  ;;  %v4419_v4 = vmul.f32 %v6129_v59, %v4415_v1 }
 0xe80   : > { %v4417_v5 = vmul.f32 %v6131_v47, %v4413_v3 }
 0xe81   : > { %v4421_v6 = vpack.c.bf16 %v4419_v4, %v4418_v48 }
 0xe82   : > { %v4420_v27 = vpack.c.bf16 %v4417_v5, %v4416_v40 }
 0xe84   : > { %5693 = vmatprep.subr.bf16.mxu0 %v4420_v27 }
 0xe85   : > { %5694 = vmatpush3.bf16.msra.mxu0 %v4420_v27 }
 0xe86   : > { %5695 = vmatprep.subr.bf16.mxu0 %v4421_v6 }
 0xe89   : > { %5696 = vmatpush3.bf16.msra.mxu0 %v4421_v6 }
 0xe8c   : > { %5698 = vmatmul.mubr.msk.bf16.vlgmr.msra.gmra.mrb[20].mxu0 %vm844_vm2, %v6065_v11 }
 0xf5f   : > { %v5699_v13 = vpop.f32.mrb[20].mxu0 }
 0xf60   : > { %v5773_v15 = vadd.f32 %v7212_v0, %v5699_v13  ;;  %v4502_v54 = vpop.f32.mrb[21].mxu0 }
 0xf61   : > { %v5775_v16 = vadd.f32 %v7198_v57, %v4502_v54  ;;  %v5700_v17 = vpop.f32.mrb[22].mxu0  ;;  %v5197_v57 = vld [vmem:[%s7346_s11 + $0x18] sm:$0xff] }
 0xf62   : > { %v5777_v18 = vadd.f32 %v7233_v26, %v5700_v17  ;;  %v4505_v19 = vpop.f32.mrb[23].mxu0  ;;  %v4523_v23 = vmul.f32 %v6376_v14, %v5773_v15 }
 0xf63   : > { %v5779_v22 = vadd.f32 %v7223_v38, %v4505_v19  ;;  %v4521_v29 = vmul.f32 %v6376_v14, %v5775_v16 }
 0xf64   : > { %v4524_v25 = vmul.f32 %v6376_v14, %v5777_v18 }
 0xf65   : > { %v4522_v30 = vmul.f32 %v6376_v14, %v5779_v22 }
 0xf66   : > { %v5732_v31 = vpack.c.bf16 %v4524_v25, %v4523_v23 }
 0xf67   : > { %v5728_v32 = vpack.c.bf16 %v4522_v30, %v4521_v29 }
 0xf69   : > { %5729 = vmatprep.subr.bf16.mxu1 %v5728_v32 }
 0xf6a   : > { %5731 = vmatpush3.bf16.msra.mxu1 %v5728_v32 }
 0xf6b   : > { %5733 = vmatprep.subr.bf16.mxu1 %v5732_v31 }
 0xf6e   : > { %5735 = vmatpush3.bf16.msra.mxu1 %v5732_v31 }
 0xf71   : > { %5710 = vmatmul.mubr.msk.f32.vlgmr.msra.gmra.mrb[36].mxu1 %vm844_vm2, %v5197_v57 }
0x1044   : > { %v5711_v0 = vpop.f32.mrb[36].mxu1 }
0x1045   : > { %v4619_v38 = vadd.f32 %v5711_v0, %v7241_v8  ;;  %v4613_v26 = vpop.f32.mrb[37].mxu1 }
0x1046   : > { %v4614_v41 = vadd.f32 %v4613_v26, %v4534_v39 }
0x1047   : > { %v4622_v33 = vmul.f32 1.442695, %v4619_v38  ;;  %v4628_v34 = vmul.f32 %v6376_v14, %v4619_v38 }
0x1049   : > { %6132 = vpow2.f32 %v4622_v33  ;;  %4629 = vadd.xlane.f32.xlu0 %v4628_v34 }
0x1053   : > { %v6133_v37 = vpop.eup %6132 }
0x1054   : > { %v4624_v42 = vmul.f32 %v6133_v37, %v6853_v7 }
0x1056   : > { %v4625_v44 = vadd.f32 %v4624_v42, %v4614_v41 }
0x1058   : > { %v4626_v45 = vmul.f32 %v6376_v14, %v4625_v44 }
0x105a   : > { %4642 = vst [vmem:[%s6858_s1 + $0x8] sm:$0xff] %v4626_v45  ;;  %s6205_s1 = smov [#allocation3]  }
0x105b   : > { %s6140_s16 = sshll.u32 %s6205_s1, 4  ;;  %s6141_s16 = int_to_ptr.vmem [resolvable:$false] %s6140_s16 }
0x105c   : > { %s6142_s2 = scalar_lea.vmem %s6141_s16, 512  ;;  %p6143_p0 = scmp.lt.s32.totalorder %s7280_s0, %s6141_s16 }
0x105d   : > { %p6144_p1 = scmp.lt.s32.totalorder %s6142_s2, %s6136_s14 }
0x105f   : > { %p6145_p2 = por %p6144_p1, %p6143_p0 }
0x1061   : > { %p6146_p3 = pnand %p6145_p2, %p6139_p13 }
0x1063   : > { %6149 = shalt.err (!%p6146_p3)
}
0x1064   : > { %s6150_s17 = scalar_lea.hbm %s7286_s27, 256  ;;  %s6154_s20 = scalar_lea.hbm %s7348_s13, 512 }
0x1065   : > { %p6151_p4 = scmp.ne.s32.totalorder %s7286_s27, %s6150_s17  ;;  %p6155_p9 = scmp.lt.u32.totalorder %s7286_s27, %s7348_s13 }
0x1066   : > { %p6156_p10 = scmp.lt.u32.totalorder %s6154_s20, %s6150_s17  ;;  %p6158_p12 = scmp.lt.u32.totalorder %s6150_s17, %s7286_s27 }
0x1067   : > { %p6152_p7 = pnand %p6151_p4, %p6321_p5 }
0x1068   : > { %p6157_p11 = por %p6156_p10, %p6155_p9 }
0x1069   : > { %p6153_p8 = pneg %p6152_p7 }
0x106a   : > { %p6159_p13 = por %p6158_p12, %p6157_p11 }
0x106c   : > { %p6160_p0 = pnand %p6159_p13, %p6153_p8 }
0x106e   : > { %6163 = shalt.err (!%p6160_p0)
}
0x106f   : > { %s6206_s24 = smov 128   ;;  %s6207_s26 = smov 8   ;;  %vm4643_vm8 = vcmask 0  }
0x1070   : > { %5926 = dma.vmem_to_hbm [thread:$0]  (%p6321_p5), %s7280_s0, 256, %s7286_s27, %s7290_s18, %s6206_s24, %s6206_s24, %s6207_s26  }
0x1071   : > { %s5921_s15 = spop %5920  ;;  %s7383_s27 = sld [smem:[#allocation15_spill]] }
0x1072   : > { %v522_v50 = vstv %s5921_s15  ;;  %s5923_s28 = spop %5922 }
0x1073   : > { %v2572_v52 = vmul.f32 -0.06062375, %v522_v50  ;;  %v4627_v53 = vmul.f32 -0.61483806, %v522_v50  ;;  %v2583_v55 = vstv %s5923_s28 }
0x1075   : > { %v2584_v10 = vadd.f32 %v2583_v55, %v2572_v52 }
0x1077   : > { %s508_s18 = scalar_lea.vmem %s7383_s27, %s6363_s25 }
0x10d6   : > { %v4630_v14 = vpop.xlane.xlu0 %4629 }
0x10d7   : > { %v4631_v7 = vrot.slane %v4630_v14, 4 }
0x10d9   : > { %v4632_v8 = vadd.f32 %v4631_v7, %v4630_v14 }
0x10db   : > { %v4633_v9 = vrot.slane %v4632_v8, 2 }
0x10dd   : > { %v4634_v46 = vadd.f32 %v4633_v9, %v4632_v8 }
0x10df   : > { %v4635_v49 = vrot.slane %v4634_v46, 1 }
0x10e1   : > { %v4636_v21 = vadd.f32 %v4635_v49, %v4634_v46 }
0x10e3   : > { %5924 = vpush %v4636_v21 }
0x1114   : > { %s5925_s14 = spop %5924 }
0x1115   : > { %v4638_v28 = vstv %s5925_s14 }
0x1116   : > { %v4639_v43 = vadd.f32 %v4638_v28, %v4627_v53 }
0x1118   : > { %v4640_v24 = vadd.f32 %v4639_v43, %v2584_v10 }
0x111a   : > { %4644 = vst.msk [vmem:[%s508_s18] sm:$0x1] %vm4643_vm8, %v4640_v24 }
0x111b PF: > { %s7384_s1 = sld [smem:[#allocation8_spill]]  ;;  %s7385_s16 = sld [smem:[#allocation6_spill]] }
0x1121   : > { %p5932_p5 = scmp.ge.s32.totalorder %s7384_s1, 2  ;;  %s4680_s17 = sand.u32 1, %s7385_s16  }
0x1122   : > { %s4681_s29 = scalar_lea.sflag [#allocation4], %s4680_s17 }
0x1123   : > { %p5929_p1 = pnand %p5932_p5, %p6325_p6 }
0x1125   : > { %6181 = dma.done.wait (!%p5929_p1), %s4681_s29, 256  }
0x1126   : > { %6183 = vsyncadd (!%p5929_p1), %s4681_s29, 4294967040  ;;  %s7387_s16 = sld [smem:[#allocation9_spill]]  ;;  %s7388_s22 = sld [smem:[#allocation7_spill]] }
0x1127   : > { %s7389_s15 = sld [smem:[#allocation10_spill]]  ;;  %s7390_s29 = smov %s6190_s30 }
0x112c   : > { %p25_p2 = scmp.ge.s32.totalorder %s7387_s16, 4   ;;  %s7391_s30 = smov %s7388_s22 }
0x112e   :  { %27 = sbr.rel (!%p25_p2) target bundleno = 8 (0x8), region = 160 }
0x1135   :  { %4692 = vsyncpa [#allocation4], 1 }
0x1136   :  { %4694 = vsyncpa [#allocation4 + $0x1], 1 }

</bundles_post_ra>
